<compile_context>
chip_gen: v7x
topology: tpu7x:2x2x1
jax: 0.10.0
libtpu: 0.0.40
codegen_flags: <defaults>
</compile_context>

<pallas_src>
import jax
import jax.numpy as jnp
from jax.experimental import pallas as pl
from jax.experimental.pallas import tpu as pltpu


# ---------------------------------------------------------------------------
# Pallas kernel (single program, whole batch)
# ---------------------------------------------------------------------------
def cccnn_kernel(x_ref, r_ref, w1_ref, b1_ref, a2_ref, b2_ref, s_ref,
                 wfc_ref, bfc_ref, out_ref, xpad, h1un, h2pad):
    # x_ref  : (N, L)             all B*C channels, rows ordered (c, b), N = C*B
    # r_ref  : (N*Cmid, N)        0/1 row-replication selector
    # w1_ref : (N*Cmid, Ksz)      conv1 taps, tiled over N
    # b1_ref : (N*Cmid, 1)
    # a2_ref : (N*Kc, Ksz*N*Cmid) conv2 weights, tap-fused, block-diagonal over N
    # b2_ref : (N*Kc, 1)
    # s_ref  : (N, N*Kc)          0/1 feature-map-sum selector
    # wfc_ref: (C, nlag, O)       fc weight, per-channel blocks
    # bfc_ref: (1, O)
    # out_ref: (B, O)
    N, L = x_ref.shape
    NCmid, Ksz = w1_ref.shape
    NKc = b2_ref.shape[0]
    nlag = 2 * L - 1
    C = wfc_ref.shape[0]
    B = N // C

    def silu(v):
        return v * (1.0 / (1.0 + jnp.exp(-v)))

    # ---- conv1: 1 -> Cmid feature maps, kernel Ksz, padding 1 (all N rows) ----
    xpad[...] = jnp.zeros(xpad.shape, xpad.dtype)
    xpad[:, 1:L + 1] = x_ref[...]
    # replicate every input row Cmid times -> (N*Cmid, L+2)
    xrep = jnp.dot(r_ref[...], xpad[...], preferred_element_type=jnp.float32)
    h1 = b1_ref[...]                                   # (N*Cmid, 1), broadcasts
    for dk in range(Ksz):
        h1 = h1 + w1_ref[:, dk:dk + 1] * xrep[:, dk:dk + L]
    h1 = silu(h1)                                      # (N*Cmid, L)

    # ---- conv2: Cmid -> Kc, kernel Ksz, padding 1 — one fused MXU matmul ----
    # h1un[(dk, n, m), l] = zero-padded h1[(n, m), dk + l - 1]
    h1un[...] = jnp.zeros(h1un.shape, h1un.dtype)
    for dk in range(Ksz):
        lo = max(0, 1 - dk)
        hi = min(L, L + 1 - dk)
        h1un[dk * NCmid:(dk + 1) * NCmid, lo:hi] = h1[:, lo + dk - 1:hi + dk - 1]
    h2 = b2_ref[...] + jnp.dot(a2_ref[...], h1un[...],
                               preferred_element_type=jnp.float32)
    h2 = silu(h2)                                      # (N*Kc, L)

    # ---- summed autocorrelation (deferred reduction) ----
    h2pad[...] = jnp.zeros(h2pad.shape, h2pad.dtype)
    h2pad[:, L - 1:2 * L - 1] = h2
    h2p = h2pad[...]                                   # (N*Kc, 3L-2)
    acc = jnp.zeros((NKc, nlag), jnp.float32)
    for j in range(L):                                 # pure VPU MACs
        acc = acc + h2[:, j:j + 1] * h2p[:, j:j + nlag]
    # sum over the Kc feature maps of each (c, b) row: one MXU matmul
    cc = jnp.dot(s_ref[...], acc, preferred_element_type=jnp.float32)  # (N, nlag)

    # ---- softmax over lags ----
    m = jnp.max(cc, axis=-1, keepdims=True)
    e = jnp.exp(cc - m)
    p = e * pl.reciprocal(jnp.sum(e, axis=-1, keepdims=True), approx=True)

    # ---- fc layer, accumulated per channel (dropout = identity in eval) ----
    out = bfc_ref[...]                                 # (1, O), broadcasts to (B, O)
    for c in range(C):
        out = out + jnp.dot(p[c * B:(c + 1) * B, :], wfc_ref[c],
                            preferred_element_type=jnp.float32)
    out_ref[...] = out


# ---------------------------------------------------------------------------
# Wrapper: host-side layout / weight reformatting + pallas_call
# ---------------------------------------------------------------------------
def cccnn_forward(x, params):
    W1, b1, W2stk, b2, WfcT, bfc = params
    B, C, L = x.shape
    Cmid, Ksz = W1.shape
    Kc = b2.shape[0]
    nlag = 2 * L - 1
    O = WfcT.shape[1]
    N = C * B

    # pure layout plumbing / weight reformatting (no input-dependent math)
    xr = jnp.transpose(x, (1, 0, 2)).reshape(N, L)           # rows ordered (c, b)
    eye_n = jnp.eye(N, dtype=jnp.float32)
    R = jnp.kron(eye_n, jnp.ones((Cmid, 1), jnp.float32))    # (N*Cmid, N)
    W1rep = jnp.tile(W1, (N, 1))                             # (N*Cmid, Ksz)
    b1rep = jnp.tile(b1, (N, 1))                             # (N*Cmid, 1)
    # A2[(n,k), (dk,n',m)] = W2[k,m,dk] * delta(n, n')
    A2 = jnp.einsum('nq,dkm->nkdqm', eye_n, W2stk).reshape(N * Kc, Ksz * N * Cmid)
    b2rep = jnp.tile(b2, (N, 1))                             # (N*Kc, 1)
    S = jnp.kron(eye_n, jnp.ones((1, Kc), jnp.float32))      # (N, N*Kc)
    Wfc3 = WfcT.reshape(C, nlag, O)                          # per-channel fc blocks

    out = pl.pallas_call(
        cccnn_kernel,
        out_shape=jax.ShapeDtypeStruct((B, O), jnp.float32),
        grid_spec=pltpu.PrefetchScalarGridSpec(
            num_scalar_prefetch=0,
            grid=(1,),
            in_specs=[
                pl.BlockSpec((N, L), lambda i: (0, 0)),
                pl.BlockSpec((N * Cmid, N), lambda i: (0, 0)),
                pl.BlockSpec((N * Cmid, Ksz), lambda i: (0, 0)),
                pl.BlockSpec((N * Cmid, 1), lambda i: (0, 0)),
                pl.BlockSpec((N * Kc, Ksz * N * Cmid), lambda i: (0, 0)),
                pl.BlockSpec((N * Kc, 1), lambda i: (0, 0)),
                pl.BlockSpec((N, N * Kc), lambda i: (0, 0)),
                pl.BlockSpec((C, nlag, O), lambda i: (0, 0, 0)),
                pl.BlockSpec((1, O), lambda i: (0, 0)),
            ],
            out_specs=pl.BlockSpec((B, O), lambda i: (0, 0)),
            scratch_shapes=[
                pltpu.VMEM((N, L + 2), jnp.float32),            # padded input
                pltpu.VMEM((Ksz * N * Cmid, L), jnp.float32),   # unfolded conv2 rhs
                pltpu.VMEM((N * Kc, 3 * L - 2), jnp.float32),   # padded conv2 out
            ],
        ),
        compiler_params=pltpu.CompilerParams(
            dimension_semantics=("arbitrary",)),
    )(xr, R, W1rep, b1rep, A2, b2rep, S, Wfc3, bfc)
    return out


# ---------------------------------------------------------------------------
# Pure-JAX reference (mirrors the PyTorch forward semantics)
# ---------------------------------------------------------------------------
def reference_forward(x, params):
    W1, b1, W2stk, b2, WfcT, bfc = params
    B, C, L = x.shape
    Cmid, Ksz = W1.shape
    Kc = b2.shape[0]
    nlag = 2 * L - 1

    def silu(v):
        return v * jax.nn.sigmoid(v)

    xs = x.reshape(B * C, L)
    xp = jnp.pad(xs, ((0, 0), (1, 1)))
    h1 = b1.reshape(1, Cmid, 1) + sum(
        W1[None, :, dk:dk + 1] * xp[:, None, dk:dk + L] for dk in range(Ksz))
    h1 = silu(h1)                                        # (B*C, Cmid, L)
    h1p = jnp.pad(h1, ((0, 0), (0, 0), (1, 1)))
    h2 = b2.reshape(1, Kc, 1) + sum(
        jnp.einsum('oc,ncl->nol', W2stk[dk], h1p[:, :, dk:dk + L])
        for dk in range(Ksz))
    h2 = silu(h2)                                        # (B*C, Kc, L)

    h2p = jnp.pad(h2, ((0, 0), (0, 0), (L - 1, L - 1)))
    cc = jnp.stack([jnp.sum(h2 * h2p[:, :, t:t + L], axis=(1, 2))
                    for t in range(nlag)], axis=-1)      # (B*C, 2L-1)
    probs = jax.nn.softmax(cc, axis=-1).reshape(B, C * nlag)
    return probs @ WfcT + bfc


# ---------------------------------------------------------------------------
if __name__ == "__main__":
    # Module-consistent small shapes:
    #   input_size L = 16, channels C = 3, layer_sizes = [8, 16],
    #   kernel_size 3, padding 1, stride 1, output_size O = 2, batch B = 2.
    B, C, L = 2, 3, 16
    Cmid, Kc, Ksz = 8, 16, 3
    O = 2
    Fdim = C * (2 * L - 1)

    key = jax.random.PRNGKey(0)
    k1, k2, k3, k4, k5, k6, k7 = jax.random.split(key, 7)
    W1 = 0.3 * jax.random.normal(k1, (Cmid, Ksz), jnp.float32)
    b1 = 0.1 * jax.random.normal(k2, (Cmid, 1), jnp.float32)
    W2stk = 0.2 * jax.random.normal(k3, (Ksz, Kc, Cmid), jnp.float32)
    b2 = 0.1 * jax.random.normal(k4, (Kc, 1), jnp.float32)
    WfcT = 0.2 * jax.random.normal(k5, (Fdim, O), jnp.float32)
    bfc = 0.1 * jax.random.normal(k6, (1, O), jnp.float32)
    params = (W1, b1, W2stk, b2, WfcT, bfc)

    x = jax.random.normal(k7, (B, C, L), jnp.float32)

    out = cccnn_forward(x, params)
    out = jax.block_until_ready(out)

    ref = reference_forward(x, params)
    if not jnp.allclose(out, ref, atol=2e-3, rtol=2e-3):
        raise AssertionError(f"mismatch: pallas={out}, ref={ref}")

    print("KERNEL_OK")
</pallas_src>

<mosaic_0001>
module attributes {stable_mosaic.version = 11 : i64} {
  func.func @cccnn_kernel(%arg0: i32, %arg1: memref<6x16xf32, #tpu.memory_space<vmem>>, %arg2: memref<48x6xf32, #tpu.memory_space<vmem>>, %arg3: memref<48x3xf32, #tpu.memory_space<vmem>>, %arg4: memref<48x1xf32, #tpu.memory_space<vmem>>, %arg5: memref<96x144xf32, #tpu.memory_space<vmem>>, %arg6: memref<96x1xf32, #tpu.memory_space<vmem>>, %arg7: memref<6x96xf32, #tpu.memory_space<vmem>>, %arg8: memref<3x31x2xf32, #tpu.memory_space<vmem>>, %arg9: memref<1x2xf32, #tpu.memory_space<vmem>>, %arg10: memref<2x2xf32, #tpu.memory_space<vmem>>, %arg11: memref<6x18xf32, #tpu.memory_space<vmem>>, %arg12: memref<144x16xf32, #tpu.memory_space<vmem>>, %arg13: memref<96x46xf32, #tpu.memory_space<vmem>>) attributes {dimension_semantics = [#tpu.dimension_semantics<arbitrary>], iteration_bounds = array<i64: 1>, scalar_prefetch = 0 : i64, scratch_operands = 3 : i64, tpu.core_type = #tpu.core_type<tc>, window_params = [{pipeline_mode = #tpu.pipeline_mode<synchronous>, transform_indices = @transform_0, window_bounds = array<i64: 6, 16>}, {pipeline_mode = #tpu.pipeline_mode<synchronous>, transform_indices = @transform_1, window_bounds = array<i64: 48, 6>}, {pipeline_mode = #tpu.pipeline_mode<synchronous>, transform_indices = @transform_2, window_bounds = array<i64: 48, 3>}, {pipeline_mode = #tpu.pipeline_mode<synchronous>, transform_indices = @transform_3, window_bounds = array<i64: 48, 1>}, {pipeline_mode = #tpu.pipeline_mode<synchronous>, transform_indices = @transform_4, window_bounds = array<i64: 96, 144>}, {pipeline_mode = #tpu.pipeline_mode<synchronous>, transform_indices = @transform_5, window_bounds = array<i64: 96, 1>}, {pipeline_mode = #tpu.pipeline_mode<synchronous>, transform_indices = @transform_6, window_bounds = array<i64: 6, 96>}, {pipeline_mode = #tpu.pipeline_mode<synchronous>, transform_indices = @transform_7, window_bounds = array<i64: 3, 31, 2>}, {pipeline_mode = #tpu.pipeline_mode<synchronous>, transform_indices = @transform_8, window_bounds = array<i64: 1, 2>}, {pipeline_mode = #tpu.pipeline_mode<synchronous>, transform_indices = @transform_9, window_bounds = array<i64: 2, 2>}]} {
    %cst = arith.constant 0.000000e+00 : f32
    %0 = vector.broadcast %cst : f32 to vector<6x18xf32>
    %c0 = arith.constant 0 : index
    %c0_0 = arith.constant 0 : index
    %1 = vector.load %arg11[%c0, %c0_0] : memref<6x18xf32, #tpu.memory_space<vmem>>, vector<6x18xf32>
    tpu.vector_store %arg11[%c0, %c0_0], %0 {strides = array<i32>} : memref<6x18xf32, #tpu.memory_space<vmem>>, vector<6x18xf32>,
    %c0_1 = arith.constant 0 : index
    %c0_2 = arith.constant 0 : index
    %2 = vector.load %arg1[%c0_1, %c0_2] : memref<6x16xf32, #tpu.memory_space<vmem>>, vector<6x16xf32>
    %c0_3 = arith.constant 0 : index
    %c1 = arith.constant 1 : index
    %3 = vector.load %arg11[%c0_3, %c1] : memref<6x18xf32, #tpu.memory_space<vmem>>, vector<6x16xf32>
    tpu.vector_store %arg11[%c0_3, %c1], %2 {strides = array<i32>} : memref<6x18xf32, #tpu.memory_space<vmem>>, vector<6x16xf32>,
    %c0_4 = arith.constant 0 : index
    %c0_5 = arith.constant 0 : index
    %4 = vector.load %arg2[%c0_4, %c0_5] : memref<48x6xf32, #tpu.memory_space<vmem>>, vector<48x6xf32>
    %c0_6 = arith.constant 0 : index
    %c0_7 = arith.constant 0 : index
    %5 = vector.load %arg11[%c0_6, %c0_7] : memref<6x18xf32, #tpu.memory_space<vmem>>, vector<6x18xf32>
    %cst_8 = arith.constant dense<0.000000e+00> : vector<48x18xf32>
    %6 = tpu.matmul %4, %5, %cst_8 {dimension_numbers = #tpu.dot_dimension_numbers<[1], [0], [0], [1], [0, 0, 1, 1], [], []>} : vector<48x6xf32>, vector<6x18xf32>, vector<48x18xf32> -> vector<48x18xf32>
    %c0_9 = arith.constant 0 : index
    %c0_10 = arith.constant 0 : index
    %7 = vector.load %arg4[%c0_9, %c0_10] : memref<48x1xf32, #tpu.memory_space<vmem>>, vector<48x1xf32>
    %c0_11 = arith.constant 0 : index
    %c0_12 = arith.constant 0 : index
    %8 = vector.load %arg3[%c0_11, %c0_12] : memref<48x3xf32, #tpu.memory_space<vmem>>, vector<48x1xf32>
    %9 = vector.extract_strided_slice %6 {offsets = [0, 0], sizes = [48, 16], strides = [1, 1]} : vector<48x18xf32> to vector<48x16xf32>
    %10 = vector.broadcast %8 : vector<48x1xf32> to vector<48x16xf32>
    %11 = arith.mulf %10, %9 : vector<48x16xf32>
    %12 = vector.broadcast %7 : vector<48x1xf32> to vector<48x16xf32>
    %13 = arith.addf %12, %11 : vector<48x16xf32>
    %c0_13 = arith.constant 0 : index
    %c1_14 = arith.constant 1 : index
    %14 = vector.load %arg3[%c0_13, %c1_14] : memref<48x3xf32, #tpu.memory_space<vmem>>, vector<48x1xf32>
    %15 = vector.extract_strided_slice %6 {offsets = [0, 1], sizes = [48, 16], strides = [1, 1]} : vector<48x18xf32> to vector<48x16xf32>
    %16 = vector.broadcast %14 : vector<48x1xf32> to vector<48x16xf32>
    %17 = arith.mulf %16, %15 : vector<48x16xf32>
    %18 = arith.addf %13, %17 : vector<48x16xf32>
    %c0_15 = arith.constant 0 : index
    %c2 = arith.constant 2 : index
    %19 = vector.load %arg3[%c0_15, %c2] : memref<48x3xf32, #tpu.memory_space<vmem>>, vector<48x1xf32>
    %20 = vector.extract_strided_slice %6 {offsets = [0, 2], sizes = [48, 16], strides = [1, 1]} : vector<48x18xf32> to vector<48x16xf32>
    %21 = vector.broadcast %19 : vector<48x1xf32> to vector<48x16xf32>
    %22 = arith.mulf %21, %20 : vector<48x16xf32>
    %23 = arith.addf %18, %22 : vector<48x16xf32>
    %cst_16 = arith.constant 0.000000e+00 : f32
    %24 = vector.broadcast %cst_16 : f32 to vector<48x16xf32>
    %25 = arith.subf %24, %23 : vector<48x16xf32>
    %26 = math.exp %25 : vector<48x16xf32>
    %cst_17 = arith.constant 1.000000e+00 : f32
    %27 = vector.broadcast %cst_17 : f32 to vector<48x16xf32>
    %28 = arith.addf %27, %26 : vector<48x16xf32>
    %cst_18 = arith.constant 1.000000e+00 : f32
    %29 = vector.broadcast %cst_18 : f32 to vector<48x16xf32>
    %30 = arith.divf %29, %28 : vector<48x16xf32>
    %31 = arith.mulf %23, %30 : vector<48x16xf32>
    %cst_19 = arith.constant 0.000000e+00 : f32
    %32 = vector.broadcast %cst_19 : f32 to vector<144x16xf32>
    %c0_20 = arith.constant 0 : index
    %c0_21 = arith.constant 0 : index
    %33 = vector.load %arg12[%c0_20, %c0_21] : memref<144x16xf32, #tpu.memory_space<vmem>>, vector<144x16xf32>
    tpu.vector_store %arg12[%c0_20, %c0_21], %32 {strides = array<i32>} : memref<144x16xf32, #tpu.memory_space<vmem>>, vector<144x16xf32>,
    %34 = vector.extract_strided_slice %31 {offsets = [0, 0], sizes = [48, 15], strides = [1, 1]} : vector<48x16xf32> to vector<48x15xf32>
    %c0_22 = arith.constant 0 : index
    %c1_23 = arith.constant 1 : index
    %35 = vector.load %arg12[%c0_22, %c1_23] : memref<144x16xf32, #tpu.memory_space<vmem>>, vector<48x15xf32>
    tpu.vector_store %arg12[%c0_22, %c1_23], %34 {strides = array<i32>} : memref<144x16xf32, #tpu.memory_space<vmem>>, vector<48x15xf32>,
    %c48 = arith.constant 48 : index
    %c0_24 = arith.constant 0 : index
    %36 = vector.load %arg12[%c48, %c0_24] : memref<144x16xf32, #tpu.memory_space<vmem>>, vector<48x16xf32>
    tpu.vector_store %arg12[%c48, %c0_24], %31 {strides = array<i32>} : memref<144x16xf32, #tpu.memory_space<vmem>>, vector<48x16xf32>,
    %37 = vector.extract_strided_slice %31 {offsets = [0, 1], sizes = [48, 15], strides = [1, 1]} : vector<48x16xf32> to vector<48x15xf32>
    %c96 = arith.constant 96 : index
    %c0_25 = arith.constant 0 : index
    %38 = vector.load %arg12[%c96, %c0_25] : memref<144x16xf32, #tpu.memory_space<vmem>>, vector<48x15xf32>
    tpu.vector_store %arg12[%c96, %c0_25], %37 {strides = array<i32>} : memref<144x16xf32, #tpu.memory_space<vmem>>, vector<48x15xf32>,
    %c0_26 = arith.constant 0 : index
    %c0_27 = arith.constant 0 : index
    %39 = vector.load %arg6[%c0_26, %c0_27] : memref<96x1xf32, #tpu.memory_space<vmem>>, vector<96x1xf32>
    %c0_28 = arith.constant 0 : index
    %c0_29 = arith.constant 0 : index
    %40 = vector.load %arg5[%c0_28, %c0_29] : memref<96x144xf32, #tpu.memory_space<vmem>>, vector<96x144xf32>
    %c0_30 = arith.constant 0 : index
    %c0_31 = arith.constant 0 : index
    %41 = vector.load %arg12[%c0_30, %c0_31] : memref<144x16xf32, #tpu.memory_space<vmem>>, vector<144x16xf32>
    %cst_32 = arith.constant dense<0.000000e+00> : vector<96x16xf32>
    %42 = tpu.matmul %40, %41, %cst_32 {dimension_numbers = #tpu.dot_dimension_numbers<[1], [0], [0], [1], [0, 0, 1, 1], [], []>} : vector<96x144xf32>, vector<144x16xf32>, vector<96x16xf32> -> vector<96x16xf32>
    %43 = vector.broadcast %39 : vector<96x1xf32> to vector<96x16xf32>
    %44 = arith.addf %43, %42 : vector<96x16xf32>
    %cst_33 = arith.constant 0.000000e+00 : f32
    %45 = vector.broadcast %cst_33 : f32 to vector<96x16xf32>
    %46 = arith.subf %45, %44 : vector<96x16xf32>
    %47 = math.exp %46 : vector<96x16xf32>
    %cst_34 = arith.constant 1.000000e+00 : f32
    %48 = vector.broadcast %cst_34 : f32 to vector<96x16xf32>
    %49 = arith.addf %48, %47 : vector<96x16xf32>
    %cst_35 = arith.constant 1.000000e+00 : f32
    %50 = vector.broadcast %cst_35 : f32 to vector<96x16xf32>
    %51 = arith.divf %50, %49 : vector<96x16xf32>
    %52 = arith.mulf %44, %51 : vector<96x16xf32>
    %cst_36 = arith.constant 0.000000e+00 : f32
    %53 = vector.broadcast %cst_36 : f32 to vector<96x46xf32>
    %c0_37 = arith.constant 0 : index
    %c0_38 = arith.constant 0 : index
    %54 = vector.load %arg13[%c0_37, %c0_38] : memref<96x46xf32, #tpu.memory_space<vmem>>, vector<96x46xf32>
    tpu.vector_store %arg13[%c0_37, %c0_38], %53 {strides = array<i32>} : memref<96x46xf32, #tpu.memory_space<vmem>>, vector<96x46xf32>,
    %c0_39 = arith.constant 0 : index
    %c15 = arith.constant 15 : index
    %55 = vector.load %arg13[%c0_39, %c15] : memref<96x46xf32, #tpu.memory_space<vmem>>, vector<96x16xf32>
    tpu.vector_store %arg13[%c0_39, %c15], %52 {strides = array<i32>} : memref<96x46xf32, #tpu.memory_space<vmem>>, vector<96x16xf32>,
    %c0_40 = arith.constant 0 : index
    %c0_41 = arith.constant 0 : index
    %56 = vector.load %arg13[%c0_40, %c0_41] : memref<96x46xf32, #tpu.memory_space<vmem>>, vector<96x46xf32>
    %cst_42 = arith.constant 0.000000e+00 : f32
    %57 = vector.broadcast %cst_42 : f32 to vector<96x31xf32>
    %58 = vector.extract_strided_slice %52 {offsets = [0, 0], sizes = [96, 1], strides = [1, 1]} : vector<96x16xf32> to vector<96x1xf32>
    %59 = vector.extract_strided_slice %56 {offsets = [0, 0], sizes = [96, 31], strides = [1, 1]} : vector<96x46xf32> to vector<96x31xf32>
    %60 = vector.broadcast %58 : vector<96x1xf32> to vector<96x31xf32>
    %61 = arith.mulf %60, %59 : vector<96x31xf32>
    %62 = arith.addf %57, %61 : vector<96x31xf32>
    %63 = vector.extract_strided_slice %52 {offsets = [0, 1], sizes = [96, 1], strides = [1, 1]} : vector<96x16xf32> to vector<96x1xf32>
    %64 = vector.extract_strided_slice %56 {offsets = [0, 1], sizes = [96, 31], strides = [1, 1]} : vector<96x46xf32> to vector<96x31xf32>
    %65 = vector.broadcast %63 : vector<96x1xf32> to vector<96x31xf32>
    %66 = arith.mulf %65, %64 : vector<96x31xf32>
    %67 = arith.addf %62, %66 : vector<96x31xf32>
    %68 = vector.extract_strided_slice %52 {offsets = [0, 2], sizes = [96, 1], strides = [1, 1]} : vector<96x16xf32> to vector<96x1xf32>
    %69 = vector.extract_strided_slice %56 {offsets = [0, 2], sizes = [96, 31], strides = [1, 1]} : vector<96x46xf32> to vector<96x31xf32>
    %70 = vector.broadcast %68 : vector<96x1xf32> to vector<96x31xf32>
    %71 = arith.mulf %70, %69 : vector<96x31xf32>
    %72 = arith.addf %67, %71 : vector<96x31xf32>
    %73 = vector.extract_strided_slice %52 {offsets = [0, 3], sizes = [96, 1], strides = [1, 1]} : vector<96x16xf32> to vector<96x1xf32>
    %74 = vector.extract_strided_slice %56 {offsets = [0, 3], sizes = [96, 31], strides = [1, 1]} : vector<96x46xf32> to vector<96x31xf32>
    %75 = vector.broadcast %73 : vector<96x1xf32> to vector<96x31xf32>
    %76 = arith.mulf %75, %74 : vector<96x31xf32>
    %77 = arith.addf %72, %76 : vector<96x31xf32>
    %78 = vector.extract_strided_slice %52 {offsets = [0, 4], sizes = [96, 1], strides = [1, 1]} : vector<96x16xf32> to vector<96x1xf32>
    %79 = vector.extract_strided_slice %56 {offsets = [0, 4], sizes = [96, 31], strides = [1, 1]} : vector<96x46xf32> to vector<96x31xf32>
    %80 = vector.broadcast %78 : vector<96x1xf32> to vector<96x31xf32>
    %81 = arith.mulf %80, %79 : vector<96x31xf32>
    %82 = arith.addf %77, %81 : vector<96x31xf32>
    %83 = vector.extract_strided_slice %52 {offsets = [0, 5], sizes = [96, 1], strides = [1, 1]} : vector<96x16xf32> to vector<96x1xf32>
    %84 = vector.extract_strided_slice %56 {offsets = [0, 5], sizes = [96, 31], strides = [1, 1]} : vector<96x46xf32> to vector<96x31xf32>
    %85 = vector.broadcast %83 : vector<96x1xf32> to vector<96x31xf32>
    %86 = arith.mulf %85, %84 : vector<96x31xf32>
    %87 = arith.addf %82, %86 : vector<96x31xf32>
    %88 = vector.extract_strided_slice %52 {offsets = [0, 6], sizes = [96, 1], strides = [1, 1]} : vector<96x16xf32> to vector<96x1xf32>
    %89 = vector.extract_strided_slice %56 {offsets = [0, 6], sizes = [96, 31], strides = [1, 1]} : vector<96x46xf32> to vector<96x31xf32>
    %90 = vector.broadcast %88 : vector<96x1xf32> to vector<96x31xf32>
    %91 = arith.mulf %90, %89 : vector<96x31xf32>
    %92 = arith.addf %87, %91 : vector<96x31xf32>
    %93 = vector.extract_strided_slice %52 {offsets = [0, 7], sizes = [96, 1], strides = [1, 1]} : vector<96x16xf32> to vector<96x1xf32>
    %94 = vector.extract_strided_slice %56 {offsets = [0, 7], sizes = [96, 31], strides = [1, 1]} : vector<96x46xf32> to vector<96x31xf32>
    %95 = vector.broadcast %93 : vector<96x1xf32> to vector<96x31xf32>
    %96 = arith.mulf %95, %94 : vector<96x31xf32>
    %97 = arith.addf %92, %96 : vector<96x31xf32>
    %98 = vector.extract_strided_slice %52 {offsets = [0, 8], sizes = [96, 1], strides = [1, 1]} : vector<96x16xf32> to vector<96x1xf32>
    %99 = vector.extract_strided_slice %56 {offsets = [0, 8], sizes = [96, 31], strides = [1, 1]} : vector<96x46xf32> to vector<96x31xf32>
    %100 = vector.broadcast %98 : vector<96x1xf32> to vector<96x31xf32>
    %101 = arith.mulf %100, %99 : vector<96x31xf32>
    %102 = arith.addf %97, %101 : vector<96x31xf32>
    %103 = vector.extract_strided_slice %52 {offsets = [0, 9], sizes = [96, 1], strides = [1, 1]} : vector<96x16xf32> to vector<96x1xf32>
    %104 = vector.extract_strided_slice %56 {offsets = [0, 9], sizes = [96, 31], strides = [1, 1]} : vector<96x46xf32> to vector<96x31xf32>
    %105 = vector.broadcast %103 : vector<96x1xf32> to vector<96x31xf32>
    %106 = arith.mulf %105, %104 : vector<96x31xf32>
    %107 = arith.addf %102, %106 : vector<96x31xf32>
    %108 = vector.extract_strided_slice %52 {offsets = [0, 10], sizes = [96, 1], strides = [1, 1]} : vector<96x16xf32> to vector<96x1xf32>
    %109 = vector.extract_strided_slice %56 {offsets = [0, 10], sizes = [96, 31], strides = [1, 1]} : vector<96x46xf32> to vector<96x31xf32>
    %110 = vector.broadcast %108 : vector<96x1xf32> to vector<96x31xf32>
    %111 = arith.mulf %110, %109 : vector<96x31xf32>
    %112 = arith.addf %107, %111 : vector<96x31xf32>
    %113 = vector.extract_strided_slice %52 {offsets = [0, 11], sizes = [96, 1], strides = [1, 1]} : vector<96x16xf32> to vector<96x1xf32>
    %114 = vector.extract_strided_slice %56 {offsets = [0, 11], sizes = [96, 31], strides = [1, 1]} : vector<96x46xf32> to vector<96x31xf32>
    %115 = vector.broadcast %113 : vector<96x1xf32> to vector<96x31xf32>
    %116 = arith.mulf %115, %114 : vector<96x31xf32>
    %117 = arith.addf %112, %116 : vector<96x31xf32>
    %118 = vector.extract_strided_slice %52 {offsets = [0, 12], sizes = [96, 1], strides = [1, 1]} : vector<96x16xf32> to vector<96x1xf32>
    %119 = vector.extract_strided_slice %56 {offsets = [0, 12], sizes = [96, 31], strides = [1, 1]} : vector<96x46xf32> to vector<96x31xf32>
    %120 = vector.broadcast %118 : vector<96x1xf32> to vector<96x31xf32>
    %121 = arith.mulf %120, %119 : vector<96x31xf32>
    %122 = arith.addf %117, %121 : vector<96x31xf32>
    %123 = vector.extract_strided_slice %52 {offsets = [0, 13], sizes = [96, 1], strides = [1, 1]} : vector<96x16xf32> to vector<96x1xf32>
    %124 = vector.extract_strided_slice %56 {offsets = [0, 13], sizes = [96, 31], strides = [1, 1]} : vector<96x46xf32> to vector<96x31xf32>
    %125 = vector.broadcast %123 : vector<96x1xf32> to vector<96x31xf32>
    %126 = arith.mulf %125, %124 : vector<96x31xf32>
    %127 = arith.addf %122, %126 : vector<96x31xf32>
    %128 = vector.extract_strided_slice %52 {offsets = [0, 14], sizes = [96, 1], strides = [1, 1]} : vector<96x16xf32> to vector<96x1xf32>
    %129 = vector.extract_strided_slice %56 {offsets = [0, 14], sizes = [96, 31], strides = [1, 1]} : vector<96x46xf32> to vector<96x31xf32>
    %130 = vector.broadcast %128 : vector<96x1xf32> to vector<96x31xf32>
    %131 = arith.mulf %130, %129 : vector<96x31xf32>
    %132 = arith.addf %127, %131 : vector<96x31xf32>
    %133 = vector.extract_strided_slice %52 {offsets = [0, 15], sizes = [96, 1], strides = [1, 1]} : vector<96x16xf32> to vector<96x1xf32>
    %134 = vector.extract_strided_slice %56 {offsets = [0, 15], sizes = [96, 31], strides = [1, 1]} : vector<96x46xf32> to vector<96x31xf32>
    %135 = vector.broadcast %133 : vector<96x1xf32> to vector<96x31xf32>
    %136 = arith.mulf %135, %134 : vector<96x31xf32>
    %137 = arith.addf %132, %136 : vector<96x31xf32>
    %c0_43 = arith.constant 0 : index
    %c0_44 = arith.constant 0 : index
    %138 = vector.load %arg7[%c0_43, %c0_44] : memref<6x96xf32, #tpu.memory_space<vmem>>, vector<6x96xf32>
    %cst_45 = arith.constant dense<0.000000e+00> : vector<6x31xf32>
    %139 = tpu.matmul %138, %137, %cst_45 {dimension_numbers = #tpu.dot_dimension_numbers<[1], [0], [0], [1], [0, 0, 1, 1], [], []>} : vector<6x96xf32>, vector<96x31xf32>, vector<6x31xf32> -> vector<6x31xf32>
    %cst_46 = arith.constant dense<0xFF800000> : vector<6xf32>
    %140 = vector.multi_reduction <maximumf>, %139, %cst_46 [1] : vector<6x31xf32> to vector<6xf32>
    %141 = vector.shape_cast %140 : vector<6xf32> to vector<6x1xf32>
    %142 = vector.broadcast %141 : vector<6x1xf32> to vector<6x31xf32>
    %143 = arith.subf %139, %142 : vector<6x31xf32>
    %144 = math.exp %143 : vector<6x31xf32>
    %cst_47 = arith.constant dense<0.000000e+00> : vector<6xf32>
    %145 = vector.multi_reduction <add>, %144, %cst_47 [1] : vector<6x31xf32> to vector<6xf32>
    %146 = vector.shape_cast %145 : vector<6xf32> to vector<6x1xf32>
    %147 = tpu.reciprocal %146 {approx = true} : vector<6x1xf32> -> vector<6x1xf32>
    %148 = vector.broadcast %147 : vector<6x1xf32> to vector<6x31xf32>
    %149 = arith.mulf %144, %148 : vector<6x31xf32>
    %c0_48 = arith.constant 0 : index
    %c0_49 = arith.constant 0 : index
    %150 = vector.load %arg9[%c0_48, %c0_49] : memref<1x2xf32, #tpu.memory_space<vmem>>, vector<1x2xf32>
    %151 = vector.extract_strided_slice %149 {offsets = [0, 0], sizes = [2, 31], strides = [1, 1]} : vector<6x31xf32> to vector<2x31xf32>
    %c0_50 = arith.constant 0 : index
    %c0_51 = arith.constant 0 : index
    %c0_52 = arith.constant 0 : index
    %152 = vector.load %arg8[%c0_50, %c0_51, %c0_52] : memref<3x31x2xf32, #tpu.memory_space<vmem>>, vector<1x31x2xf32>
    %153 = vector.shape_cast %152 : vector<1x31x2xf32> to vector<31x2xf32>
    %cst_53 = arith.constant dense<0.000000e+00> : vector<2x2xf32>
    %154 = tpu.matmul %151, %153, %cst_53 {dimension_numbers = #tpu.dot_dimension_numbers<[1], [0], [0], [1], [0, 0, 1, 1], [], []>} : vector<2x31xf32>, vector<31x2xf32>, vector<2x2xf32> -> vector<2x2xf32>
    %155 = vector.broadcast %150 : vector<1x2xf32> to vector<2x2xf32>
    %156 = arith.addf %155, %154 : vector<2x2xf32>
    %157 = vector.extract_strided_slice %149 {offsets = [2, 0], sizes = [2, 31], strides = [1, 1]} : vector<6x31xf32> to vector<2x31xf32>
    %c1_54 = arith.constant 1 : index
    %c0_55 = arith.constant 0 : index
    %c0_56 = arith.constant 0 : index
    %158 = vector.load %arg8[%c1_54, %c0_55, %c0_56] : memref<3x31x2xf32, #tpu.memory_space<vmem>>, vector<1x31x2xf32>
    %159 = vector.shape_cast %158 : vector<1x31x2xf32> to vector<31x2xf32>
    %cst_57 = arith.constant dense<0.000000e+00> : vector<2x2xf32>
    %160 = tpu.matmul %157, %159, %cst_57 {dimension_numbers = #tpu.dot_dimension_numbers<[1], [0], [0], [1], [0, 0, 1, 1], [], []>} : vector<2x31xf32>, vector<31x2xf32>, vector<2x2xf32> -> vector<2x2xf32>
    %161 = arith.addf %156, %160 : vector<2x2xf32>
    %162 = vector.extract_strided_slice %149 {offsets = [4, 0], sizes = [2, 31], strides = [1, 1]} : vector<6x31xf32> to vector<2x31xf32>
    %c2_58 = arith.constant 2 : index
    %c0_59 = arith.constant 0 : index
    %c0_60 = arith.constant 0 : index
    %163 = vector.load %arg8[%c2_58, %c0_59, %c0_60] : memref<3x31x2xf32, #tpu.memory_space<vmem>>, vector<1x31x2xf32>
    %164 = vector.shape_cast %163 : vector<1x31x2xf32> to vector<31x2xf32>
    %cst_61 = arith.constant dense<0.000000e+00> : vector<2x2xf32>
    %165 = tpu.matmul %162, %164, %cst_61 {dimension_numbers = #tpu.dot_dimension_numbers<[1], [0], [0], [1], [0, 0, 1, 1], [], []>} : vector<2x31xf32>, vector<31x2xf32>, vector<2x2xf32> -> vector<2x2xf32>
    %166 = arith.addf %161, %165 : vector<2x2xf32>
    %c0_62 = arith.constant 0 : index
    %c0_63 = arith.constant 0 : index
    %167 = vector.load %arg10[%c0_62, %c0_63] : memref<2x2xf32, #tpu.memory_space<vmem>>, vector<2x2xf32>
    tpu.vector_store %arg10[%c0_62, %c0_63], %166 {strides = array<i32>} : memref<2x2xf32, #tpu.memory_space<vmem>>, vector<2x2xf32>,
    return
  }
  func.func @transform_0(%arg0: i32) -> (i32, i32) {
    %c0_i32 = arith.constant 0 : i32
    %c0_i32_0 = arith.constant 0 : i32
    %c0_i32_1 = arith.constant 0 : i32
    return %c0_i32, %c0_i32_0 : i32, i32
  }
  func.func @transform_1(%arg0: i32) -> (i32, i32) {
    %c0_i32 = arith.constant 0 : i32
    %c0_i32_0 = arith.constant 0 : i32
    %c0_i32_1 = arith.constant 0 : i32
    return %c0_i32, %c0_i32_0 : i32, i32
  }
  func.func @transform_2(%arg0: i32) -> (i32, i32) {
    %c0_i32 = arith.constant 0 : i32
    %c0_i32_0 = arith.constant 0 : i32
    %c0_i32_1 = arith.constant 0 : i32
    return %c0_i32, %c0_i32_0 : i32, i32
  }
  func.func @transform_3(%arg0: i32) -> (i32, i32) {
    %c0_i32 = arith.constant 0 : i32
    %c0_i32_0 = arith.constant 0 : i32
    %c0_i32_1 = arith.constant 0 : i32
    return %c0_i32, %c0_i32_0 : i32, i32
  }
  func.func @transform_4(%arg0: i32) -> (i32, i32) {
    %c0_i32 = arith.constant 0 : i32
    %c0_i32_0 = arith.constant 0 : i32
    %c0_i32_1 = arith.constant 0 : i32
    return %c0_i32, %c0_i32_0 : i32, i32
  }
  func.func @transform_5(%arg0: i32) -> (i32, i32) {
    %c0_i32 = arith.constant 0 : i32
    %c0_i32_0 = arith.constant 0 : i32
    %c0_i32_1 = arith.constant 0 : i32
    return %c0_i32, %c0_i32_0 : i32, i32
  }
  func.func @transform_6(%arg0: i32) -> (i32, i32) {
    %c0_i32 = arith.constant 0 : i32
    %c0_i32_0 = arith.constant 0 : i32
    %c0_i32_1 = arith.constant 0 : i32
    return %c0_i32, %c0_i32_0 : i32, i32
  }
  func.func @transform_7(%arg0: i32) -> (i32, i32, i32) {
    %c0_i32 = arith.constant 0 : i32
    %c0_i32_0 = arith.constant 0 : i32
    %c0_i32_1 = arith.constant 0 : i32
    %c0_i32_2 = arith.constant 0 : i32
    return %c0_i32, %c0_i32_0, %c0_i32_1 : i32, i32, i32
  }
  func.func @transform_8(%arg0: i32) -> (i32, i32) {
    %c0_i32 = arith.constant 0 : i32
    %c0_i32_0 = arith.constant 0 : i32
    %c0_i32_1 = arith.constant 0 : i32
    return %c0_i32, %c0_i32_0 : i32, i32
  }
  func.func @transform_9(%arg0: i32) -> (i32, i32) {
    %c0_i32 = arith.constant 0 : i32
    %c0_i32_0 = arith.constant 0 : i32
    %c0_i32_1 = arith.constant 0 : i32
    return %c0_i32, %c0_i32_0 : i32, i32
  }
}

</mosaic_0001>

<bundles_post_ra>
// kernel: tpu_custom_call.1
= control target key start
LH: loop header
LB: loop body
LE: loop exit
PB: predicated region body
PF: predicated region fallthrough
CT: control target
= control target key end

     0   :  { %vm33_vm0 = vcmask 144384   ;;  %s3735_s11 = smov 1   ;;  %v5952_v1 = vmov 0.0   ;;  %vm49_vm1 = vcmask 48128   ;;  %s5942_s0 = inlined_call_operand.vmem [shape: f32[6,16], index: 0, kind: input, shape index: {}]   ;;  %s5943_s1 = inlined_call_operand.vmem [shape: f32[48,6], index: 1, kind: input, shape index: {}]   ;;  %s5944_s2 = inlined_call_operand.vmem [shape: f32[48,3], index: 2, kind: input, shape index: {}]   ;;  %s5945_s3 = inlined_call_operand.vmem [shape: f32[48,1], index: 3, kind: input, shape index: {}]   ;;  %s5946_s4 = inlined_call_operand.vmem [shape: f32[96,144], index: 4, kind: input, shape index: {}]   ;;  %s5947_s5 = inlined_call_operand.vmem [shape: f32[96,1], index: 5, kind: input, shape index: {}]   ;;  %s5948_s6 = inlined_call_operand.vmem [shape: f32[6,96], index: 6, kind: input, shape index: {}]   ;;  %s5949_s7 = inlined_call_operand.vmem [shape: f32[3,31,2], index: 7, kind: input, shape index: {}]   ;;  %s5950_s8 = inlined_call_operand.vmem [shape: f32[1,2], index: 8, kind: input, shape index: {}]   ;;  %s5951_s9 = inlined_call_operand.hbm [shape: f32[2,2], index: 9, kind: output, shape index: {}]  }
   0x1   :  { %v35_v0 = vld [vmem:[%s5942_s0] sm:$0x3f]  ;;  %34 = vst.msk [vmem:[#allocation2] sm:$0x3f] %vm33_vm0, %v5952_v1 }
   0x2   :  { %37 = vrot.lane.b32.xlu0 %v35_v0, %s3735_s11  ;;  %v42_v2 = vld [vmem:[%s5943_s1] sm:$0xff] }
   0x3   :  { %3252 = vmatprep.mubr.msk.f32.mxu0 %vm49_vm1, %v42_v2 }
   0x4   :  { %14 = vsyncpa [#allocation6], 0  ;;  %v174_v3 = vld [vmem:[%s5944_s2 + $0x8] sm:$0xff]  ;;  %v5982_v4 = vmov 0   ;;  %v175_v5 = vld [vmem:[%s5944_s2 + $0x10] sm:$0xff]  ;;  %v5960_v6 = vmov 2  }
   0x5   :  { %3430 = vset.pattern.permute.xlu1 %v5982_v4  ;;  %3434 = vset.pattern.permute.xlu0 %v5960_v6  ;;  %v5970_v7 = vmov 1   ;;  %v176_v8 = vld [vmem:[%s5944_s2 + $0x18] sm:$0xff]  ;;  %v178_v9 = vld [vmem:[%s5944_s2 + $0x28] sm:$0xff]  ;;  %v173_v11 = vld [vmem:[%s5944_s2] sm:$0xff]  ;;  %vm40_vm2 = vcmask 136200   ;;  %vm68_vm3 = vcmask 1045504  }
   0x6   :  { %186 = vperm.xlu1 %3430, %v174_v3   ;;  %320 = vperm.xlu0 %3434, %v175_v5   ;;  %v168_v10 = vld [vmem:[%s5945_s3 + $0x8] sm:$0xff]  ;;  %v177_v12 = vld [vmem:[%s5944_s2 + $0x20] sm:$0xff]  ;;  %v169_v14 = vld [vmem:[%s5945_s3 + $0x10] sm:$0xff]  ;;  %vm413_vm4 = vcmask 130048   ;;  %s3741_s25 = smov 126   ;;  %vm456_vm5 = vcmask 130056  }
   0x7   :  { %v167_v13 = vld [vmem:[%s5945_s3] sm:$0xff]  ;;  %v170_v15 = vld [vmem:[%s5945_s3 + $0x18] sm:$0xff]  ;;  %v496_v17 = vld [vmem:[%s5947_s5 + $0x10] sm:$0xff]  ;;  %421 = vst.msk [vmem:[#allocation3 + $0x38] sm:$0xff] %vm413_vm4, %v5952_v1  ;;  %vm487_vm6 = vcmask 121856   ;;  %vm865_vm7 = vcmask 375808  }
   0x8   :  { %v494_v16 = vld [vmem:[%s5947_s5] sm:$0xff]  ;;  %v500_v19 = vld [vmem:[%s5947_s5 + $0x30] sm:$0xff]  ;;  %v172_v23 = vld [vmem:[%s5945_s3 + $0x28] sm:$0xff]  ;;  %414 = vst.msk [vmem:[#allocation3] sm:$0xff] %vm413_vm4, %v5952_v1  ;;  %vm926_vm8 = vcmask 253048   ;;  %s3757_s26 = smov 124  }
   0x9   :  { %v498_v18 = vld [vmem:[%s5947_s5 + $0x20] sm:$0xff]  ;;  %v504_v21 = vld [vmem:[%s5947_s5 + $0x50] sm:$0xff]  ;;  %v495_v24 = vld [vmem:[%s5947_s5 + $0x8] sm:$0xff]  ;;  %415 = vst.msk [vmem:[#allocation3 + $0x8] sm:$0xff] %vm413_vm4, %v5952_v1  ;;  %s3758_s27 = smov 123   ;;  %s3760_s28 = smov 121  }
   0xa   :  { %191 = vperm.xlu1 %3430, %v175_v5   ;;  %3435 = vset.pattern.permute.xlu0 %v5970_v7  ;;  %v502_v20 = vld [vmem:[%s5947_s5 + $0x40] sm:$0xff]  ;;  %v497_v25 = vld [vmem:[%s5947_s5 + $0x18] sm:$0xff]  ;;  %v499_v26 = vld [vmem:[%s5947_s5 + $0x28] sm:$0xff]  ;;  %416 = vst.msk [vmem:[#allocation3 + $0x10] sm:$0xff] %vm413_vm4, %v5952_v1  ;;  %s3761_s29 = smov 120   ;;  %s3762_s30 = smov 119  }
   0xb   :  { %256 = vperm.xlu0 %3435, %v174_v3   ;;  %v171_v22 = vld [vmem:[%s5945_s3 + $0x20] sm:$0xff]  ;;  %v501_v27 = vld [vmem:[%s5947_s5 + $0x38] sm:$0xff]  ;;  %v503_v28 = vld [vmem:[%s5947_s5 + $0x48] sm:$0xff]  ;;  %417 = vst.msk [vmem:[#allocation3 + $0x18] sm:$0xff] %vm413_vm4, %v5952_v1  ;;  %s3763_s10 = smov 118   ;;  %s3764_s12 = smov 117  }
   0xc   :  { %v505_v29 = vld [vmem:[%s5947_s5 + $0x58] sm:$0xff]  ;;  %v43_v32 = vld [vmem:[%s5943_s1 + $0x8] sm:$0xff]  ;;  %v44_v33 = vld [vmem:[%s5943_s1 + $0x10] sm:$0xff]  ;;  %418 = vst.msk [vmem:[#allocation3 + $0x20] sm:$0xff] %vm413_vm4, %v5952_v1  ;;  %s3765_s2 = smov 116   ;;  %s3766_s13 = smov 115  }
   0xd   :  { %v45_v34 = vld [vmem:[%s5943_s1 + $0x18] sm:$0xff]  ;;  %v46_v35 = vld [vmem:[%s5943_s1 + $0x20] sm:$0xff]  ;;  %v47_v36 = vld [vmem:[%s5943_s1 + $0x28] sm:$0xff]  ;;  %419 = vst.msk [vmem:[#allocation3 + $0x28] sm:$0xff] %vm413_vm4, %v5952_v1  ;;  %s3740_s1 = smov 127   ;;  %s3767_s3 = smov 114  }
   0xe   :  { %196 = vperm.xlu1 %3430, %v176_v8   ;;  %420 = vst.msk [vmem:[#allocation3 + $0x30] sm:$0xff] %vm413_vm4, %v5952_v1  ;;  %422 = vst.msk [vmem:[#allocation3 + $0x40] sm:$0xff] %vm413_vm4, %v5952_v1  ;;  %s3768_s14 = smov 113   ;;  %s3769_s15 = smov 125   ;;  %vm3770_vm9 = vmmov 0   ;;  %vm2824_vm10 = vcmask 785408  }
   0xf   :  { %260 = vperm.xlu0 %3435, %v175_v5   ;;  %423 = vst.msk [vmem:[#allocation3 + $0x48] sm:$0xff] %vm413_vm4, %v5952_v1  ;;  %424 = vst.msk [vmem:[#allocation3 + $0x50] sm:$0xff] %vm413_vm4, %v5952_v1  ;;  %vm2898_vm11 = vcmask 250880   ;;  %vm2919_vm12 = vcmask 1046528   ;;  %vm3771_vm13 = vmmov 1   ;;  %vm2915_vm15 = vcmask 252928  }
  0x10   :  { %425 = vst.msk [vmem:[#allocation3 + $0x58] sm:$0xff] %vm413_vm4, %v5952_v1  ;;  %426 = vst.msk [vmem:[#allocation3 + $0x60] sm:$0xff] %vm413_vm4, %v5952_v1  ;;  %vm3164_vm0 = vcmask 9216  }
  0x11   :  { %427 = vst.msk [vmem:[#allocation3 + $0x68] sm:$0xff] %vm413_vm4, %v5952_v1  ;;  %428 = vst.msk [vmem:[#allocation3 + $0x70] sm:$0xff] %vm413_vm4, %v5952_v1 }
  0x12   :  { %206 = vperm.xlu1 %3430, %v178_v9   ;;  %429 = vst.msk [vmem:[#allocation3 + $0x78] sm:$0xff] %vm413_vm4, %v5952_v1  ;;  %430 = vst.msk [vmem:[#allocation3 + $0x80] sm:$0xff] %vm413_vm4, %v5952_v1 }
  0x13   :  { %272 = vperm.xlu0 %3435, %v178_v9   ;;  %431 = vst.msk [vmem:[#allocation3 + $0x88] sm:$0xff] %vm413_vm4, %v5952_v1  ;;  %vm5882_vm14 = vmpackc.low %vm2919_vm12, %vm3771_vm13 }
  0x14   :  { %866 = vst.msk [vmem:[#allocation4] sm:$0xff] %vm865_vm7, %v5952_v1  ;;  %867 = vst.msk [vmem:[#allocation4 + $0x8] sm:$0xff] %vm865_vm7, %v5952_v1 }
  0x15   :  { %868 = vst.msk [vmem:[#allocation4 + $0x10] sm:$0xff] %vm865_vm7, %v5952_v1  ;;  %869 = vst.msk [vmem:[#allocation4 + $0x18] sm:$0xff] %vm865_vm7, %v5952_v1 }
  0x16   :  { %222 = vperm.xlu1 %3430, %v168_v10   ;;  %870 = vst.msk [vmem:[#allocation4 + $0x20] sm:$0xff] %vm865_vm7, %v5952_v1  ;;  %871 = vst.msk [vmem:[#allocation4 + $0x28] sm:$0xff] %vm865_vm7, %v5952_v1 }
  0x17   :  { %3438 = vset.pattern.permute.xlu0 %v5982_v4  ;;  %872 = vst.msk [vmem:[#allocation4 + $0x30] sm:$0xff] %vm865_vm7, %v5952_v1  ;;  %873 = vst.msk [vmem:[#allocation4 + $0x38] sm:$0xff] %vm865_vm7, %v5952_v1 }
  0x18   :  { %181 = vperm.xlu0 %3438, %v173_v11   ;;  %874 = vst.msk [vmem:[#allocation4 + $0x40] sm:$0xff] %vm865_vm7, %v5952_v1  ;;  %875 = vst.msk [vmem:[#allocation4 + $0x48] sm:$0xff] %vm865_vm7, %v5952_v1 }
  0x19   :  { %876 = vst.msk [vmem:[#allocation4 + $0x50] sm:$0xff] %vm865_vm7, %v5952_v1  ;;  %877 = vst.msk [vmem:[#allocation4 + $0x58] sm:$0xff] %vm865_vm7, %v5952_v1 }
  0x1a   :  { %3431 = vset.pattern.permute.xlu1 %v5970_v7 }
  0x1b   :  { %252 = vperm.xlu1 %3431, %v173_v11  }
  0x1c   :  { %201 = vperm.xlu0 %3438, %v177_v12  }
  0x1f   :  { %3432 = vset.pattern.permute.xlu1 %v5960_v6 }
  0x20   :  { %312 = vperm.xlu1 %3432, %v173_v11   ;;  %217 = vperm.xlu0 %3438, %v167_v13  }
  0x24   :  { %316 = vperm.xlu1 %3432, %v174_v3   ;;  %227 = vperm.xlu0 %3438, %v169_v14  }
  0x28   :  { %3433 = vset.pattern.permute.xlu1 %v5970_v7  ;;  %232 = vperm.xlu0 %3438, %v170_v15  }
  0x29   :  { %264 = vperm.xlu1 %3433, %v176_v8  }
  0x2c   :  { %711 = vperm.xlu0 %3438, %v494_v16  }
  0x2d   :  { %3436 = vset.pattern.permute.xlu1 %v5960_v6 }
  0x2e   :  { %324 = vperm.xlu1 %3436, %v176_v8  }
  0x30   :  { %721 = vperm.xlu0 %3438, %v496_v17  }
  0x32   :  { %3437 = vset.pattern.permute.xlu1 %v5970_v7 }
  0x33   :  { %268 = vperm.xlu1 %3437, %v177_v12  }
  0x34   :  { %731 = vperm.xlu0 %3438, %v498_v18  }
  0x37   :  { %3439 = vset.pattern.permute.xlu1 %v5960_v6 }
  0x38   :  { %328 = vperm.xlu1 %3439, %v177_v12   ;;  %741 = vperm.xlu0 %3438, %v500_v19  }
  0x3c   :  { %332 = vperm.xlu1 %3439, %v178_v9   ;;  %751 = vperm.xlu0 %3438, %v502_v20  }
  0x40   :  { %3440 = vset.pattern.permute.xlu1 %v5982_v4  ;;  %761 = vperm.xlu0 %3438, %v504_v21  }
  0x41   :  { %237 = vperm.xlu1 %3440, %v171_v22  }
  0x45   :  { %242 = vperm.xlu1 %3440, %v172_v23  }
  0x49   :  { %716 = vperm.xlu1 %3440, %v495_v24  }
  0x4d   :  { %726 = vperm.xlu1 %3440, %v497_v25  }
  0x51   :  { %736 = vperm.xlu1 %3440, %v499_v26  }
  0x55   :  { %746 = vperm.xlu1 %3440, %v501_v27  }
  0x59   :  { %756 = vperm.xlu1 %3440, %v503_v28  }
  0x5d   :  { %766 = vperm.xlu1 %3440, %v505_v29  }
  0x61   :  { %3442 = vset.pattern.permute.xlu1 %v5960_v6 }
  0x74   :  { %v38_v30 = vpop.permute.xlu0 %37 }
  0x75   :  { %41 = vst.msk [vmem:[#allocation2] sm:$0x3f] %vm40_vm2, %v38_v30 }
  0x7c   :  { %v48_v31 = vld [vmem:[#allocation2] sm:$0x3f] }
  0x7d   :  { %3250 = vmatprep.subr.msk.mxu0 %vm68_vm3, %v48_v31 }
  0x7e   :  { %3251 = vmatpush3.msk.msra.mxu0 %vm68_vm3, %v48_v31 }
  0x7f   :  { %3253 = vmatmul.mubr.msk.f32.vlgmr.msra.gmra.mrb[0].mxu0 %vm49_vm1, %v43_v32 }
  0x80   :  { %3255 = vmatprep.mubr.msk.f32.mxu0 %vm49_vm1, %v44_v33 }
  0x83   :  { %3256 = vmatmul.mubr.msk.f32.gmra.mrb[2].mxu0 %vm49_vm1, %v45_v34 }
  0x84   :  { %3258 = vmatprep.mubr.msk.f32.mxu0 %vm49_vm1, %v46_v35 }
  0x85   :  { %v3936_v37 = vpop.permute.xlu1 %186  ;;  %v321_v45 = vpop.permute.xlu0 %320 }
  0x87   :  { %3259 = vmatmul.mubr.msk.f32.gmra.mrb[4].mxu0 %vm49_vm1, %v47_v36 }
  0x89   :  { %v3938_v38 = vpop.permute.xlu1 %191 }
  0x8a   :  { %v257_v47 = vpop.permute.xlu0 %256 }
  0x8d   :  { %v3940_v39 = vpop.permute.xlu1 %196 }
  0x8e   :  { %v261_v59 = vpop.permute.xlu0 %260 }
  0x91   :  { %v3942_v40 = vpop.permute.xlu1 %206 }
  0x92   :  { %v273_v3 = vpop.permute.xlu0 %272 }
  0x95   :  { %v3944_v41 = vpop.permute.xlu1 %222 }
  0x97   :  { %v182_v12 = vpop.permute.xlu0 %181 }
  0x9a   :  { %v253_v42 = vpop.permute.xlu1 %252 }
  0x9b   :  { %v202_v13 = vpop.permute.xlu0 %201 }
  0x9f   :  { %v313_v43 = vpop.permute.xlu1 %312  ;;  %v218_v14 = vpop.permute.xlu0 %217 }
  0xa3   :  { %v317_v44 = vpop.permute.xlu1 %316  ;;  %v228_v16 = vpop.permute.xlu0 %227 }
  0xa7   :  { %v233_v18 = vpop.permute.xlu0 %232 }
  0xa8   :  { %v265_v46 = vpop.permute.xlu1 %264 }
  0xab   :  { %v4004_v20 = vpop.permute.xlu0 %711 }
  0xad   :  { %v325_v51 = vpop.permute.xlu1 %324 }
  0xaf   :  { %v4008_v22 = vpop.permute.xlu0 %721 }
  0xb2   :  { %v269_v57 = vpop.permute.xlu1 %268 }
  0xb3   :  { %v4012_v24 = vpop.permute.xlu0 %731 }
  0xb7   :  { %v329_v0 = vpop.permute.xlu1 %328  ;;  %v4016_v26 = vpop.permute.xlu0 %741 }
  0xbb   :  { %v333_v9 = vpop.permute.xlu1 %332  ;;  %v4020_v28 = vpop.permute.xlu0 %751 }
  0xbf   :  { %v4025_v31 = vpop.permute.xlu0 %761 }
  0xc0   :  { %v238_v15 = vpop.permute.xlu1 %237 }
  0xc4   :  { %v243_v17 = vpop.permute.xlu1 %242 }
  0xc8   :  { %v4002_v19 = vpop.permute.xlu1 %716 }
  0xcc   :  { %v4006_v21 = vpop.permute.xlu1 %726 }
  0xd0   :  { %v4010_v23 = vpop.permute.xlu1 %736 }
  0xd4   :  { %v4014_v25 = vpop.permute.xlu1 %746 }
  0xd8   :  { %v4018_v27 = vpop.permute.xlu1 %756 }
  0xdc   :  { %v4022_v29 = vpop.permute.xlu1 %766 }
 0x152   :  { %v3254_v48 = vpop.f32.mrb[0].mxu0 }
 0x153   :  { %v276_v49 = vmul.f32 %v3254_v48, %v257_v47  ;;  %v138_v50 = vpop.f32.mrb[1].mxu0  ;;  %v336_v54 = vmul.f32 %v3254_v48, %v317_v44  ;;  %v210_v30 = vmul.f32 %v3254_v48, %v3936_v37 }
 0x154   :  { %v275_v52 = vmul.f32 %v253_v42, %v138_v50  ;;  %v335_v56 = vmul.f32 %v313_v43, %v138_v50  ;;  %v209_v32 = vmul.f32 %v182_v12, %v138_v50 }
 0x155   :  { %289 = vrot.lane.b32.xlu1 %v276_v49, %s3740_s1  ;;  %v246_v34 = vadd.f32 %v3944_v41, %v210_v30 }
 0x156   :  { %287 = vrot.lane.b32.xlu0 %v275_v52, %s3740_s1  ;;  %v3257_v53 = vpop.f32.mrb[2].mxu0  ;;  %v245_v36 = vadd.f32 %v218_v14, %v209_v32 }
 0x157   :  { %v148_v55 = vpop.f32.mrb[3].mxu0  ;;  %v278_v60 = vmul.f32 %v3257_v53, %v265_v46  ;;  %v338_v63 = vmul.f32 %v3257_v53, %v325_v51 }
 0x158   :  { %v277_v62 = vmul.f32 %v261_v59, %v148_v55  ;;  %v337_v2 = vmul.f32 %v321_v45, %v148_v55  ;;  %v212_v45 = vmul.f32 %v3257_v53, %v3940_v39  ;;  %v211_v49 = vmul.f32 %v3938_v38, %v148_v55 }
 0x159   :  { %349 = vrot.lane.b32.xlu1 %v336_v54, %s3741_s25 }
 0x15a   :  { %347 = vrot.lane.b32.xlu0 %v335_v56, %s3741_s25  ;;  %v3986_v58 = vpop.f32.mrb[4].mxu0  ;;  %v248_v54 = vadd.f32 %v233_v18, %v212_v45  ;;  %v247_v41 = vadd.f32 %v228_v16, %v211_v49  ;;  %v5954_v45 = vmov 0.0|0.0  }
 0x15b   :  { %v3988_v61 = vpop.f32.mrb[5].mxu0  ;;  %v280_v5 = vmul.f32 %v3986_v58, %v273_v3  ;;  %v340_v10 = vmul.f32 %v3986_v58, %v333_v9  ;;  %v214_v39 = vmul.f32 %v3986_v58, %v3942_v40  ;;  %3321 = vmatprep.subr.bf16.mxu1 %v5954_v45  ;;  %3348 = vmatprep.subr.bf16.mxu0 %v5954_v45 }
 0x15c   :  { %v279_v8 = vmul.f32 %v269_v57, %v3988_v61  ;;  %v339_v11 = vmul.f32 %v329_v0, %v3988_v61  ;;  %v213_v38 = vmul.f32 %v202_v13, %v3988_v61 }
 0x15d   :  { %293 = vrot.lane.b32.xlu1 %v278_v60, %s3740_s1 }
 0x15e   :  { %291 = vrot.lane.b32.xlu0 %v277_v62, %s3740_s1 }
 0x161   :  { %353 = vrot.lane.b32.xlu1 %v338_v63, %s3741_s25 }
 0x162   :  { %351 = vrot.lane.b32.xlu0 %v337_v2, %s3741_s25 }
 0x165   :  { %297 = vrot.lane.b32.xlu1 %v280_v5, %s3740_s1  ;;  %v250_v5 = vadd.f32 %v243_v17, %v214_v39  ;;  %v507_v39 = vld [vmem:[%s5946_s4 + $0x8] sm:$0xff] }
 0x166   :  { %295 = vrot.lane.b32.xlu0 %v279_v8, %s3740_s1  ;;  %3187 = vmatprep.mubr.msk.f32.mxu1 %vm413_vm4, %v507_v39  ;;  %v515_v39 = vld [vmem:[%s5946_s4 + $0x48] sm:$0xff] }
 0x169   :  { %357 = vrot.lane.b32.xlu1 %v340_v10, %s3741_s25 }
 0x16a   :  { %355 = vrot.lane.b32.xlu0 %v339_v11, %s3741_s25  ;;  %v249_v11 = vadd.f32 %v238_v15, %v213_v38 }
 0x1c7   :  { %v290_v33 = vpop.permute.xlu1 %289 }
 0x1c8   :  { %v288_v35 = vpop.permute.xlu0 %287  ;;  %v306_v42 = vadd.f32 %v290_v33, %v246_v34 }
 0x1c9   :  { %v305_v43 = vadd.f32 %v288_v35, %v245_v36 }
 0x1cb   :  { %v350_v44 = vpop.permute.xlu1 %349 }
 0x1cc   :  { %v366_v46 = vadd.f32 %v350_v44, %v306_v42  ;;  %v348_v47 = vpop.permute.xlu0 %347 }
 0x1cd   :  { %v365_v51 = vadd.f32 %v348_v47, %v305_v43 }
 0x1ce   :  { %v372_v52 = vsub.f32 0.0, %v366_v46 }
 0x1cf   :  { %v371_v37 = vsub.f32 0.0, %v365_v51  ;;  %v294_v48 = vpop.permute.xlu1 %293 }
 0x1d0   :  { %v379_v50 = vmul.f32 1.442695, %v372_v52  ;;  %v292_v56 = vpop.permute.xlu0 %291  ;;  %v308_v59 = vadd.f32 %v294_v48, %v248_v54 }
 0x1d1   :  { %v377_v57 = vmul.f32 1.442695, %v371_v37  ;;  %v307_v60 = vadd.f32 %v292_v56, %v247_v41 }
 0x1d2   :  { %3633 = vpow2.f32 %v379_v50 }
 0x1d3   :  { %3635 = vpow2.f32 %v377_v57  ;;  %v354_v62 = vpop.permute.xlu1 %353 }
 0x1d4   :  { %v368_v53 = vadd.f32 %v354_v62, %v308_v59  ;;  %v352_v63 = vpop.permute.xlu0 %351 }
 0x1d5   :  { %v367_v55 = vadd.f32 %v352_v63, %v307_v60 }
 0x1d6   :  { %v374_v0 = vsub.f32 0.0, %v368_v53 }
 0x1d7   :  { %v373_v2 = vsub.f32 0.0, %v367_v55  ;;  %v298_v3 = vpop.permute.xlu1 %297 }
 0x1d8   :  { %v383_v8 = vmul.f32 1.442695, %v374_v0  ;;  %v296_v9 = vpop.permute.xlu0 %295  ;;  %v310_v12 = vadd.f32 %v298_v3, %v250_v5 }
 0x1d9   :  { %v381_v10 = vmul.f32 1.442695, %v373_v2  ;;  %v309_v14 = vadd.f32 %v296_v9, %v249_v11 }
 0x1da   :  { %3637 = vpow2.f32 %v383_v8 }
 0x1db   :  { %3639 = vpow2.f32 %v381_v10  ;;  %v358_v16 = vpop.permute.xlu1 %357 }
 0x1dc   :  { %v3634_v18 = vpop.eup %3633  ;;  %v370_v40 = vadd.f32 %v358_v16, %v310_v12  ;;  %v356_v58 = vpop.permute.xlu0 %355 }
 0x1dd   :  { %v3636_v30 = vpop.eup %3635  ;;  %v390_v32 = vadd.f32 1.0, %v3634_v18  ;;  %v369_v61 = vadd.f32 %v356_v58, %v309_v14 }
 0x1de   :  { %v389_v13 = vadd.f32 1.0, %v3636_v30  ;;  %v376_v33 = vsub.f32 0.0, %v370_v40 }
 0x1df   :  { %3641 = vrcp.f32 %v390_v32  ;;  %v375_v34 = vsub.f32 0.0, %v369_v61 }
 0x1e0   :  { %3643 = vrcp.f32 %v389_v13  ;;  %v387_v17 = vmul.f32 1.442695, %v376_v33 }
 0x1e1   :  { %v385_v35 = vmul.f32 1.442695, %v375_v34 }
 0x1e2   :  { %3645 = vpow2.f32 %v387_v17 }
 0x1e3   :  { %3647 = vpow2.f32 %v385_v35 }
 0x1e4   :  { %v3638_v15 = vpop.eup %3637 }
 0x1e5   :  { %v3640_v36 = vpop.eup %3639  ;;  %v392_v42 = vadd.f32 1.0, %v3638_v15 }
 0x1e6   :  { %v391_v43 = vadd.f32 1.0, %v3640_v36 }
 0x1e7   :  { %3649 = vrcp.f32 %v392_v42 }
 0x1e8   :  { %3651 = vrcp.f32 %v391_v43 }
 0x1e9   :  { %v3642_v44 = vpop.eup %3641 }
 0x1ea   :  { %v3644_v47 = vpop.eup %3643  ;;  %v408_v49 = vmul.f32 %v3642_v44, %v366_v46 }
 0x1eb   :  { %v407_v52 = vmul.f32 %v3644_v47, %v365_v51 }
 0x1ec   :  { %v3646_v37 = vpop.eup %3645  ;;  %464 = vst.msk [vmem:[#allocation3 + $0x38] sm:$0xff] %vm413_vm4, %v408_v49  ;;  %440 = vrot.lane.b32.xlu1 %v408_v49, %s3735_s11 }
 0x1ed   :  { %v3648_v48 = vpop.eup %3647  ;;  %463 = vst.msk [vmem:[#allocation3 + $0x30] sm:$0xff] %vm413_vm4, %v407_v52  ;;  %v394_v54 = vadd.f32 1.0, %v3646_v37  ;;  %438 = vrot.lane.b32.xlu0 %v407_v52, %s3735_s11 }
 0x1ee   :  { %v393_v50 = vadd.f32 1.0, %v3648_v48 }
 0x1ef   :  { %3653 = vrcp.f32 %v394_v54 }
 0x1f0   :  { %3655 = vrcp.f32 %v393_v50  ;;  %471 = vrot.lane.b32.xlu1 %v408_v49, %s3740_s1 }
 0x1f1   :  { %v3650_v56 = vpop.eup %3649  ;;  %469 = vrot.lane.b32.xlu0 %v407_v52, %s3740_s1 }
 0x1f2   :  { %v3652_v46 = vpop.eup %3651  ;;  %v410_v51 = vmul.f32 %v3650_v56, %v368_v53 }
 0x1f3   :  { %v409_v57 = vmul.f32 %v3652_v46, %v367_v55  ;;  %v537_v33 = vld [vmem:[#allocation3 + $0x38] sm:$0xff] }
 0x1f4   :  { %466 = vst.msk [vmem:[#allocation3 + $0x48] sm:$0xff] %vm413_vm4, %v410_v51  ;;  %444 = vrot.lane.b32.xlu1 %v410_v51, %s3735_s11  ;;  %v536_v13 = vld [vmem:[#allocation3 + $0x30] sm:$0xff]  ;;  %v506_v46 = vld [vmem:[%s5946_s4] sm:$0xff] }
 0x1f5   :  { %465 = vst.msk [vmem:[#allocation3 + $0x40] sm:$0xff] %vm413_vm4, %v409_v57  ;;  %442 = vrot.lane.b32.xlu0 %v409_v57, %s3735_s11  ;;  %v3331_v34 = vpack.c.bf16 %v537_v33, %v536_v13 }
 0x1f8   :  { %475 = vrot.lane.b32.xlu1 %v410_v51, %s3740_s1  ;;  %v509_v51 = vld [vmem:[%s5946_s4 + $0x18] sm:$0xff] }
 0x1f9   :  { %v3654_v41 = vpop.eup %3653  ;;  %473 = vrot.lane.b32.xlu0 %v409_v57, %s3740_s1  ;;  %v508_v57 = vld [vmem:[%s5946_s4 + $0x10] sm:$0xff] }
 0x1fa   :  { %v3656_v59 = vpop.eup %3655  ;;  %v412_v60 = vmul.f32 %v3654_v41, %v370_v40  ;;  %v511_v41 = vld [vmem:[%s5946_s4 + $0x28] sm:$0xff] }
 0x1fb   :  { %v411_v62 = vmul.f32 %v3656_v59, %v369_v61  ;;  %v539_v35 = vld [vmem:[#allocation3 + $0x48] sm:$0xff]  ;;  %v510_v59 = vld [vmem:[%s5946_s4 + $0x20] sm:$0xff] }
 0x1fc   :  { %468 = vst.msk [vmem:[#allocation3 + $0x58] sm:$0xff] %vm413_vm4, %v412_v60  ;;  %448 = vrot.lane.b32.xlu1 %v412_v60, %s3735_s11  ;;  %v538_v17 = vld [vmem:[#allocation3 + $0x40] sm:$0xff] }
 0x1fd   :  { %467 = vst.msk [vmem:[#allocation3 + $0x50] sm:$0xff] %vm413_vm4, %v411_v62  ;;  %446 = vrot.lane.b32.xlu0 %v411_v62, %s3735_s11  ;;  %v3334_v15 = vpack.c.bf16 %v539_v35, %v538_v17  ;;  %s3759_s11 = smov 122  }
 0x200   :  { %479 = vrot.lane.b32.xlu1 %v412_v60, %s3740_s1  ;;  %v513_v60 = vld [vmem:[%s5946_s4 + $0x38] sm:$0xff] }
 0x201   :  { %477 = vrot.lane.b32.xlu0 %v411_v62, %s3740_s1  ;;  %v512_v62 = vld [vmem:[%s5946_s4 + $0x30] sm:$0xff] }
 0x203   :  { %v541_v42 = vld [vmem:[#allocation3 + $0x58] sm:$0xff] }
 0x204   :  { %v540_v36 = vld [vmem:[#allocation3 + $0x50] sm:$0xff] }
 0x205   :  { %v3337_v43 = vpack.c.bf16 %v541_v42, %v540_v36 }
 0x25e   :  { %v441_v53 = vpop.permute.xlu1 %440 }
 0x25f   :  { %458 = vst.msk [vmem:[#allocation3 + $0x8] sm:$0xff] %vm456_vm5, %v441_v53  ;;  %v439_v63 = vpop.permute.xlu0 %438  ;;  %v514_v53 = vld [vmem:[%s5946_s4 + $0x40] sm:$0xff] }
 0x260   :  { %457 = vst.msk [vmem:[#allocation3] sm:$0xff] %vm456_vm5, %v439_v63  ;;  %v517_v63 = vld [vmem:[%s5946_s4 + $0x58] sm:$0xff] }
 0x262   :  { %v472_v38 = vpop.permute.xlu1 %471 }
 0x263   :  { %489 = vst.msk [vmem:[#allocation3 + $0x68] sm:$0xff] %vm487_vm6, %v472_v38  ;;  %v470_v55 = vpop.permute.xlu0 %469  ;;  %v516_v38 = vld [vmem:[%s5946_s4 + $0x50] sm:$0xff] }
 0x264   :  { %488 = vst.msk [vmem:[#allocation3 + $0x60] sm:$0xff] %vm487_vm6, %v470_v55  ;;  %v519_v55 = vld [vmem:[%s5946_s4 + $0x68] sm:$0xff] }
 0x266   :  { %v445_v0 = vpop.permute.xlu1 %444  ;;  %v531_v2 = vld [vmem:[#allocation3 + $0x8] sm:$0xff] }
 0x267   :  { %460 = vst.msk [vmem:[#allocation3 + $0x18] sm:$0xff] %vm456_vm5, %v445_v0  ;;  %v443_v3 = vpop.permute.xlu0 %442  ;;  %v530_v5 = vld [vmem:[#allocation3] sm:$0xff]  ;;  %v518_v0 = vld [vmem:[%s5946_s4 + $0x60] sm:$0xff] }
 0x268   :  { %459 = vst.msk [vmem:[#allocation3 + $0x10] sm:$0xff] %vm456_vm5, %v443_v3  ;;  %v3322_v8 = vpack.c.bf16 %v531_v2, %v530_v5  ;;  %v521_v2 = vld [vmem:[%s5946_s4 + $0x78] sm:$0xff]  ;;  %v520_v3 = vld [vmem:[%s5946_s4 + $0x70] sm:$0xff]  ;;  %v523_v5 = vld [vmem:[%s5946_s4 + $0x88] sm:$0xff] }
 0x26a   :  { %v476_v9 = vpop.permute.xlu1 %475  ;;  %3323 = vmatpush1.bf16.msra.mxu1 %v3322_v8  ;;  %v543_v47 = vld [vmem:[#allocation3 + $0x68] sm:$0xff]  ;;  %v522_v8 = vld [vmem:[%s5946_s4 + $0x80] sm:$0xff] }
 0x26b   :  { %491 = vst.msk [vmem:[#allocation3 + $0x78] sm:$0xff] %vm487_vm6, %v476_v9  ;;  %v474_v10 = vpop.permute.xlu0 %473  ;;  %3324 = vmatprep.subr.bf16.mxu1 %v5954_v45  ;;  %v542_v44 = vld [vmem:[#allocation3 + $0x60] sm:$0xff]  ;;  %v525_v9 = vld [vmem:[%s5946_s4 + $0x98] sm:$0xff] }
 0x26c   :  { %490 = vst.msk [vmem:[#allocation3 + $0x70] sm:$0xff] %vm487_vm6, %v474_v10  ;;  %v3340_v49 = vpack.c.bf16 %v543_v47, %v542_v44  ;;  %v524_v10 = vld [vmem:[%s5946_s4 + $0x90] sm:$0xff] }
 0x26e   :  { %v449_v11 = vpop.permute.xlu1 %448  ;;  %v533_v12 = vld [vmem:[#allocation3 + $0x18] sm:$0xff] }
 0x26f   :  { %462 = vst.msk [vmem:[#allocation3 + $0x28] sm:$0xff] %vm456_vm5, %v449_v11  ;;  %v447_v14 = vpop.permute.xlu0 %446  ;;  %v532_v16 = vld [vmem:[#allocation3 + $0x10] sm:$0xff]  ;;  %v527_v11 = vld [vmem:[%s5946_s4 + $0xa8] sm:$0xff] }
 0x270   :  { %461 = vst.msk [vmem:[#allocation3 + $0x20] sm:$0xff] %vm456_vm5, %v447_v14  ;;  %v3325_v18 = vpack.c.bf16 %v533_v12, %v532_v16  ;;  %v526_v12 = vld [vmem:[%s5946_s4 + $0xa0] sm:$0xff]  ;;  %v529_v14 = vld [vmem:[%s5946_s4 + $0xb8] sm:$0xff]  ;;  %v528_v16 = vld [vmem:[%s5946_s4 + $0xb0] sm:$0xff]  ;;  %s3743_s4 = smov 15  }
 0x272   :  { %v480_v40 = vpop.permute.xlu1 %479  ;;  %3326 = vmatpush1.bf16.msra.mxu1 %v3325_v18  ;;  %v545_v37 = vld [vmem:[#allocation3 + $0x78] sm:$0xff] }
 0x273   :  { %493 = vst.msk [vmem:[#allocation3 + $0x88] sm:$0xff] %vm487_vm6, %v480_v40  ;;  %v478_v58 = vpop.permute.xlu0 %477  ;;  %3327 = vmatprep.subr.bf16.mxu1 %v5954_v45  ;;  %v544_v52 = vld [vmem:[#allocation3 + $0x70] sm:$0xff] }
 0x274   :  { %492 = vst.msk [vmem:[#allocation3 + $0x80] sm:$0xff] %vm487_vm6, %v478_v58  ;;  %v3343_v48 = vpack.c.bf16 %v545_v37, %v544_v52 }
 0x276   :  { %v535_v30 = vld [vmem:[#allocation3 + $0x28] sm:$0xff] }
 0x277   :  { %v534_v32 = vld [vmem:[#allocation3 + $0x20] sm:$0xff] }
 0x278   :  { %v3328_v61 = vpack.c.bf16 %v535_v30, %v534_v32 }
 0x27a   :  { %3329 = vmatpush1.bf16.msra.mxu1 %v3328_v61  ;;  %v547_v50 = vld [vmem:[#allocation3 + $0x88] sm:$0xff] }
 0x27b   :  { %3330 = vmatprep.subr.bf16.mxu1 %v5954_v45  ;;  %v546_v54 = vld [vmem:[#allocation3 + $0x80] sm:$0xff] }
 0x27c   :  { %v3346_v56 = vpack.c.bf16 %v547_v50, %v546_v54 }
 0x27e   :  { %3332 = vmatpush1.bf16.msra.mxu1 %v3331_v34 }
 0x27f   :  { %3333 = vmatprep.subr.bf16.mxu1 %v5954_v45 }
 0x282   :  { %3335 = vmatpush1.bf16.msra.mxu1 %v3334_v15 }
 0x283   :  { %3336 = vmatprep.subr.bf16.mxu1 %v5954_v45 }
 0x286   :  { %3338 = vmatpush1.bf16.msra.mxu1 %v3337_v43 }
 0x287   :  { %3339 = vmatprep.subr.bf16.mxu1 %v5954_v45 }
 0x28a   :  { %3341 = vmatpush1.bf16.msra.mxu1 %v3340_v49 }
 0x28b   :  { %3342 = vmatprep.subr.bf16.mxu1 %v5954_v45 }
 0x28e   :  { %3344 = vmatpush1.bf16.msra.mxu1 %v3343_v48 }
 0x28f   :  { %3345 = vmatprep.subr.bf16.mxu1 %v5954_v45 }
 0x292   :  { %3347 = vmatpush1.bf16.msra.mxu1 %v3346_v56 }
 0x295   :  { %649 = vmatmul.mubr.f32.vlgmr.msra.gmra.mrb[0].mxu1 %v506_v46 }
 0x296   :  { %3188 = vmatprep.mubr.msk.f32.mxu1 %vm413_vm4, %v509_v51 }
 0x299   :  { %654 = vmatmul.mubr.f32.gmra.mrb[2].mxu1 %v508_v57 }
 0x29a   :  { %3189 = vmatprep.mubr.msk.f32.mxu1 %vm413_vm4, %v511_v41  ;;  %v5958_v41 = vmov 4  }
 0x29d   :  { %659 = vmatmul.mubr.f32.gmra.mrb[4].mxu1 %v510_v59 }
 0x29e   :  { %3190 = vmatprep.mubr.msk.f32.mxu1 %vm413_vm4, %v513_v60 }
 0x2a1   :  { %664 = vmatmul.mubr.f32.gmra.mrb[6].mxu1 %v512_v62 }
 0x2a2   :  { %3191 = vmatprep.mubr.msk.f32.mxu1 %vm413_vm4, %v515_v39  ;;  %v5976_v39 = vmov 6  }
 0x2a5   :  { %669 = vmatmul.mubr.f32.gmra.mrb[8].mxu1 %v514_v53 }
 0x2a6   :  { %3192 = vmatprep.mubr.msk.f32.mxu1 %vm413_vm4, %v517_v63 }
 0x2a9   :  { %674 = vmatmul.mubr.f32.gmra.mrb[10].mxu1 %v516_v38  ;;  %v5972_v38 = vmov 3  }
 0x2aa   :  { %3193 = vmatprep.mubr.msk.f32.mxu1 %vm413_vm4, %v519_v55 }
 0x2ad   :  { %679 = vmatmul.mubr.f32.gmra.mrb[12].mxu1 %v518_v0  ;;  %v5968_v0 = vmov 7  }
 0x2ae   :  { %3194 = vmatprep.mubr.msk.f32.mxu1 %vm413_vm4, %v521_v2 }
 0x2b1   :  { %684 = vmatmul.mubr.f32.gmra.mrb[14].mxu1 %v520_v3 }
 0x2b2   :  { %3195 = vmatprep.mubr.msk.f32.mxu1 %vm413_vm4, %v523_v5  ;;  %v5966_v5 = vmov 5  }
 0x2b5   :  { %689 = vmatmul.mubr.f32.gmra.mrb[16].mxu1 %v522_v8  ;;  %v5978_v8 = vmov 9  }
 0x2b6   :  { %3196 = vmatprep.mubr.msk.f32.mxu1 %vm413_vm4, %v525_v9 }
 0x2b9   :  { %694 = vmatmul.mubr.f32.gmra.mrb[18].mxu1 %v524_v10  ;;  %v5974_v10 = vmov 8  }
 0x2ba   :  { %3197 = vmatprep.mubr.msk.f32.mxu1 %vm413_vm4, %v527_v11  ;;  %v5956_v11 = vmov 10  }
 0x2bd   :  { %699 = vmatmul.mubr.f32.gmra.mrb[20].mxu1 %v526_v12  ;;  %v5980_v12 = vmov 11  }
 0x2be   :  { %3198 = vmatprep.mubr.msk.f32.mxu1 %vm413_vm4, %v529_v14  ;;  %v5962_v14 = vmov 12  }
 0x2c1   :  { %704 = vmatmul.mubr.f32.gmra.mrb[22].mxu1 %v528_v16  ;;  %v5984_v16 = vmov 13  }
 0x368   :  { %v650_v18 = vpop.f32.mrb[0].mxu1 }
 0x369   :  { %v769_v40 = vadd.f32 %v4004_v20, %v650_v18  ;;  %v652_v58 = vpop.f32.mrb[1].mxu1 }
 0x36b   :  { %v781_v30 = vsub.f32 0.0, %v769_v40 }
 0x36c   :  { %v655_v32 = vpop.f32.mrb[2].mxu1 }
 0x36d   :  { %v793_v61 = vmul.f32 1.442695, %v781_v30  ;;  %v657_v13 = vpop.f32.mrb[3].mxu1  ;;  %v4179_v52 = vadd.f32 %v4002_v19, %v655_v32 }
 0x36e   :  { %v5964_v13 = vmov 15  }
 0x36f   :  { %3657 = vpow2.f32 %v793_v61  ;;  %v782_v56 = vsub.f32 0.0, %v4179_v52 }
 0x370   :  { %v660_v33 = vpop.f32.mrb[4].mxu1 }
 0x371   :  { %v662_v34 = vpop.f32.mrb[5].mxu1  ;;  %v795_v57 = vmul.f32 1.442695, %v782_v56  ;;  %v771_v55 = vadd.f32 %v4008_v22, %v660_v33 }
 0x373   :  { %v783_v3 = vsub.f32 0.0, %v771_v55 }
 0x374   :  { %v4158_v17 = vpop.f32.mrb[6].mxu1 }
 0x375   :  { %v667_v35 = vpop.f32.mrb[7].mxu1  ;;  %v797_v22 = vmul.f32 1.442695, %v783_v3  ;;  %v772_v32 = vadd.f32 %v4006_v21, %v4158_v17 }
 0x377   :  { %v784_v33 = vsub.f32 0.0, %v772_v32 }
 0x378   :  { %v4160_v15 = vpop.f32.mrb[8].mxu1 }
 0x379   :  { %v3658_v36 = vpop.eup %3657  ;;  %v672_v42 = vpop.f32.mrb[9].mxu1  ;;  %v799_v21 = vmul.f32 1.442695, %v784_v33 }
 0x37a   :  { %v817_v43 = vadd.f32 1.0, %v3658_v36 }
 0x37c   :  { %3659 = vrcp.f32 %v817_v43  ;;  %v4174_v20 = vpop.f32.mrb[10].mxu1  ;;  %v773_v43 = vadd.f32 %v4012_v24, %v4160_v15 }
 0x37d   :  { %v677_v44 = vpop.f32.mrb[11].mxu1  ;;  %3661 = vpow2.f32 %v795_v57 }
 0x380   :  { %v4176_v47 = vpop.f32.mrb[12].mxu1 }
 0x381   :  { %v682_v49 = vpop.f32.mrb[13].mxu1 }
 0x382   :  { %v785_v49 = vsub.f32 0.0, %v773_v43 }
 0x384   :  { %v4181_v37 = vpop.f32.mrb[14].mxu1 }
 0x385   :  { %v687_v48 = vpop.f32.mrb[15].mxu1 }
 0x386   :  { %v3660_v54 = vpop.eup %3659 }
 0x387   :  { %v4183_v50 = vmul.f32 %v3660_v54, %v769_v40  ;;  %v3662_v2 = vpop.eup %3661  ;;  %v5986_v40 = vmov 14  }
 0x388   :  { %v4186_v46 = vpop.f32.mrb[16].mxu1  ;;  %v818_v9 = vadd.f32 1.0, %v3662_v2 }
 0x389   :  { %1144 = vperm.xlu1 %3442, %v4183_v50   ;;  %890 = vrot.lane.b32.xlu0 %v4183_v50, %s3743_s4  ;;  %v692_v51 = vpop.f32.mrb[17].mxu1 }
 0x38a   :  { %3663 = vrcp.f32 %v818_v9 }
 0x38b   :  { %3665 = vpow2.f32 %v797_v22  ;;  %v4346_v22 = vadd.f32 %v4016_v26, %v4176_v47 }
 0x38c   :  { %v4191_v19 = vpop.f32.mrb[18].mxu1 }
 0x38d   :  { %3444 = vset.pattern.permute.xlu1 %v5958_v41  ;;  %952 = vperm.xlu0 %3438, %v4183_v50   ;;  %v697_v59 = vpop.f32.mrb[19].mxu1 }
 0x38e   :  { %1384 = vperm.xlu1 %3444, %v4183_v50  }
 0x390   :  { %v4196_v60 = vpop.f32.mrb[20].mxu1 }
 0x391   :  { %3441 = vset.pattern.permute.xlu0 %v5970_v7  ;;  %v702_v62 = vpop.f32.mrb[21].mxu1 }
 0x392   :  { %3446 = vset.pattern.permute.xlu1 %v5976_v39  ;;  %1024 = vperm.xlu0 %3441, %v4183_v50  }
 0x393   :  { %1624 = vperm.xlu1 %3446, %v4183_v50  }
 0x394   :  { %v4202_v53 = vpop.f32.mrb[22].mxu1  ;;  %v3664_v18 = vpop.eup %3663 }
 0x395   :  { %v707_v63 = vpop.f32.mrb[23].mxu1  ;;  %v3666_v58 = vpop.eup %3665  ;;  %v4226_v30 = vmul.f32 %v3664_v18, %v4179_v52  ;;  %v801_v52 = vmul.f32 1.442695, %v785_v49 }
 0x396   :  { %3443 = vset.pattern.permute.xlu0 %v5972_v38  ;;  %v819_v61 = vadd.f32 1.0, %v3666_v58 }
 0x397   :  { %3447 = vset.pattern.permute.xlu1 %v5968_v0  ;;  %1264 = vperm.xlu0 %3443, %v4183_v50  }
 0x398   :  { %1744 = vperm.xlu1 %3447, %v4183_v50   ;;  %3667 = vrcp.f32 %v819_v61 }
 0x399   :  { %3669 = vpow2.f32 %v799_v21 }
 0x39b   :  { %3445 = vset.pattern.permute.xlu0 %v5966_v5 }
 0x39c   :  { %3449 = vset.pattern.permute.xlu1 %v5978_v8  ;;  %1504 = vperm.xlu0 %3445, %v4183_v50  }
 0x39d   :  { %1984 = vperm.xlu1 %3449, %v4183_v50  }
 0x3a0   :  { %3448 = vset.pattern.permute.xlu0 %v5974_v10 }
 0x3a1   :  { %3450 = vset.pattern.permute.xlu1 %v5956_v11  ;;  %1864 = vperm.xlu0 %3448, %v4183_v50  }
 0x3a2   :  { %2104 = vperm.xlu1 %3450, %v4183_v50   ;;  %v3668_v34 = vpop.eup %3667 }
 0x3a3   :  { %v4246_v17 = vmul.f32 %v3668_v34, %v771_v55  ;;  %v3670_v35 = vpop.eup %3669 }
 0x3a4   :  { %v820_v36 = vadd.f32 1.0, %v3670_v35 }
 0x3a5   :  { %3451 = vset.pattern.permute.xlu0 %v5980_v12 }
 0x3a6   :  { %3452 = vset.pattern.permute.xlu1 %v5962_v14  ;;  %2224 = vperm.xlu0 %3451, %v4183_v50   ;;  %3671 = vrcp.f32 %v820_v36 }
 0x3a7   :  { %2344 = vperm.xlu1 %3452, %v4183_v50   ;;  %3673 = vpow2.f32 %v801_v52 }
 0x3aa   :  { %3453 = vset.pattern.permute.xlu0 %v5984_v16 }
 0x3ab   :  { %3454 = vset.pattern.permute.xlu1 %v5986_v40  ;;  %2464 = vperm.xlu0 %3453, %v4183_v50  }
 0x3ac   :  { %2584 = vperm.xlu1 %3454, %v4183_v50  }
 0x3af   :  { %3458 = vset.pattern.permute.xlu0 %v5960_v6 }
 0x3b0   :  { %3455 = vset.pattern.permute.xlu1 %v5964_v13  ;;  %1148 = vperm.xlu0 %3458, %v4226_v30   ;;  %v3672_v42 = vpop.eup %3671 }
 0x3b1   :  { %2704 = vperm.xlu1 %3455, %v4183_v50   ;;  %v4270_v44 = vmul.f32 %v3672_v42, %v772_v32  ;;  %v3674_v24 = vpop.eup %3673  ;;  %v774_v50 = vadd.f32 %v4010_v23, %v4174_v20 }
 0x3b2   :  { %v821_v15 = vadd.f32 1.0, %v3674_v24 }
 0x3b3   :  { %v786_v51 = vsub.f32 0.0, %v774_v50 }
 0x3b4   :  { %3460 = vset.pattern.permute.xlu0 %v5958_v41  ;;  %3675 = vrcp.f32 %v821_v15 }
 0x3b5   :  { %1388 = vperm.xlu0 %3460, %v4226_v30   ;;  %892 = vrot.lane.b32.xlu1 %v4226_v30, %s3743_s4  ;;  %v803_v23 = vmul.f32 1.442695, %v786_v51 }
 0x3b6   :  { %3456 = vset.pattern.permute.xlu1 %v5982_v4 }
 0x3b7   :  { %3677 = vpow2.f32 %v803_v23 }
 0x3b9   :  { %3462 = vset.pattern.permute.xlu0 %v5976_v39  ;;  %956 = vperm.xlu1 %3456, %v4226_v30  }
 0x3ba   :  { %1628 = vperm.xlu0 %3462, %v4226_v30  }
 0x3bd   :  { %3457 = vset.pattern.permute.xlu1 %v5970_v7 }
 0x3be   :  { %3468 = vset.pattern.permute.xlu0 %v5962_v14  ;;  %1028 = vperm.xlu1 %3457, %v4226_v30   ;;  %v3676_v54 = vpop.eup %3675 }
 0x3bf   :  { %2348 = vperm.xlu0 %3468, %v4226_v30   ;;  %v4307_v56 = vmul.f32 %v3676_v54, %v773_v43  ;;  %v4407_v54 = vadd.f32 %v4014_v25, %v4181_v37 }
 0x3c1   :  { %v3678_v55 = vpop.eup %3677  ;;  %v788_v23 = vsub.f32 0.0, %v4407_v54 }
 0x3c2   :  { %3459 = vset.pattern.permute.xlu1 %v5972_v38  ;;  %v822_v2 = vadd.f32 1.0, %v3678_v55 }
 0x3c3   :  { %1268 = vperm.xlu1 %3459, %v4226_v30   ;;  %894 = vrot.lane.b32.xlu0 %v4246_v17, %s3743_s4 }
 0x3c4   :  { %3472 = vset.pattern.permute.xlu0 %v5982_v4  ;;  %3679 = vrcp.f32 %v822_v2 }
 0x3c7   :  { %3461 = vset.pattern.permute.xlu1 %v5966_v5  ;;  %960 = vperm.xlu0 %3472, %v4246_v17  }
 0x3c8   :  { %1508 = vperm.xlu1 %3461, %v4226_v30  }
 0x3cb   :  { %3478 = vset.pattern.permute.xlu0 %v5976_v39 }
 0x3cc   :  { %3463 = vset.pattern.permute.xlu1 %v5968_v0  ;;  %1632 = vperm.xlu0 %3478, %v4246_v17  }
 0x3cd   :  { %1748 = vperm.xlu1 %3463, %v4226_v30  }
 0x3ce   :  { %v3680_v61 = vpop.eup %3679 }
 0x3cf   :  { %v4371_v34 = vmul.f32 %v3680_v61, %v774_v50 }
 0x3d0   :  { %3482 = vset.pattern.permute.xlu0 %v5956_v11 }
 0x3d1   :  { %3464 = vset.pattern.permute.xlu1 %v5974_v10  ;;  %2112 = vperm.xlu0 %3482, %v4246_v17  }
 0x3d2   :  { %1868 = vperm.xlu1 %3464, %v4226_v30  }
 0x3d5   :  { %3487 = vset.pattern.permute.xlu0 %v5964_v13 }
 0x3d6   :  { %3465 = vset.pattern.permute.xlu1 %v5978_v8  ;;  %2712 = vperm.xlu0 %3487, %v4246_v17  }
 0x3d7   :  { %1988 = vperm.xlu1 %3465, %v4226_v30  }
 0x3da   :  { %3489 = vset.pattern.permute.xlu0 %v5970_v7 }
 0x3db   :  { %3466 = vset.pattern.permute.xlu1 %v5956_v11  ;;  %1036 = vperm.xlu0 %3489, %v4270_v44  }
 0x3dc   :  { %2108 = vperm.xlu1 %3466, %v4226_v30  }
 0x3df   :  { %3491 = vset.pattern.permute.xlu0 %v5972_v38 }
 0x3e0   :  { %3467 = vset.pattern.permute.xlu1 %v5980_v12  ;;  %1276 = vperm.xlu0 %3491, %v4270_v44  }
 0x3e1   :  { %2228 = vperm.xlu1 %3467, %v4226_v30  }
 0x3e4   :  { %3493 = vset.pattern.permute.xlu0 %v5966_v5 }
 0x3e5   :  { %3469 = vset.pattern.permute.xlu1 %v5984_v16  ;;  %1516 = vperm.xlu0 %3493, %v4270_v44  }
 0x3e6   :  { %2468 = vperm.xlu1 %3469, %v4226_v30  }
 0x3e9   :  { %3495 = vset.pattern.permute.xlu0 %v5968_v0 }
 0x3ea   :  { %3470 = vset.pattern.permute.xlu1 %v5986_v40  ;;  %1756 = vperm.xlu0 %3495, %v4270_v44  }
 0x3eb   :  { %2588 = vperm.xlu1 %3470, %v4226_v30  }
 0x3ee   :  { %3496 = vset.pattern.permute.xlu0 %v5974_v10 }
 0x3ef   :  { %3471 = vset.pattern.permute.xlu1 %v5964_v13  ;;  %1876 = vperm.xlu0 %3496, %v4270_v44  }
 0x3f0   :  { %2708 = vperm.xlu1 %3471, %v4226_v30   ;;  %v787_v30 = vsub.f32 0.0, %v4346_v22 }
 0x3f2   :  { %v805_v47 = vmul.f32 1.442695, %v787_v30  ;;  %v807_v30 = vmul.f32 1.442695, %v788_v23 }
 0x3f3   :  { %3500 = vset.pattern.permute.xlu0 %v5962_v14 }
 0x3f4   :  { %3473 = vset.pattern.permute.xlu1 %v5970_v7  ;;  %2356 = vperm.xlu0 %3500, %v4270_v44   ;;  %3681 = vpow2.f32 %v805_v47 }
 0x3f5   :  { %1032 = vperm.xlu1 %3473, %v4246_v17  }
 0x3f8   :  { %3501 = vset.pattern.permute.xlu0 %v5984_v16 }
 0x3f9   :  { %3474 = vset.pattern.permute.xlu1 %v5960_v6  ;;  %2476 = vperm.xlu0 %3501, %v4270_v44  }
 0x3fa   :  { %1152 = vperm.xlu1 %3474, %v4246_v17  }
 0x3fb   :  { %v891_v48 = vpop.permute.xlu0 %890 }
 0x3fc   :  { %927 = vst.msk [vmem:[#allocation4] sm:$0xff] %vm926_vm8, %v891_v48 }
 0x3fd   :  { %3502 = vset.pattern.permute.xlu0 %v5986_v40 }
 0x3fe   :  { %3475 = vset.pattern.permute.xlu1 %v5972_v38  ;;  %2596 = vperm.xlu0 %3502, %v4270_v44   ;;  %v3682_v43 = vpop.eup %3681 }
 0x3ff   :  { %1272 = vperm.xlu1 %3475, %v4246_v17   ;;  %v823_v52 = vadd.f32 1.0, %v3682_v43 }
 0x401   :  { %3683 = vrcp.f32 %v823_v52 }
 0x402   :  { %898 = vrot.lane.b32.xlu0 %v4307_v56, %s3743_s4  ;;  %3685 = vpow2.f32 %v807_v30 }
 0x403   :  { %3476 = vset.pattern.permute.xlu1 %v5958_v41  ;;  %3504 = vset.pattern.permute.xlu0 %v5982_v4 }
 0x404   :  { %1392 = vperm.xlu1 %3476, %v4246_v17  }
 0x406   :  { %968 = vperm.xlu0 %3504, %v4307_v56  }
 0x408   :  { %v4315_v20 = vpop.permute.xlu1 %1144  ;;  %3477 = vset.pattern.permute.xlu1 %v5966_v5 }
 0x409   :  { %1512 = vperm.xlu1 %3477, %v4246_v17  }
 0x40a   :  { %3506 = vset.pattern.permute.xlu0 %v5960_v6 }
 0x40b   :  { %1160 = vperm.xlu0 %3506, %v4307_v56   ;;  %v3684_v55 = vpop.eup %3683 }
 0x40c   :  { %v4321_v57 = vpop.permute.xlu0 %952  ;;  %v4426_v37 = vmul.f32 %v3684_v55, %v4346_v22  ;;  %v3686_v23 = vpop.eup %3685  ;;  %v4455_v55 = vadd.f32 %v4020_v28, %v4186_v46 }
 0x40d   :  { %5992 = vst [vmem:[#allocation8_spill] sm:$0xff] %v4321_v57  ;;  %v4323_v59 = vpop.permute.xlu1 %1384  ;;  %3479 = vset.pattern.permute.xlu1 %v5968_v0 }
 0x40e   :  { %1752 = vperm.xlu1 %3479, %v4246_v17   ;;  %v789_v45 = vsub.f32 0.0, %v4455_v55 }
 0x40f   :  { %3508 = vset.pattern.permute.xlu0 %v5958_v41 }
 0x410   :  { %1400 = vperm.xlu0 %3508, %v4307_v56  }
 0x411   :  { %v4329_v62 = vpop.permute.xlu0 %1024 }
 0x412   :  { %5993 = vst [vmem:[#allocation9_spill] sm:$0xff] %v4329_v62  ;;  %v4331_v63 = vpop.permute.xlu1 %1624  ;;  %3480 = vset.pattern.permute.xlu1 %v5974_v10  ;;  %v6039_v62 = vmov 13  }
 0x413   :  { %1872 = vperm.xlu1 %3480, %v4246_v17  }
 0x414   :  { %3510 = vset.pattern.permute.xlu0 %v5976_v39 }
 0x415   :  { %1640 = vperm.xlu0 %3510, %v4307_v56  }
 0x416   :  { %v4337_v3 = vpop.permute.xlu0 %1264 }
 0x417   :  { %5994 = vst [vmem:[#allocation10_spill] sm:$0xff] %v4337_v3  ;;  %v4339_v9 = vpop.permute.xlu1 %1744  ;;  %3481 = vset.pattern.permute.xlu1 %v5978_v8 }
 0x418   :  { %1992 = vperm.xlu1 %3481, %v4246_v17  }
 0x419   :  { %3514 = vset.pattern.permute.xlu0 %v5956_v11 }
 0x41a   :  { %2120 = vperm.xlu0 %3514, %v4307_v56  }
 0x41b   :  { %v4349_v18 = vpop.permute.xlu0 %1504 }
 0x41c   :  { %v4351_v58 = vpop.permute.xlu1 %1984  ;;  %3483 = vset.pattern.permute.xlu1 %v5980_v12 }
 0x41d   :  { %2232 = vperm.xlu1 %3483, %v4246_v17  }
 0x41e   :  { %3515 = vset.pattern.permute.xlu0 %v5980_v12 }
 0x41f   :  { %2240 = vperm.xlu0 %3515, %v4307_v56  }
 0x420   :  { %v4358_v32 = vpop.permute.xlu0 %1864 }
 0x421   :  { %v4360_v26 = vpop.permute.xlu1 %2104  ;;  %3484 = vset.pattern.permute.xlu1 %v5962_v14 }
 0x422   :  { %2352 = vperm.xlu1 %3484, %v4246_v17  }
 0x423   :  { %3516 = vset.pattern.permute.xlu0 %v5962_v14 }
 0x424   :  { %2360 = vperm.xlu0 %3516, %v4307_v56  }
 0x425   :  { %v4366_v33 = vpop.permute.xlu0 %2224 }
 0x426   :  { %v4368_v21 = vpop.permute.xlu1 %2344  ;;  %3485 = vset.pattern.permute.xlu1 %v5984_v16 }
 0x427   :  { %2472 = vperm.xlu1 %3485, %v4246_v17  }
 0x428   :  { %3521 = vset.pattern.permute.xlu0 %v5970_v7 }
 0x429   :  { %1044 = vperm.xlu0 %3521, %v4371_v34  }
 0x42a   :  { %v4376_v35 = vpop.permute.xlu0 %2464 }
 0x42b   :  { %v4378_v36 = vpop.permute.xlu1 %2584  ;;  %3486 = vset.pattern.permute.xlu1 %v5986_v40 }
 0x42c   :  { %2592 = vperm.xlu1 %3486, %v4246_v17  }
 0x42d   :  { %3523 = vset.pattern.permute.xlu0 %v5972_v38 }
 0x42e   :  { %1284 = vperm.xlu0 %3523, %v4371_v34  }
 0x42f   :  { %v4384_v42 = vpop.permute.xlu0 %1148 }
 0x430   :  { %5995 = vst [vmem:[#allocation11_spill] sm:$0xff] %v4384_v42  ;;  %v4386_v49 = vpop.permute.xlu1 %2704  ;;  %896 = vrot.lane.b32.xlu1 %v4270_v44, %s3743_s4 }
 0x431   :  { %3488 = vset.pattern.permute.xlu1 %v5982_v4 }
 0x432   :  { %3525 = vset.pattern.permute.xlu0 %v5966_v5 }
 0x433   :  { %1524 = vperm.xlu0 %3525, %v4371_v34  }
 0x434   :  { %v4393_v17 = vpop.permute.xlu0 %1388  ;;  %v893_v24 = vpop.permute.xlu1 %892  ;;  %964 = vperm.xlu1 %3488, %v4270_v44  }
 0x435   :  { %5996 = vst [vmem:[#allocation12_spill] sm:$0xff] %v4393_v17  ;;  %928 = vst.msk [vmem:[#allocation4 + $0x8] sm:$0xff] %vm926_vm8, %v893_v24 }
 0x437   :  { %3527 = vset.pattern.permute.xlu0 %v5968_v0 }
 0x438   :  { %v4398_v15 = vpop.permute.xlu1 %956  ;;  %3490 = vset.pattern.permute.xlu1 %v5960_v6  ;;  %1764 = vperm.xlu0 %3527, %v4371_v34  }
 0x439   :  { %5997 = vst [vmem:[#allocation13_spill] sm:$0xff] %v4398_v15  ;;  %v4402_v48 = vpop.permute.xlu0 %1628  ;;  %1156 = vperm.xlu1 %3490, %v4270_v44   ;;  %v6022_v15 = vmov 4  }
 0x43a   :  { %5998 = vst [vmem:[#allocation14_spill] sm:$0xff] %v4402_v48  ;;  %v6035_v48 = vmov 12  }
 0x43c   :  { %3529 = vset.pattern.permute.xlu0 %v5978_v8 }
 0x43d   :  { %v4410_v50 = vpop.permute.xlu1 %1028  ;;  %3492 = vset.pattern.permute.xlu1 %v5958_v41  ;;  %2004 = vperm.xlu0 %3529, %v4371_v34  }
 0x43e   :  { %v4414_v51 = vpop.permute.xlu0 %2348  ;;  %1396 = vperm.xlu1 %3492, %v4270_v44  }
 0x43f   :  { %5999 = vst [vmem:[#allocation15_spill] sm:$0xff] %v4414_v51 }
 0x441   :  { %3534 = vset.pattern.permute.xlu0 %v5986_v40 }
 0x442   :  { %v4419_v2 = vpop.permute.xlu1 %1268  ;;  %v895_v25 = vpop.permute.xlu0 %894  ;;  %3494 = vset.pattern.permute.xlu1 %v5976_v39  ;;  %2604 = vperm.xlu0 %3534, %v4371_v34  }
 0x443   :  { %929 = vst.msk [vmem:[#allocation4 + $0x10] sm:$0xff] %vm926_vm8, %v895_v25  ;;  %1636 = vperm.xlu1 %3494, %v4270_v44   ;;  %v824_v25 = vadd.f32 1.0, %v3686_v23  ;;  %v809_v23 = vmul.f32 1.442695, %v789_v45 }
 0x445   :  { %3687 = vrcp.f32 %v824_v25 }
 0x446   :  { %v4428_v47 = vpop.permute.xlu0 %960  ;;  %902 = vrot.lane.b32.xlu0 %v4426_v37, %s3743_s4  ;;  %3689 = vpow2.f32 %v809_v23 }
 0x447   :  { %6000 = vst [vmem:[#allocation16_spill] sm:$0xff] %v4428_v47  ;;  %v4432_v61 = vpop.permute.xlu1 %1508  ;;  %3497 = vset.pattern.permute.xlu1 %v5978_v8  ;;  %3536 = vset.pattern.permute.xlu0 %v5982_v4  ;;  %v6018_v47 = vmov 0  }
 0x448   :  { %6001 = vst [vmem:[#allocation17_spill] sm:$0xff] %v4432_v61  ;;  %1996 = vperm.xlu1 %3497, %v4270_v44  }
 0x44a   :  { %976 = vperm.xlu0 %3536, %v4426_v37  }
 0x44b   :  { %v4438_v43 = vpop.permute.xlu0 %1632 }
 0x44c   :  { %v4440_v22 = vpop.permute.xlu1 %1748  ;;  %3498 = vset.pattern.permute.xlu1 %v5956_v11 }
 0x44d   :  { %6002 = vst [vmem:[#allocation18_spill] sm:$0xff] %v4440_v22  ;;  %2116 = vperm.xlu1 %3498, %v4270_v44  }
 0x44e   :  { %3538 = vset.pattern.permute.xlu0 %v5960_v6 }
 0x44f   :  { %1168 = vperm.xlu0 %3538, %v4426_v37   ;;  %v3688_v25 = vpop.eup %3687 }
 0x450   :  { %v4446_v52 = vpop.permute.xlu0 %2112  ;;  %v4489_v6 = vmul.f32 %v3688_v25, %v4407_v54 }
 0x451   :  { %v4448_v24 = vpop.permute.xlu1 %1868  ;;  %3499 = vset.pattern.permute.xlu1 %v5980_v12 }
 0x452   :  { %6003 = vst [vmem:[#allocation19_spill] sm:$0xff] %v4448_v24  ;;  %2236 = vperm.xlu1 %3499, %v4270_v44  }
 0x453   :  { %3540 = vset.pattern.permute.xlu0 %v5958_v41 }
 0x454   :  { %1408 = vperm.xlu0 %3540, %v4426_v37  }
 0x455   :  { %v4458_v30 = vpop.permute.xlu0 %2712 }
 0x456   :  { %v4460_v1 = vpop.permute.xlu1 %1988  ;;  %3503 = vset.pattern.permute.xlu1 %v5964_v13 }
 0x457   :  { %6004 = vst [vmem:[#allocation20_spill] sm:$0xff] %v4460_v1  ;;  %2716 = vperm.xlu1 %3503, %v4270_v44  }
 0x458   :  { %3541 = vset.pattern.permute.xlu0 %v5966_v5 }
 0x459   :  { %1528 = vperm.xlu0 %3541, %v4426_v37  }
 0x45a   :  { %v4467_v28 = vpop.permute.xlu0 %1036 }
 0x45b   :  { %v4469_v46 = vpop.permute.xlu1 %2108  ;;  %3505 = vset.pattern.permute.xlu1 %v5970_v7 }
 0x45c   :  { %6005 = vst [vmem:[#allocation21_spill] sm:$0xff] %v4469_v46  ;;  %1040 = vperm.xlu1 %3505, %v4307_v56   ;;  %v6029_v46 = vmov 1  }
 0x45d   :  { %3543 = vset.pattern.permute.xlu0 %v5968_v0 }
 0x45e   :  { %1768 = vperm.xlu0 %3543, %v4426_v37  }
 0x45f   :  { %v4475_v44 = vpop.permute.xlu0 %1276 }
 0x460   :  { %v4477_v11 = vpop.permute.xlu1 %2228  ;;  %3507 = vset.pattern.permute.xlu1 %v5972_v38 }
 0x461   :  { %6006 = vst [vmem:[#allocation22_spill] sm:$0xff] %v4477_v11  ;;  %1280 = vperm.xlu1 %3507, %v4307_v56  }
 0x462   :  { %3548 = vset.pattern.permute.xlu0 %v5962_v14  ;;  %v3690_v14 = vpop.eup %3689 }
 0x463   :  { %2368 = vperm.xlu0 %3548, %v4426_v37  }
 0x464   :  { %v4483_v45 = vpop.permute.xlu0 %1516 }
 0x465   :  { %6007 = vst [vmem:[#allocation23_spill] sm:$0xff] %v4483_v45  ;;  %v4485_v41 = vpop.permute.xlu1 %2468  ;;  %3509 = vset.pattern.permute.xlu1 %v5966_v5  ;;  %v825_v5 = vadd.f32 1.0, %v3690_v14  ;;  %v778_v14 = vadd.f32 %v4018_v27, %v4191_v19  ;;  %v6026_v45 = vmov 6  }
 0x466   :  { %6008 = vst [vmem:[#allocation24_spill] sm:$0xff] %v4485_v41  ;;  %1520 = vperm.xlu1 %3509, %v4307_v56  }
 0x467   :  { %3553 = vset.pattern.permute.xlu0 %v5970_v7  ;;  %3691 = vrcp.f32 %v825_v5 }
 0x468   :  { %1052 = vperm.xlu0 %3553, %v4489_v6  }
 0x469   :  { %v4494_v23 = vpop.permute.xlu0 %1756 }
 0x46a   :  { %6009 = vst [vmem:[#allocation25_spill] sm:$0xff] %v4494_v23  ;;  %v4496_v13 = vpop.permute.xlu1 %2588  ;;  %3511 = vset.pattern.permute.xlu1 %v5968_v0 }
 0x46b   :  { %6010 = vst [vmem:[#allocation26_spill] sm:$0xff] %v4496_v13  ;;  %1760 = vperm.xlu1 %3511, %v4307_v56   ;;  %v6028_v13 = vmov 8  }
 0x46c   :  { %3555 = vset.pattern.permute.xlu0 %v5972_v38 }
 0x46d   :  { %1292 = vperm.xlu0 %3555, %v4489_v6  }
 0x46e   :  { %v4502_v54 = vpop.permute.xlu0 %1876 }
 0x46f   :  { %6011 = vst [vmem:[#allocation27_spill] sm:$0xff] %v4502_v54  ;;  %v4504_v25 = vpop.permute.xlu1 %2708  ;;  %3512 = vset.pattern.permute.xlu1 %v5974_v10  ;;  %v790_v10 = vsub.f32 0.0, %v778_v14  ;;  %v6024_v54 = vmov 11  }
 0x470   :  { %6012 = vst [vmem:[#allocation28_spill] sm:$0xff] %v4504_v25  ;;  %1880 = vperm.xlu1 %3512, %v4307_v56  }
 0x471   :  { %3558 = vset.pattern.permute.xlu0 %v5976_v39  ;;  %v3692_v39 = vpop.eup %3691  ;;  %v811_v19 = vmul.f32 1.442695, %v790_v10 }
 0x472   :  { %1652 = vperm.xlu0 %3558, %v4489_v6   ;;  %v4531_v27 = vmul.f32 %v3692_v39, %v4455_v55  ;;  %v6019_v39 = vmov 15  }
 0x473   :  { %v4510_v0 = vpop.permute.xlu0 %2356  ;;  %3693 = vpow2.f32 %v811_v19 }
 0x474   :  { %6013 = vst [vmem:[#allocation29_spill] sm:$0xff] %v4510_v0  ;;  %v4512_v7 = vpop.permute.xlu1 %1032  ;;  %3513 = vset.pattern.permute.xlu1 %v5978_v8 }
 0x475   :  { %6014 = vst [vmem:[#allocation30_spill] sm:$0xff] %v4512_v7  ;;  %2000 = vperm.xlu1 %3513, %v4307_v56   ;;  %v779_v7 = vadd.f32 %v4025_v31, %v4196_v60  ;;  %v6031_v31 = vmov 10  }
 0x476   :  { %3563 = vset.pattern.permute.xlu0 %v5980_v12 }
 0x477   :  { %2252 = vperm.xlu0 %3563, %v4489_v6   ;;  %v791_v51 = vsub.f32 0.0, %v779_v7 }
 0x478   :  { %v4520_v5 = vpop.permute.xlu0 %2476 }
 0x479   :  { %6015 = vst [vmem:[#allocation31_spill] sm:$0xff] %v4520_v5  ;;  %v4522_v38 = vpop.permute.xlu1 %1152  ;;  %3517 = vset.pattern.permute.xlu1 %v5984_v16  ;;  %v6023_v5 = vmov 9   ;;  %v813_v60 = vmul.f32 1.442695, %v791_v51 }
 0x47a   :  { %2480 = vperm.xlu1 %3517, %v4307_v56  }
 0x47b   :  { %3565 = vset.pattern.permute.xlu0 %v5984_v16 }
 0x47c   :  { %2492 = vperm.xlu0 %3565, %v4489_v6  }
 0x47d   :  { %v4528_v8 = vpop.permute.xlu0 %2596  ;;  %v3694_v19 = vpop.eup %3693 }
 0x47e   :  { %6016 = vst [vmem:[#allocation32_spill] sm:$0xff] %v4528_v8  ;;  %v4533_v12 = vpop.permute.xlu1 %1272  ;;  %3518 = vset.pattern.permute.xlu1 %v5986_v40  ;;  %v6021_v40 = vmov 2  }
 0x47f   :  { %6017 = vst [vmem:[#allocation33_spill] sm:$0xff] %v4533_v12  ;;  %2600 = vperm.xlu1 %3518, %v4307_v56  }
 0x480   :  { %906 = vrot.lane.b32.xlu0 %v4531_v27, %s3743_s4 }
 0x481   :  { %v899_v4 = vpop.permute.xlu0 %898  ;;  %3568 = vset.pattern.permute.xlu0 %v6018_v47 }
 0x482   :  { %931 = vst.msk [vmem:[#allocation4 + $0x20] sm:$0xff] %vm926_vm8, %v899_v4 }
 0x483   :  { %v4541_v16 = vpop.permute.xlu1 %1392  ;;  %3519 = vset.pattern.permute.xlu1 %v6019_v39 }
 0x484   :  { %2720 = vperm.xlu1 %3519, %v4307_v56   ;;  %984 = vperm.xlu0 %3568, %v4531_v27  }
 0x485   :  { %v4546_v10 = vpop.permute.xlu0 %968 }
 0x486   :  { %6020 = vst [vmem:[#allocation34_spill] sm:$0xff] %v4546_v10  ;;  %v826_v10 = vadd.f32 1.0, %v3694_v19 }
 0x488   :  { %v4548_v55 = vpop.permute.xlu1 %1512  ;;  %900 = vrot.lane.b32.xlu1 %v4371_v34, %s3743_s4  ;;  %3570 = vset.pattern.permute.xlu0 %v6021_v40  ;;  %3695 = vrcp.f32 %v826_v10 }
 0x489   :  { %1176 = vperm.xlu0 %3570, %v4531_v27   ;;  %3520 = vset.pattern.permute.xlu1 %v6018_v47  ;;  %3697 = vpow2.f32 %v813_v60  ;;  %v6036_v60 = vmov 7  }
 0x48a   :  { %v4555_v4 = vpop.permute.xlu0 %1160 }
 0x48c   :  { %972 = vperm.xlu1 %3520, %v4371_v34  }
 0x48d   :  { %v4558_v56 = vpop.permute.xlu1 %1752  ;;  %3572 = vset.pattern.permute.xlu0 %v6022_v15 }
 0x48e   :  { %1416 = vperm.xlu0 %3572, %v4531_v27  }
 0x48f   :  { %v4562_v57 = vpop.permute.xlu0 %1400 }
 0x490   :  { %3522 = vset.pattern.permute.xlu1 %v6021_v40 }
 0x491   :  { %1164 = vperm.xlu1 %3522, %v4371_v34  }
 0x492   :  { %v4566_v8 = vpop.permute.xlu1 %1872  ;;  %3577 = vset.pattern.permute.xlu0 %v6023_v5  ;;  %v3696_v12 = vpop.eup %3695 }
 0x493   :  { %2016 = vperm.xlu0 %3577, %v4531_v27   ;;  %v4591_v41 = vmul.f32 %v3696_v12, %v778_v14  ;;  %v6032_v12 = vmov 3   ;;  %v3698_v42 = vpop.eup %3697 }
 0x494   :  { %v4570_v0 = vpop.permute.xlu0 %1640 }
 0x495   :  { %3524 = vset.pattern.permute.xlu1 %v6022_v15 }
 0x496   :  { %1404 = vperm.xlu1 %3524, %v4371_v34  }
 0x497   :  { %v4574_v19 = vpop.permute.xlu1 %1992  ;;  %3579 = vset.pattern.permute.xlu0 %v6024_v54 }
 0x498   :  { %2256 = vperm.xlu0 %3579, %v4531_v27  }
 0x499   :  { %v4578_v23 = vpop.permute.xlu0 %2120 }
 0x49a   :  { %6025 = vst [vmem:[#allocation35_spill] sm:$0xff] %v4578_v23  ;;  %3526 = vset.pattern.permute.xlu1 %v6026_v45 }
 0x49b   :  { %1644 = vperm.xlu1 %3526, %v4371_v34  }
 0x49c   :  { %v4582_v10 = vpop.permute.xlu1 %2232  ;;  %3583 = vset.pattern.permute.xlu0 %v6019_v39 }
 0x49d   :  { %2736 = vperm.xlu0 %3583, %v4531_v27  }
 0x49e   :  { %v4588_v25 = vpop.permute.xlu0 %2240 }
 0x49f   :  { %6027 = vst [vmem:[#allocation36_spill] sm:$0xff] %v4588_v25  ;;  %3528 = vset.pattern.permute.xlu1 %v6028_v13 }
 0x4a0   :  { %1884 = vperm.xlu1 %3528, %v4371_v34  }
 0x4a1   :  { %v4594_v11 = vpop.permute.xlu1 %2352  ;;  %3585 = vset.pattern.permute.xlu0 %v6029_v46 }
 0x4a2   :  { %1060 = vperm.xlu0 %3585, %v4591_v41  }
 0x4a3   :  { %v4598_v1 = vpop.permute.xlu0 %2360 }
 0x4a4   :  { %6030 = vst [vmem:[#allocation37_spill] sm:$0xff] %v4598_v1  ;;  %3530 = vset.pattern.permute.xlu1 %v6031_v31 }
 0x4a5   :  { %2124 = vperm.xlu1 %3530, %v4371_v34  }
 0x4a6   :  { %v4602_v24 = vpop.permute.xlu1 %2472  ;;  %3587 = vset.pattern.permute.xlu0 %v6032_v12 }
 0x4a7   :  { %1300 = vperm.xlu0 %3587, %v4591_v41  }
 0x4a8   :  { %v4606_v14 = vpop.permute.xlu0 %1044 }
 0x4a9   :  { %6033 = vst [vmem:[#allocation38_spill] sm:$0xff] %v4606_v14  ;;  %3531 = vset.pattern.permute.xlu1 %v6024_v54 }
 0x4aa   :  { %2244 = vperm.xlu1 %3531, %v4371_v34  }
 0x4ab   :  { %v4610_v22 = vpop.permute.xlu1 %2592  ;;  %3590 = vset.pattern.permute.xlu0 %v6026_v45 }
 0x4ac   :  { %1660 = vperm.xlu0 %3590, %v4591_v41  }
 0x4ad   :  { %v4614_v51 = vpop.permute.xlu0 %1284 }
 0x4ae   :  { %6034 = vst [vmem:[#allocation39_spill] sm:$0xff] %v4614_v51  ;;  %3532 = vset.pattern.permute.xlu1 %v6035_v48  ;;  %v827_v51 = vadd.f32 1.0, %v3698_v42 }
 0x4af   :  { %v897_v61 = vpop.permute.xlu1 %896  ;;  %2364 = vperm.xlu1 %3532, %v4371_v34  }
 0x4b0   :  { %930 = vst.msk [vmem:[#allocation4 + $0x18] sm:$0xff] %vm926_vm8, %v897_v61  ;;  %3591 = vset.pattern.permute.xlu0 %v6036_v60  ;;  %3699 = vrcp.f32 %v827_v51 }
 0x4b1   :  { %1780 = vperm.xlu0 %3591, %v4591_v41  }
 0x4b2   :  { %v4621_v17 = vpop.permute.xlu0 %1524 }
 0x4b3   :  { %6037 = vst [vmem:[#allocation40_spill] sm:$0xff] %v4621_v17  ;;  %v4623_v3 = vpop.permute.xlu1 %964  ;;  %3533 = vset.pattern.permute.xlu1 %v6039_v62 }
 0x4b4   :  { %6038 = vst [vmem:[#allocation41_spill] sm:$0xff] %v4623_v3  ;;  %2484 = vperm.xlu1 %3533, %v4371_v34  }
 0x4b5   :  { %3592 = vset.pattern.permute.xlu0 %v6028_v13 }
 0x4b6   :  { %1900 = vperm.xlu0 %3592, %v4591_v41  }
 0x4b7   :  { %v4629_v14 = vpop.permute.xlu0 %1764 }
 0x4b8   :  { %6040 = vst [vmem:[#allocation42_spill] sm:$0xff] %v4629_v14  ;;  %v4631_v61 = vpop.permute.xlu1 %1156  ;;  %3535 = vset.pattern.permute.xlu1 %v6019_v39 }
 0x4b9   :  { %6041 = vst [vmem:[#allocation43_spill] sm:$0xff] %v4631_v61  ;;  %2724 = vperm.xlu1 %3535, %v4371_v34  }
 0x4ba   :  { %3596 = vset.pattern.permute.xlu0 %v6035_v48  ;;  %v3700_v51 = vpop.eup %3699 }
 0x4bb   :  { %2380 = vperm.xlu0 %3596, %v4591_v41  }
 0x4bc   :  { %v4637_v3 = vpop.permute.xlu0 %2004 }
 0x4bd   :  { %6042 = vst [vmem:[#allocation44_spill] sm:$0xff] %v4637_v3  ;;  %v4639_v17 = vpop.permute.xlu1 %1396  ;;  %3537 = vset.pattern.permute.xlu1 %v6029_v46  ;;  %v6046_v3 = vmov 14  }
 0x4be   :  { %6043 = vst [vmem:[#allocation45_spill] sm:$0xff] %v4639_v17  ;;  %1048 = vperm.xlu1 %3537, %v4426_v37   ;;  %v4654_v17 = vmul.f32 %v3700_v51, %v779_v7 }
 0x4bf   :  { %3597 = vset.pattern.permute.xlu0 %v6039_v62 }
 0x4c0   :  { %2500 = vperm.xlu0 %3597, %v4591_v41  }
 0x4c1   :  { %v4645_v42 = vpop.permute.xlu0 %2604 }
 0x4c2   :  { %6044 = vst [vmem:[#allocation46_spill] sm:$0xff] %v4645_v42  ;;  %v4647_v34 = vpop.permute.xlu1 %1636  ;;  %3539 = vset.pattern.permute.xlu1 %v6032_v12  ;;  %v780_v42 = vadd.f32 %v4022_v29, %v4202_v53 }
 0x4c3   :  { %6045 = vst [vmem:[#allocation47_spill] sm:$0xff] %v4647_v34  ;;  %1288 = vperm.xlu1 %3539, %v4426_v37  }
 0x4c4   :  { %3598 = vset.pattern.permute.xlu0 %v6046_v3  ;;  %v792_v7 = vsub.f32 0.0, %v780_v42 }
 0x4c5   :  { %v903_v14 = vpop.permute.xlu0 %902  ;;  %2620 = vperm.xlu0 %3598, %v4591_v41  }
 0x4c6   :  { %933 = vst.msk [vmem:[#allocation4 + $0x30] sm:$0xff] %vm926_vm8, %v903_v14  ;;  %v815_v51 = vmul.f32 1.442695, %v792_v7 }
 0x4c7   :  { %v4656_v61 = vpop.permute.xlu1 %1996  ;;  %3542 = vset.pattern.permute.xlu1 %v6026_v45 }
 0x4c8   :  { %6047 = vst [vmem:[#allocation48_spill] sm:$0xff] %v4656_v61  ;;  %1648 = vperm.xlu1 %3542, %v4426_v37   ;;  %3701 = vpow2.f32 %v815_v51 }
 0x4c9   :  { %v4662_v34 = vpop.permute.xlu0 %976  ;;  %910 = vrot.lane.b32.xlu0 %v4654_v17, %s3743_s4 }
 0x4ca   :  { %6048 = vst [vmem:[#allocation49_spill] sm:$0xff] %v4662_v34  ;;  %3600 = vset.pattern.permute.xlu0 %v6018_v47 }
 0x4cc   :  { %v4667_v1 = vpop.permute.xlu1 %2116  ;;  %3544 = vset.pattern.permute.xlu1 %v6028_v13 }
 0x4cd   :  { %6049 = vst [vmem:[#allocation50_spill] sm:$0xff] %v4667_v1  ;;  %1888 = vperm.xlu1 %3544, %v4426_v37   ;;  %992 = vperm.xlu0 %3600, %v4654_v17   ;;  %v6056_v1 = vmov 5  }
 0x4ce   :  { %v4672_v14 = vpop.permute.xlu0 %1168 }
 0x4cf   :  { %6050 = vst [vmem:[#allocation51_spill] sm:$0xff] %v4672_v14 }
 0x4d1   :  { %v4674_v29 = vpop.permute.xlu1 %2236  ;;  %3545 = vset.pattern.permute.xlu1 %v6023_v5  ;;  %3602 = vset.pattern.permute.xlu0 %v6021_v40 }
 0x4d2   :  { %6051 = vst [vmem:[#allocation52_spill] sm:$0xff] %v4674_v29  ;;  %2008 = vperm.xlu1 %3545, %v4426_v37   ;;  %1184 = vperm.xlu0 %3602, %v4654_v17  }
 0x4d3   :  { %v4680_v53 = vpop.permute.xlu0 %1408 }
 0x4d4   :  { %6052 = vst [vmem:[#allocation53_spill] sm:$0xff] %v4680_v53 }
 0x4d6   :  { %v4682_v34 = vpop.permute.xlu1 %2716  ;;  %3546 = vset.pattern.permute.xlu1 %v6031_v31  ;;  %3604 = vset.pattern.permute.xlu0 %v6022_v15 }
 0x4d7   :  { %6053 = vst [vmem:[#allocation54_spill] sm:$0xff] %v4682_v34  ;;  %2128 = vperm.xlu1 %3546, %v4426_v37   ;;  %1424 = vperm.xlu0 %3604, %v4654_v17   ;;  %v3702_v34 = vpop.eup %3701 }
 0x4d8   :  { %v4688_v7 = vpop.permute.xlu0 %1528 }
 0x4d9   :  { %6054 = vst [vmem:[#allocation55_spill] sm:$0xff] %v4688_v7 }
 0x4db   :  { %v4690_v29 = vpop.permute.xlu1 %1040  ;;  %3547 = vset.pattern.permute.xlu1 %v6024_v54  ;;  %3605 = vset.pattern.permute.xlu0 %v6056_v1 }
 0x4dc   :  { %6055 = vst [vmem:[#allocation56_spill] sm:$0xff] %v4690_v29  ;;  %2248 = vperm.xlu1 %3547, %v4426_v37   ;;  %1544 = vperm.xlu0 %3605, %v4654_v17   ;;  %v828_v29 = vadd.f32 1.0, %v3702_v34 }
 0x4dd   :  { %v4696_v51 = vpop.permute.xlu0 %1768 }
 0x4de   :  { %6057 = vst [vmem:[#allocation57_spill] sm:$0xff] %v4696_v51  ;;  %3703 = vrcp.f32 %v828_v29 }
 0x4e0   :  { %v4698_v61 = vpop.permute.xlu1 %1280  ;;  %3549 = vset.pattern.permute.xlu1 %v6039_v62  ;;  %3606 = vset.pattern.permute.xlu0 %v6026_v45 }
 0x4e1   :  { %6058 = vst [vmem:[#allocation58_spill] sm:$0xff] %v4698_v61  ;;  %2488 = vperm.xlu1 %3549, %v4426_v37   ;;  %1664 = vperm.xlu0 %3606, %v4654_v17  }
 0x4e2   :  { %v4704_v7 = vpop.permute.xlu0 %2368 }
 0x4e3   :  { %6059 = vst [vmem:[#allocation59_spill] sm:$0xff] %v4704_v7 }
 0x4e5   :  { %v4706_v53 = vpop.permute.xlu1 %1520  ;;  %3550 = vset.pattern.permute.xlu1 %v6046_v3  ;;  %3610 = vset.pattern.permute.xlu0 %v6031_v31 }
 0x4e6   :  { %2608 = vperm.xlu1 %3550, %v4426_v37   ;;  %2144 = vperm.xlu0 %3610, %v4654_v17  }
 0x4e7   :  { %v4712_v61 = vpop.permute.xlu0 %1052 }
 0x4e8   :  { %6060 = vst [vmem:[#allocation60_spill] sm:$0xff] %v4712_v61  ;;  %v3704_v29 = vpop.eup %3703 }
 0x4e9   :  { %v4731_v14 = vmul.f32 %v3704_v29, %v780_v42 }
 0x4ea   :  { %v4714_v51 = vpop.permute.xlu1 %1760  ;;  %3551 = vset.pattern.permute.xlu1 %v6019_v39  ;;  %3611 = vset.pattern.permute.xlu0 %v6024_v54 }
 0x4eb   :  { %2728 = vperm.xlu1 %3551, %v4426_v37   ;;  %2264 = vperm.xlu0 %3611, %v4654_v17   ;;  %6063 = vst [vmem:[#allocation63_spill] sm:$0xff] %v4731_v14 }
 0x4ec   :  { %v4720_v34 = vpop.permute.xlu0 %1292 }
 0x4ed   :  { %6061 = vst [vmem:[#allocation61_spill] sm:$0xff] %v4720_v34 }
 0x4ef   :  { %v4722_v7 = vpop.permute.xlu1 %1880  ;;  %904 = vrot.lane.b32.xlu1 %v4489_v6, %s3743_s4  ;;  %3612 = vset.pattern.permute.xlu0 %v6035_v48 }
 0x4f0   :  { %2384 = vperm.xlu0 %3612, %v4654_v17   ;;  %3552 = vset.pattern.permute.xlu1 %v6018_v47 }
 0x4f1   :  { %v4729_v61 = vpop.permute.xlu0 %1652 }
 0x4f2   :  { %6062 = vst [vmem:[#allocation62_spill] sm:$0xff] %v4729_v61 }
 0x4f3   :  { %980 = vperm.xlu1 %3552, %v4489_v6  }
 0x4f4   :  { %v4734_v37 = vpop.permute.xlu1 %2000  ;;  %3617 = vset.pattern.permute.xlu0 %v6029_v46 }
 0x4f5   :  { %1068 = vperm.xlu0 %3617, %v4731_v14  }
 0x4f6   :  { %v4738_v34 = vpop.permute.xlu0 %2252 }
 0x4f7   :  { %6064 = vst [vmem:[#allocation64_spill] sm:$0xff] %v4738_v34  ;;  %3554 = vset.pattern.permute.xlu1 %v6021_v40 }
 0x4f8   :  { %1172 = vperm.xlu1 %3554, %v4489_v6  }
 0x4f9   :  { %v4742_v25 = vpop.permute.xlu1 %2480  ;;  %3619 = vset.pattern.permute.xlu0 %v6032_v12 }
 0x4fa   :  { %6065 = vst [vmem:[#allocation65_spill] sm:$0xff] %v4742_v25  ;;  %1308 = vperm.xlu0 %3619, %v4731_v14  }
 0x4fb   :  { %v4746_v42 = vpop.permute.xlu0 %2492 }
 0x4fc   :  { %6066 = vst [vmem:[#allocation66_spill] sm:$0xff] %v4746_v42  ;;  %3556 = vset.pattern.permute.xlu1 %v6022_v15 }
 0x4fd   :  { %1412 = vperm.xlu1 %3556, %v4489_v6  }
 0x4fe   :  { %v4750_v29 = vpop.permute.xlu1 %2600  ;;  %3624 = vset.pattern.permute.xlu0 %v6028_v13 }
 0x4ff   :  { %6067 = vst [vmem:[#allocation67_spill] sm:$0xff] %v4750_v29  ;;  %v907_v34 = vpop.permute.xlu0 %906  ;;  %1908 = vperm.xlu0 %3624, %v4731_v14   ;;  %v4763_v29 = vld [vmem:[#allocation4] sm:$0xff] }
 0x500   :  { %935 = vst.msk [vmem:[#allocation4 + $0x40] sm:$0xff] %vm926_vm8, %v907_v34  ;;  %v1191_v25 = vmul.f32 %v4315_v20, %v4763_v29 }
 0x501   :  { %3557 = vset.pattern.permute.xlu1 %v6056_v1 }
 0x502   :  { %1532 = vperm.xlu1 %3557, %v4489_v6  }
 0x503   :  { %v4757_v61 = vpop.permute.xlu1 %2720  ;;  %v4759_v42 = vpop.permute.xlu0 %984  ;;  %3630 = vset.pattern.permute.xlu0 %v6046_v3 }
 0x504   :  { %6068 = vst [vmem:[#allocation68_spill] sm:$0xff] %v4759_v42  ;;  %2628 = vperm.xlu0 %3630, %v4731_v14   ;;  %v1431_v42 = vmul.f32 %v4323_v59, %v4763_v29  ;;  %v1671_v59 = vmul.f32 %v4331_v63, %v4763_v29  ;;  %v1911_v63 = vmul.f32 %v4358_v32, %v4763_v29 }
 0x506   :  { %3559 = vset.pattern.permute.xlu1 %v6036_v60 }
 0x507   :  { %v901_v34 = vpop.permute.xlu1 %900  ;;  %1772 = vperm.xlu1 %3559, %v4489_v6  }
 0x508   :  { %932 = vst.msk [vmem:[#allocation4 + $0x28] sm:$0xff] %vm926_vm8, %v901_v34  ;;  %v4770_v23 = vpop.permute.xlu0 %1176  ;;  %1215 = vrot.lane.b32.xlu0 %v1191_v25, %s3741_s25  ;;  %v1551_v34 = vmul.f32 %v4349_v18, %v4763_v29  ;;  %v1791_v18 = vmul.f32 %v4339_v9, %v4763_v29  ;;  %v2031_v9 = vmul.f32 %v4351_v58, %v4763_v29 }
 0x509   :  { %3632 = vset.pattern.permute.xlu0 %v6019_v39  ;;  %v2271_v58 = vmul.f32 %v4366_v33, %v4763_v29 }
 0x50b   :  { %v4776_v14 = vpop.permute.xlu1 %972  ;;  %3560 = vset.pattern.permute.xlu1 %v6028_v13 }
 0x50c   :  { %6069 = vst [vmem:[#allocation69_spill] sm:$0xff] %v4776_v14  ;;  %1892 = vperm.xlu1 %3560, %v4489_v6   ;;  %1455 = vrot.lane.b32.xlu0 %v1431_v42, %s3757_s26 }
 0x50d   :  { %v4781_v20 = vpop.permute.xlu0 %1416 }
 0x510   :  { %v4785_v25 = vpop.permute.xlu1 %1164  ;;  %3561 = vset.pattern.permute.xlu1 %v6023_v5  ;;  %1575 = vrot.lane.b32.xlu0 %v1551_v34, %s3758_s27 }
 0x511   :  { %6070 = vst [vmem:[#allocation70_spill] sm:$0xff] %v4785_v25  ;;  %2012 = vperm.xlu1 %3561, %v4489_v6  }
 0x512   :  { %v4792_v14 = vpop.permute.xlu0 %2016 }
 0x514   :  { %1695 = vrot.lane.b32.xlu0 %v1671_v59, %s3759_s11 }
 0x515   :  { %v4795_v42 = vpop.permute.xlu1 %1404  ;;  %3562 = vset.pattern.permute.xlu1 %v6031_v31 }
 0x516   :  { %6071 = vst [vmem:[#allocation71_spill] sm:$0xff] %v4795_v42  ;;  %2132 = vperm.xlu1 %3562, %v4489_v6  }
 0x517   :  { %v4801_v34 = vpop.permute.xlu0 %2256 }
 0x518   :  { %1815 = vrot.lane.b32.xlu0 %v1791_v18, %s3760_s28  ;;  %v2151_v18 = vmul.f32 %v4360_v26, %v4763_v29  ;;  %v2391_v26 = vmul.f32 %v4368_v21, %v4763_v29  ;;  %v2631_v21 = vmul.f32 %v4378_v36, %v4763_v29 }
 0x51a   :  { %v4806_v25 = vpop.permute.xlu1 %1644  ;;  %3564 = vset.pattern.permute.xlu1 %v6035_v48 }
 0x51b   :  { %6072 = vst [vmem:[#allocation72_spill] sm:$0xff] %v4806_v25  ;;  %2372 = vperm.xlu1 %3564, %v4489_v6  }
 0x51c   :  { %v4810_v59 = vpop.permute.xlu0 %2736  ;;  %1935 = vrot.lane.b32.xlu0 %v1911_v63, %s3761_s29 }
 0x51f   :  { %v4815_v42 = vpop.permute.xlu1 %1884  ;;  %3566 = vset.pattern.permute.xlu1 %v6046_v3 }
 0x520   :  { %2612 = vperm.xlu1 %3566, %v4489_v6   ;;  %2055 = vrot.lane.b32.xlu0 %v2031_v9, %s3762_s30 }
 0x521   :  { %v4820_v32 = vpop.permute.xlu0 %1060 }
 0x524   :  { %v4824_v25 = vpop.permute.xlu1 %2124  ;;  %3567 = vset.pattern.permute.xlu1 %v6019_v39  ;;  %2175 = vrot.lane.b32.xlu0 %v2151_v18, %s3763_s10 }
 0x525   :  { %2732 = vperm.xlu1 %3567, %v4489_v6   ;;  %v2511_v6 = vmul.f32 %v4376_v35, %v4763_v29 }
 0x526   :  { %v4831_v63 = vpop.permute.xlu0 %1300 }
 0x528   :  { %2295 = vrot.lane.b32.xlu0 %v2271_v58, %s3764_s12 }
 0x529   :  { %v4834_v9 = vpop.permute.xlu1 %2244  ;;  %3569 = vset.pattern.permute.xlu1 %v6029_v46 }
 0x52a   :  { %1056 = vperm.xlu1 %3569, %v4531_v27  }
 0x52b   :  { %v4840_v18 = vpop.permute.xlu0 %1660 }
 0x52c   :  { %6073 = vst [vmem:[#allocation73_spill] sm:$0xff] %v4840_v18  ;;  %2415 = vrot.lane.b32.xlu0 %v2391_v26, %s3765_s2  ;;  %v2751_v26 = vmul.f32 %v4386_v49, %v4763_v29 }
 0x52e   :  { %v4845_v33 = vpop.permute.xlu1 %2364  ;;  %3571 = vset.pattern.permute.xlu1 %v6032_v12 }
 0x52f   :  { %6074 = vst [vmem:[#allocation74_spill] sm:$0xff] %v4845_v33  ;;  %1296 = vperm.xlu1 %3571, %v4531_v27  }
 0x530   :  { %v4849_v58 = vpop.permute.xlu0 %1780  ;;  %2535 = vrot.lane.b32.xlu0 %v2511_v6, %s3766_s13 }
 0x531   :  { %6075 = vst [vmem:[#allocation75_spill] sm:$0xff] %v4849_v58  ;;  %v4863_v58 = vld [vmem:[#allocation4 + $0x8] sm:$0xff] }
 0x532   :  { %v1072_v36 = vmul.f32 %v4410_v50, %v4863_v58  ;;  %v1312_v49 = vmul.f32 %v4419_v2, %v4863_v58 }
 0x533   :  { %v4854_v18 = vpop.permute.xlu1 %2484  ;;  %3573 = vset.pattern.permute.xlu1 %v6056_v1 }
 0x534   :  { %6076 = vst [vmem:[#allocation76_spill] sm:$0xff] %v4854_v18  ;;  %1536 = vperm.xlu1 %3573, %v4531_v27   ;;  %2655 = vrot.lane.b32.xlu0 %v2631_v21, %s3767_s3 }
 0x535   :  { %v4859_v35 = vpop.permute.xlu0 %1900 }
 0x536   :  { %6077 = vst [vmem:[#allocation77_spill] sm:$0xff] %v4859_v35 }
 0x538   :  { %v4865_v6 = vpop.permute.xlu1 %2724  ;;  %3574 = vset.pattern.permute.xlu1 %v6026_v45  ;;  %2775 = vrot.lane.b32.xlu0 %v2751_v26, %s3768_s14  ;;  %v4884_v26 = vld [vmem:[#allocation4 + $0x10] sm:$0xff] }
 0x539   :  { %6078 = vst [vmem:[#allocation78_spill] sm:$0xff] %v4865_v6  ;;  %1656 = vperm.xlu1 %3574, %v4531_v27   ;;  %v1193_v50 = vmul.f32 %v4522_v38, %v4884_v26  ;;  %v1433_v2 = vmul.f32 %v4541_v16, %v4884_v26  ;;  %v1673_v16 = vmul.f32 %v4438_v43, %v4884_v26 }
 0x53a   :  { %v4872_v21 = vpop.permute.xlu0 %2380 }
 0x53b   :  { %6079 = vst [vmem:[#allocation79_spill] sm:$0xff] %v4872_v21 }
 0x53c   :  { %1097 = vrot.lane.b32.xlu0 %v1072_v36, %s3740_s1 }
 0x53d   :  { %v4875_v35 = vpop.permute.xlu1 %1048  ;;  %3575 = vset.pattern.permute.xlu1 %v6036_v60 }
 0x53e   :  { %6080 = vst [vmem:[#allocation80_spill] sm:$0xff] %v4875_v35  ;;  %1776 = vperm.xlu1 %3575, %v4531_v27  }
 0x53f   :  { %v4881_v6 = vpop.permute.xlu0 %2500 }
 0x540   :  { %6081 = vst [vmem:[#allocation81_spill] sm:$0xff] %v4881_v6  ;;  %1337 = vrot.lane.b32.xlu0 %v1312_v49, %s3769_s15  ;;  %v1553_v49 = vmul.f32 %v4548_v55, %v4884_v26 }
 0x542   :  { %v4888_v36 = vpop.permute.xlu1 %1288  ;;  %3576 = vset.pattern.permute.xlu1 %v6028_v13 }
 0x543   :  { %6082 = vst [vmem:[#allocation82_spill] sm:$0xff] %v4888_v36  ;;  %1896 = vperm.xlu1 %3576, %v4531_v27   ;;  %v2393_v36 = vmul.f32 %v4594_v11, %v4884_v26  ;;  %v2633_v11 = vmul.f32 %v4610_v22, %v4884_v26 }
 0x544   :  { %v4892_v21 = vpop.permute.xlu0 %2620  ;;  %1219 = vrot.lane.b32.xlu0 %v1193_v50, %s3741_s25 }
 0x545   :  { %6083 = vst [vmem:[#allocation83_spill] sm:$0xff] %v4892_v21 }
 0x547   :  { %v4897_v6 = vpop.permute.xlu1 %1648  ;;  %3578 = vset.pattern.permute.xlu1 %v6031_v31 }
 0x548   :  { %2136 = vperm.xlu1 %3578, %v4531_v27   ;;  %v911_v38 = vpop.permute.xlu0 %910  ;;  %1459 = vrot.lane.b32.xlu0 %v1433_v2, %s3757_s26 }
 0x549   :  { %937 = vst.msk [vmem:[#allocation4 + $0x50] sm:$0xff] %vm926_vm8, %v911_v38  ;;  %v1793_v38 = vmul.f32 %v4558_v56, %v4884_v26  ;;  %v2033_v56 = vmul.f32 %v4574_v19, %v4884_v26  ;;  %v2273_v19 = vmul.f32 %v4582_v10, %v4884_v26  ;;  %v2513_v10 = vmul.f32 %v4602_v24, %v4884_v26 }
 0x54a   :  { %v2753_v24 = vmul.f32 %v4458_v30, %v4884_v26 }
 0x54c   :  { %v4905_v21 = vpop.permute.xlu1 %1888  ;;  %3580 = vset.pattern.permute.xlu1 %v6035_v48  ;;  %v4908_v50 = vpop.permute.xlu0 %992  ;;  %1579 = vrot.lane.b32.xlu0 %v1553_v49, %s3758_s27  ;;  %v1913_v49 = vmul.f32 %v4566_v8, %v4884_v26  ;;  %v2153_v8 = vmul.f32 %v4446_v52, %v4884_v26 }
 0x54d   :  { %6084 = vst [vmem:[#allocation84_spill] sm:$0xff] %v4908_v50  ;;  %2376 = vperm.xlu1 %3580, %v4531_v27  }
 0x550   :  { %1699 = vrot.lane.b32.xlu0 %v1673_v16, %s3759_s11 }
 0x551   :  { %v4915_v2 = vpop.permute.xlu1 %2008  ;;  %3581 = vset.pattern.permute.xlu1 %v6039_v62  ;;  %v4918_v55 = vpop.permute.xlu0 %1184 }
 0x552   :  { %2496 = vperm.xlu1 %3581, %v4531_v27  }
 0x554   :  { %1819 = vrot.lane.b32.xlu0 %v1793_v38, %s3760_s28 }
 0x556   :  { %v4926_v50 = vpop.permute.xlu1 %2128  ;;  %3582 = vset.pattern.permute.xlu1 %v6046_v3  ;;  %v4929_v43 = vpop.permute.xlu0 %1424 }
 0x557   :  { %2616 = vperm.xlu1 %3582, %v4531_v27  }
 0x558   :  { %1939 = vrot.lane.b32.xlu0 %v1913_v49, %s3761_s29 }
 0x55b   :  { %v4935_v16 = vpop.permute.xlu1 %2248  ;;  %908 = vrot.lane.b32.xlu1 %v4591_v41, %s3743_s4  ;;  %v4939_v38 = vpop.permute.xlu0 %1544 }
 0x55c   :  { %2059 = vrot.lane.b32.xlu0 %v2033_v56, %s3762_s30  ;;  %3584 = vset.pattern.permute.xlu1 %v6018_v47 }
 0x55f   :  { %988 = vperm.xlu1 %3584, %v4591_v41  }
 0x560   :  { %v4946_v27 = vpop.permute.xlu1 %2488  ;;  %v4948_v49 = vpop.permute.xlu0 %1664  ;;  %2179 = vrot.lane.b32.xlu0 %v2153_v8, %s3763_s10 }
 0x563   :  { %3586 = vset.pattern.permute.xlu1 %v6021_v40 }
 0x564   :  { %1180 = vperm.xlu1 %3586, %v4591_v41   ;;  %2299 = vrot.lane.b32.xlu0 %v2273_v19, %s3764_s12 }
 0x565   :  { %v4956_v56 = vpop.permute.xlu1 %2608  ;;  %v4958_v52 = vpop.permute.xlu0 %2144 }
 0x568   :  { %3588 = vset.pattern.permute.xlu1 %v6022_v15  ;;  %2419 = vrot.lane.b32.xlu0 %v2393_v36, %s3765_s2 }
 0x569   :  { %1420 = vperm.xlu1 %3588, %v4591_v41  }
 0x56a   :  { %v4967_v8 = vpop.permute.xlu1 %2728  ;;  %v4969_v35 = vpop.permute.xlu0 %2264 }
 0x56c   :  { %2539 = vrot.lane.b32.xlu0 %v2513_v10, %s3766_s13  ;;  %v4985_v10 = vld [vmem:[#allocation4 + $0x18] sm:$0xff] }
 0x56d   :  { %3589 = vset.pattern.permute.xlu1 %v6056_v1 }
 0x56e   :  { %v905_v19 = vpop.permute.xlu1 %904  ;;  %1540 = vperm.xlu1 %3589, %v4591_v41  }
 0x56f   :  { %934 = vst.msk [vmem:[#allocation4 + $0x38] sm:$0xff] %vm926_vm8, %v905_v19  ;;  %v4977_v36 = vpop.permute.xlu0 %2384  ;;  %v1074_v19 = vmul.f32 %v4467_v28, %v4985_v10 }
 0x570   :  { %2659 = vrot.lane.b32.xlu0 %v2633_v11, %s3767_s3  ;;  %v1314_v11 = vmul.f32 %v4475_v44, %v4985_v10 }
 0x572   :  { %v4982_v18 = vpop.permute.xlu1 %980  ;;  %3593 = vset.pattern.permute.xlu1 %v6023_v5 }
 0x573   :  { %6085 = vst [vmem:[#allocation85_spill] sm:$0xff] %v4982_v18  ;;  %2020 = vperm.xlu1 %3593, %v4591_v41   ;;  %v5002_v18 = vld [vmem:[#allocation4 + $0x20] sm:$0xff] }
 0x574   :  { %2779 = vrot.lane.b32.xlu0 %v2753_v24, %s3768_s14  ;;  %v4989_v22 = vpop.permute.xlu0 %1068  ;;  %v1195_v28 = vmul.f32 %v4555_v4, %v5002_v18  ;;  %v1435_v44 = vmul.f32 %v4562_v57, %v5002_v18  ;;  %v1555_v4 = vmul.f32 %v4706_v53, %v5002_v18 }
 0x577   :  { %v4993_v33 = vpop.permute.xlu1 %1172  ;;  %3594 = vset.pattern.permute.xlu1 %v6031_v31 }
 0x578   :  { %6086 = vst [vmem:[#allocation86_spill] sm:$0xff] %v4993_v33  ;;  %2140 = vperm.xlu1 %3594, %v4591_v41   ;;  %1101 = vrot.lane.b32.xlu0 %v1074_v19, %s3740_s1 }
 0x579   :  { %v4998_v30 = vpop.permute.xlu0 %1308 }
 0x57c   :  { %v5004_v24 = vpop.permute.xlu1 %1412  ;;  %3595 = vset.pattern.permute.xlu1 %v6024_v54  ;;  %1341 = vrot.lane.b32.xlu0 %v1314_v11, %s3769_s15 }
 0x57d   :  { %6087 = vst [vmem:[#allocation87_spill] sm:$0xff] %v5004_v24  ;;  %2260 = vperm.xlu1 %3595, %v4591_v41  }
 0x57e   :  { %v5011_v33 = vpop.permute.xlu0 %1908 }
 0x57f   :  { %6088 = vst [vmem:[#allocation88_spill] sm:$0xff] %v5011_v33 }
 0x580   :  { %1223 = vrot.lane.b32.xlu0 %v1195_v28, %s3741_s25 }
 0x581   :  { %v5014_v19 = vpop.permute.xlu1 %1532  ;;  %3599 = vset.pattern.permute.xlu1 %v6019_v39 }
 0x582   :  { %6089 = vst [vmem:[#allocation89_spill] sm:$0xff] %v5014_v19  ;;  %2740 = vperm.xlu1 %3599, %v4591_v41   ;;  %v1675_v41 = vmul.f32 %v4570_v0, %v5002_v18  ;;  %v1915_v0 = vmul.f32 %v4722_v7, %v5002_v18 }
 0x583   :  { %v5020_v24 = vpop.permute.xlu0 %2628 }
 0x584   :  { %6090 = vst [vmem:[#allocation90_spill] sm:$0xff] %v5020_v24  ;;  %1463 = vrot.lane.b32.xlu0 %v1435_v44, %s3757_s26 }
 0x586   :  { %v5025_v11 = vpop.permute.xlu1 %1772  ;;  %3601 = vset.pattern.permute.xlu1 %v6029_v46  ;;  %v1795_v46 = vmul.f32 %v4714_v51, %v5002_v18  ;;  %v2035_v51 = vmul.f32 %v4734_v37, %v5002_v18 }
 0x587   :  { %6091 = vst [vmem:[#allocation91_spill] sm:$0xff] %v5025_v11  ;;  %1064 = vperm.xlu1 %3601, %v4654_v17   ;;  %v5029_v28 = vpop.permute.xlu0 %1215  ;;  %v5124_v11 = vld [vmem:[#allocation4 + $0x30] sm:$0xff] }
 0x588   :  { %1583 = vrot.lane.b32.xlu0 %v1555_v4, %s3758_s27 }
 0x58b   :  { %v5034_v57 = vpop.permute.xlu1 %1892  ;;  %3603 = vset.pattern.permute.xlu1 %v6032_v12  ;;  %v5037_v44 = vpop.permute.xlu0 %1455 }
 0x58c   :  { %6092 = vst [vmem:[#allocation92_spill] sm:$0xff] %v5034_v57  ;;  %1304 = vperm.xlu1 %3603, %v4654_v17   ;;  %1703 = vrot.lane.b32.xlu0 %v1675_v41, %s3759_s11 }
 0x58f   :  { %v5043_v53 = vpop.permute.xlu0 %1575 }
 0x590   :  { %v5045_v24 = vpop.permute.xlu1 %2012  ;;  %3607 = vset.pattern.permute.xlu1 %v6036_v60  ;;  %1823 = vrot.lane.b32.xlu0 %v1795_v46, %s3760_s28  ;;  %v6095_v46 = vld [vmem:[#allocation35_spill] sm:$0xff] }
 0x591   :  { %6093 = vst [vmem:[#allocation93_spill] sm:$0xff] %v5045_v24  ;;  %1784 = vperm.xlu1 %3607, %v4654_v17   ;;  %v2155_v7 = vmul.f32 %v6095_v46, %v5002_v18  ;;  %v6099_v46 = vld [vmem:[#allocation37_spill] sm:$0xff] }
 0x593   :  { %v5052_v12 = vpop.permute.xlu0 %1695 }
 0x594   :  { %1943 = vrot.lane.b32.xlu0 %v1915_v0, %s3761_s29 }
 0x595   :  { %v5055_v4 = vpop.permute.xlu1 %2132  ;;  %3608 = vset.pattern.permute.xlu1 %v6028_v13  ;;  %v6097_v13 = vld [vmem:[#allocation36_spill] sm:$0xff] }
 0x596   :  { %6094 = vst [vmem:[#allocation94_spill] sm:$0xff] %v5055_v4  ;;  %1904 = vperm.xlu1 %3608, %v4654_v17   ;;  %v2275_v37 = vmul.f32 %v6097_v13, %v5002_v18 }
 0x597   :  { %v5061_v41 = vpop.permute.xlu0 %1815 }
 0x598   :  { %2063 = vrot.lane.b32.xlu0 %v2035_v51, %s3762_s30 }
 0x59a   :  { %v5066_v33 = vpop.permute.xlu1 %2372  ;;  %3609 = vset.pattern.permute.xlu1 %v6023_v5 }
 0x59b   :  { %6096 = vst [vmem:[#allocation35_spill] sm:$0xff] %v5066_v33  ;;  %2024 = vperm.xlu1 %3609, %v4654_v17   ;;  %v5070_v0 = vpop.permute.xlu0 %1935  ;;  %v2395_v33 = vmul.f32 %v6099_v46, %v5002_v18 }
 0x59c   :  { %2183 = vrot.lane.b32.xlu0 %v2155_v7, %s3763_s10  ;;  %v6101_v7 = vld [vmem:[#allocation65_spill] sm:$0xff] }
 0x59d   :  { %v2515_v13 = vmul.f32 %v6101_v7, %v5002_v18 }
 0x59f   :  { %v5075_v4 = vpop.permute.xlu1 %2612  ;;  %3613 = vset.pattern.permute.xlu1 %v6039_v62  ;;  %v5078_v51 = vpop.permute.xlu0 %2055 }
 0x5a0   :  { %6098 = vst [vmem:[#allocation36_spill] sm:$0xff] %v5075_v4  ;;  %2504 = vperm.xlu1 %3613, %v4654_v17   ;;  %2303 = vrot.lane.b32.xlu0 %v2275_v37, %s3764_s12  ;;  %v6103_v37 = vld [vmem:[#allocation67_spill] sm:$0xff] }
 0x5a1   :  { %v2635_v46 = vmul.f32 %v6103_v37, %v5002_v18 }
 0x5a3   :  { %v5091_v4 = vpop.permute.xlu0 %2175 }
 0x5a4   :  { %v5084_v24 = vpop.permute.xlu1 %2732  ;;  %3614 = vset.pattern.permute.xlu1 %v6046_v3  ;;  %2423 = vrot.lane.b32.xlu0 %v2395_v33, %s3765_s2  ;;  %v2755_v33 = vmul.f32 %v4757_v61, %v5002_v18  ;;  %v6108_v61 = vld [vmem:[#allocation39_spill] sm:$0xff] }
 0x5a5   :  { %6100 = vst [vmem:[#allocation37_spill] sm:$0xff] %v5084_v24  ;;  %2624 = vperm.xlu1 %3614, %v4654_v17  }
 0x5a7   :  { %v5100_v3 = vpop.permute.xlu0 %2295 }
 0x5a8   :  { %2543 = vrot.lane.b32.xlu0 %v2515_v13, %s3766_s13  ;;  %v6105_v13 = vld [vmem:[#allocation63_spill] sm:$0xff] }
 0x5a9   :  { %v5094_v57 = vpop.permute.xlu1 %1056  ;;  %3615 = vset.pattern.permute.xlu1 %v6019_v39 }
 0x5aa   :  { %6102 = vst [vmem:[#allocation65_spill] sm:$0xff] %v5094_v57  ;;  %2744 = vperm.xlu1 %3615, %v4654_v17   ;;  %v5109_v57 = vld [vmem:[#allocation4 + $0x28] sm:$0xff]  ;;  %v6107_v17 = vld [vmem:[#allocation38_spill] sm:$0xff] }
 0x5ab   :  { %v5113_v37 = vpop.permute.xlu0 %2415 }
 0x5ac   :  { %2663 = vrot.lane.b32.xlu0 %v2635_v46, %s3767_s3  ;;  %6106 = vst [vmem:[#allocation63_spill] sm:$0xff] %v5113_v37  ;;  %v1076_v46 = vmul.f32 %v6107_v17, %v5109_v57  ;;  %v6109_v17 = vld [vmem:[#allocation51_spill] sm:$0xff] }
 0x5ad   :  { %v1197_v19 = vmul.f32 %v6109_v17, %v5124_v11 }
 0x5ae   :  { %v5105_v7 = vpop.permute.xlu1 %1296  ;;  %912 = vrot.lane.b32.xlu1 %v6105_v13, %s3743_s4 }
 0x5af   :  { %6104 = vst [vmem:[#allocation67_spill] sm:$0xff] %v5105_v7  ;;  %3616 = vset.pattern.permute.xlu1 %v6018_v47  ;;  %v1316_v7 = vmul.f32 %v6108_v61, %v5109_v57  ;;  %v5127_v47 = vpop.permute.xlu0 %2535 }
 0x5b0   :  { %2783 = vrot.lane.b32.xlu0 %v2755_v33, %s3768_s14 }
 0x5b2   :  { %996 = vperm.xlu1 %3616, %v6105_v13  }
 0x5b3   :  { %v5118_v24 = vpop.permute.xlu1 %1536  ;;  %v5141_v37 = vpop.permute.xlu0 %2655 }
 0x5b4   :  { %1105 = vrot.lane.b32.xlu0 %v1076_v46, %s3740_s1  ;;  %v6110_v46 = vld [vmem:[#allocation53_spill] sm:$0xff]  ;;  %6111 = vst [vmem:[#allocation38_spill] sm:$0xff] %v5141_v37 }
 0x5b5   :  { %v1437_v61 = vmul.f32 %v6110_v46, %v5124_v11  ;;  %v1677_v46 = vmul.f32 %v4897_v6, %v5124_v11 }
 0x5b6   :  { %3618 = vset.pattern.permute.xlu1 %v6021_v40 }
 0x5b7   :  { %1188 = vperm.xlu1 %3618, %v6105_v13  }
 0x5b8   :  { %v5129_v33 = vpop.permute.xlu1 %1656  ;;  %1345 = vrot.lane.b32.xlu0 %v1316_v7, %s3769_s15  ;;  %v6112_v7 = vld [vmem:[#allocation55_spill] sm:$0xff] }
 0x5bb   :  { %3620 = vset.pattern.permute.xlu1 %v6022_v15  ;;  %v1557_v15 = vmul.f32 %v6112_v7, %v5124_v11 }
 0x5bc   :  { %1227 = vrot.lane.b32.xlu0 %v1197_v19, %s3741_s25  ;;  %1428 = vperm.xlu1 %3620, %v6105_v13   ;;  %v5150_v19 = vpop.permute.xlu0 %2775 }
 0x5bd   :  { %v5137_v40 = vpop.permute.xlu1 %1776 }
 0x5c0   :  { %1467 = vrot.lane.b32.xlu0 %v1437_v61, %s3757_s26  ;;  %3621 = vset.pattern.permute.xlu1 %v6056_v1  ;;  %v6113_v1 = vld [vmem:[#allocation57_spill] sm:$0xff]  ;;  %v5162_v37 = vpop.permute.xlu0 %1097 }
 0x5c1   :  { %1548 = vperm.xlu1 %3621, %v6105_v13   ;;  %v1797_v7 = vmul.f32 %v6113_v1, %v5124_v11 }
 0x5c2   :  { %v5148_v17 = vpop.permute.xlu1 %1896 }
 0x5c4   :  { %1587 = vrot.lane.b32.xlu0 %v1557_v15, %s3758_s27  ;;  %v5172_v6 = vpop.permute.xlu0 %1337 }
 0x5c5   :  { %3622 = vset.pattern.permute.xlu1 %v6026_v45  ;;  %v1917_v45 = vmul.f32 %v4905_v21, %v5124_v11 }
 0x5c6   :  { %1668 = vperm.xlu1 %3622, %v6105_v13  }
 0x5c7   :  { %v5157_v61 = vpop.permute.xlu1 %2136 }
 0x5c8   :  { %1707 = vrot.lane.b32.xlu0 %v1677_v46, %s3759_s11  ;;  %v5185_v21 = vpop.permute.xlu0 %1219 }
 0x5ca   :  { %3623 = vset.pattern.permute.xlu1 %v6036_v60  ;;  %v2037_v60 = vmul.f32 %v4915_v2, %v5124_v11  ;;  %v2277_v2 = vmul.f32 %v4935_v16, %v5124_v11 }
 0x5cb   :  { %1788 = vperm.xlu1 %3623, %v6105_v13  }
 0x5cc   :  { %v5166_v15 = vpop.permute.xlu1 %2376  ;;  %1827 = vrot.lane.b32.xlu0 %v1797_v7, %s3760_s28 }
 0x5cf   :  { %3625 = vset.pattern.permute.xlu1 %v6023_v5  ;;  %v2157_v5 = vmul.f32 %v4926_v50, %v5124_v11  ;;  %v6114_v50 = vld [vmem:[#allocation59_spill] sm:$0xff] }
 0x5d0   :  { %1947 = vrot.lane.b32.xlu0 %v1917_v45, %s3761_s29  ;;  %2028 = vperm.xlu1 %3625, %v6105_v13   ;;  %v2397_v45 = vmul.f32 %v6114_v50, %v5124_v11 }
 0x5d1   :  { %v5176_v46 = vpop.permute.xlu1 %2496 }
 0x5d4   :  { %2067 = vrot.lane.b32.xlu0 %v2037_v60, %s3762_s30  ;;  %3626 = vset.pattern.permute.xlu1 %v6031_v31  ;;  %v5195_v31 = vpop.permute.xlu0 %1459 }
 0x5d5   :  { %2148 = vperm.xlu1 %3626, %v6105_v13  }
 0x5d6   :  { %v5187_v1 = vpop.permute.xlu1 %2616 }
 0x5d8   :  { %2187 = vrot.lane.b32.xlu0 %v2157_v5, %s3763_s10  ;;  %v5207_v16 = vpop.permute.xlu0 %1579 }
 0x5d9   :  { %3627 = vset.pattern.permute.xlu1 %v6024_v54  ;;  %v2517_v54 = vmul.f32 %v4946_v27, %v5124_v11  ;;  %v6118_v27 = vld [vmem:[#allocation9_spill] sm:$0xff] }
 0x5da   :  { %v909_v7 = vpop.permute.xlu1 %908  ;;  %2268 = vperm.xlu1 %3627, %v6105_v13   ;;  %v1071_v50 = vmul.f32 %v6118_v27, %v4763_v29 }
 0x5db   :  { %936 = vst.msk [vmem:[#allocation4 + $0x48] sm:$0xff] %vm926_vm8, %v909_v7 }
 0x5dc   :  { %2307 = vrot.lane.b32.xlu0 %v2277_v2, %s3764_s12  ;;  %v5216_v2 = vpop.permute.xlu0 %1699 }
 0x5de   :  { %v5200_v60 = vpop.permute.xlu1 %988  ;;  %3628 = vset.pattern.permute.xlu1 %v6035_v48  ;;  %v2637_v48 = vmul.f32 %v4956_v56, %v5124_v11 }
 0x5df   :  { %6115 = vst [vmem:[#allocation39_spill] sm:$0xff] %v5200_v60  ;;  %2388 = vperm.xlu1 %3628, %v6105_v13  }
 0x5e0   :  { %2427 = vrot.lane.b32.xlu0 %v2397_v45, %s3765_s2  ;;  %v5227_v45 = vld [vmem:[#allocation4 + $0x38] sm:$0xff] }
 0x5e3   :  { %v5209_v5 = vpop.permute.xlu1 %1180  ;;  %3629 = vset.pattern.permute.xlu1 %v6039_v62  ;;  %v2757_v62 = vmul.f32 %v4967_v8, %v5124_v11 }
 0x5e4   :  { %6116 = vst [vmem:[#allocation51_spill] sm:$0xff] %v5209_v5  ;;  %2547 = vrot.lane.b32.xlu0 %v2517_v54, %s3766_s13  ;;  %2508 = vperm.xlu1 %3629, %v6105_v13   ;;  %v5233_v54 = vpop.permute.xlu0 %1819 }
 0x5e8   :  { %v5218_v7 = vpop.permute.xlu1 %1420  ;;  %2667 = vrot.lane.b32.xlu0 %v2637_v48, %s3767_s3  ;;  %3631 = vset.pattern.permute.xlu1 %v6019_v39  ;;  %v6120_v39 = vld [vmem:[#allocation60_spill] sm:$0xff]  ;;  %v5249_v5 = vpop.permute.xlu0 %1939 }
 0x5e9   :  { %6117 = vst [vmem:[#allocation53_spill] sm:$0xff] %v5218_v7  ;;  %2748 = vperm.xlu1 %3631, %v6105_v13   ;;  %v1078_v48 = vmul.f32 %v6120_v39, %v5227_v45  ;;  %v6121_v13 = vld [vmem:[#allocation10_spill] sm:$0xff] }
 0x5ea   :  { %v1311_v60 = vmul.f32 %v6121_v13, %v4763_v29 }
 0x5ec   :  { %2787 = vrot.lane.b32.xlu0 %v2757_v62, %s3768_s14  ;;  %v6123_v62 = vld [vmem:[#allocation61_spill] sm:$0xff] }
 0x5ed   :  { %v5230_v56 = vpop.permute.xlu1 %1540  ;;  %1095 = vrot.lane.b32.xlu1 %v1071_v50, %s3740_s1  ;;  %v1318_v27 = vmul.f32 %v6123_v62, %v5227_v45  ;;  %v6124_v50 = vld [vmem:[#allocation11_spill] sm:$0xff] }
 0x5ee   :  { %6119 = vst [vmem:[#allocation55_spill] sm:$0xff] %v5230_v56  ;;  %v5245_v56 = vld [vmem:[#allocation4 + $0x40] sm:$0xff]  ;;  %v1192_v7 = vmul.f32 %v6124_v50, %v4863_v58  ;;  %v5263_v50 = vpop.permute.xlu0 %2059 }
 0x5ef   :  { %v1199_v39 = vmul.f32 %v4770_v23, %v5245_v56  ;;  %v1439_v62 = vmul.f32 %v4781_v20, %v5245_v56  ;;  %v1559_v23 = vmul.f32 %v5118_v24, %v5245_v56  ;;  %v1799_v24 = vmul.f32 %v5137_v40, %v5245_v56 }
 0x5f0   :  { %1109 = vrot.lane.b32.xlu0 %v1078_v48, %s3740_s1  ;;  %v6126_v48 = vld [vmem:[#allocation12_spill] sm:$0xff] }
 0x5f1   :  { %1335 = vrot.lane.b32.xlu1 %v1311_v60, %s3769_s15  ;;  %v1432_v13 = vmul.f32 %v6126_v48, %v4863_v58 }
 0x5f2   :  { %v5241_v8 = vpop.permute.xlu1 %2020 }
 0x5f3   :  { %6122 = vst [vmem:[#allocation57_spill] sm:$0xff] %v5241_v8 }
 0x5f4   :  { %1349 = vrot.lane.b32.xlu0 %v1318_v27, %s3769_s15  ;;  %v6127_v27 = vld [vmem:[#allocation17_spill] sm:$0xff] }
 0x5f5   :  { %1217 = vrot.lane.b32.xlu1 %v1192_v7, %s3741_s25  ;;  %v1552_v7 = vmul.f32 %v6127_v27, %v4863_v58  ;;  %v1679_v27 = vmul.f32 %v5129_v33, %v5245_v56  ;;  %v1919_v33 = vmul.f32 %v5148_v17, %v5245_v56  ;;  %v2159_v17 = vmul.f32 %v5157_v61, %v5245_v56 }
 0x5f6   :  { %v2399_v61 = vmul.f32 %v5166_v15, %v5245_v56 }
 0x5f7   :  { %v5255_v60 = vpop.permute.xlu1 %2140 }
 0x5f8   :  { %6125 = vst [vmem:[#allocation59_spill] sm:$0xff] %v5255_v60  ;;  %1231 = vrot.lane.b32.xlu0 %v1199_v39, %s3741_s25  ;;  %v6129_v39 = vld [vmem:[#allocation14_spill] sm:$0xff] }
 0x5f9   :  { %1457 = vrot.lane.b32.xlu1 %v1432_v13, %s3757_s26  ;;  %v1672_v48 = vmul.f32 %v6129_v39, %v4863_v58  ;;  %v5275_v13 = vpop.permute.xlu0 %2179 }
 0x5fc   :  { %v5267_v8 = vpop.permute.xlu1 %2260  ;;  %1471 = vrot.lane.b32.xlu0 %v1439_v62, %s3757_s26  ;;  %v6131_v62 = vld [vmem:[#allocation18_spill] sm:$0xff] }
 0x5fd   :  { %6128 = vst [vmem:[#allocation9_spill] sm:$0xff] %v5267_v8  ;;  %1577 = vrot.lane.b32.xlu1 %v1552_v7, %s3758_s27  ;;  %v1792_v7 = vmul.f32 %v6131_v62, %v4863_v58  ;;  %v5289_v39 = vpop.permute.xlu0 %2299 }
 0x600   :  { %1591 = vrot.lane.b32.xlu0 %v1559_v23, %s3758_s27 }
 0x601   :  { %v5278_v20 = vpop.permute.xlu1 %2740  ;;  %1697 = vrot.lane.b32.xlu1 %v1672_v48, %s3759_s11  ;;  %v5303_v40 = vpop.permute.xlu0 %2419 }
 0x602   :  { %6130 = vst [vmem:[#allocation60_spill] sm:$0xff] %v5278_v20  ;;  %v6133_v20 = vld [vmem:[#allocation19_spill] sm:$0xff] }
 0x603   :  { %v1912_v48 = vmul.f32 %v6133_v20, %v4863_v58  ;;  %v2039_v20 = vmul.f32 %v4792_v14, %v5245_v56  ;;  %v2279_v14 = vmul.f32 %v4801_v34, %v5245_v56  ;;  %v2519_v34 = vmul.f32 %v5176_v46, %v5245_v56 }
 0x604   :  { %1711 = vrot.lane.b32.xlu0 %v1679_v27, %s3759_s11  ;;  %v6134_v27 = vld [vmem:[#allocation20_spill] sm:$0xff] }
 0x605   :  { %1817 = vrot.lane.b32.xlu1 %v1792_v7, %s3760_s28  ;;  %v2032_v62 = vmul.f32 %v6134_v27, %v4863_v58  ;;  %v5315_v27 = vpop.permute.xlu0 %2539 }
 0x606   :  { %v5291_v23 = vpop.permute.xlu1 %1064 }
 0x607   :  { %6132 = vst [vmem:[#allocation10_spill] sm:$0xff] %v5291_v23 }
 0x608   :  { %1831 = vrot.lane.b32.xlu0 %v1799_v24, %s3760_s28  ;;  %v6136_v24 = vld [vmem:[#allocation21_spill] sm:$0xff] }
 0x609   :  { %1937 = vrot.lane.b32.xlu1 %v1912_v48, %s3761_s29  ;;  %v2152_v48 = vmul.f32 %v6136_v24, %v4863_v58 }
 0x60b   :  { %v5301_v7 = vpop.permute.xlu1 %1304 }
 0x60c   :  { %6135 = vst [vmem:[#allocation61_spill] sm:$0xff] %v5301_v7  ;;  %1951 = vrot.lane.b32.xlu0 %v1919_v33, %s3761_s29  ;;  %v6137_v33 = vld [vmem:[#allocation22_spill] sm:$0xff] }
 0x60d   :  { %2057 = vrot.lane.b32.xlu1 %v2032_v62, %s3762_s30  ;;  %v2272_v7 = vmul.f32 %v6137_v33, %v4863_v58 }
 0x610   :  { %v1785_v23 = vpop.permute.xlu1 %1784  ;;  %2071 = vrot.lane.b32.xlu0 %v2039_v20, %s3762_s30  ;;  %v6138_v20 = vld [vmem:[#allocation15_spill] sm:$0xff] }
 0x611   :  { %2177 = vrot.lane.b32.xlu1 %v2152_v48, %s3763_s10  ;;  %v2392_v24 = vmul.f32 %v6138_v20, %v4863_v58  ;;  %v5325_v48 = vpop.permute.xlu0 %2659 }
 0x612   :  { %6139 = vst [vmem:[#allocation11_spill] sm:$0xff] %v5325_v48 }
 0x614   :  { %2191 = vrot.lane.b32.xlu0 %v2159_v17, %s3763_s10  ;;  %v6140_v17 = vld [vmem:[#allocation24_spill] sm:$0xff] }
 0x615   :  { %v1905_v62 = vpop.permute.xlu1 %1904  ;;  %2297 = vrot.lane.b32.xlu1 %v2272_v7, %s3764_s12  ;;  %v2512_v8 = vmul.f32 %v6140_v17, %v4863_v58  ;;  %v5337_v7 = vpop.permute.xlu0 %2779 }
 0x616   :  { %6141 = vst [vmem:[#allocation12_spill] sm:$0xff] %v5337_v7  ;;  %v5361_v7 = vld [vmem:[#allocation4 + $0x50] sm:$0xff] }
 0x618   :  { %2311 = vrot.lane.b32.xlu0 %v2279_v14, %s3764_s12  ;;  %v6142_v14 = vld [vmem:[#allocation26_spill] sm:$0xff] }
 0x619   :  { %2417 = vrot.lane.b32.xlu1 %v2392_v24, %s3765_s2  ;;  %v2632_v20 = vmul.f32 %v6142_v14, %v4863_v58  ;;  %v5341_v24 = vld [vmem:[#allocation4 + $0x48] sm:$0xff]  ;;  %v5351_v46 = vpop.permute.xlu0 %1101 }
 0x61a   :  { %v2025_v33 = vpop.permute.xlu1 %2024  ;;  %6143 = vst [vmem:[#allocation17_spill] sm:$0xff] %v5341_v24  ;;  %v1080_v15 = vmul.f32 %v4820_v32, %v5341_v24  ;;  %v1320_v14 = vmul.f32 %v4831_v63, %v5341_v24 }
 0x61c   :  { %2431 = vrot.lane.b32.xlu0 %v2399_v61, %s3765_s2 }
 0x61d   :  { %2537 = vrot.lane.b32.xlu1 %v2512_v8, %s3766_s13  ;;  %v6144_v8 = vld [vmem:[#allocation28_spill] sm:$0xff] }
 0x61e   :  { %v2752_v61 = vmul.f32 %v6144_v8, %v4863_v58  ;;  %v1201_v8 = vmul.f32 %v4918_v55, %v5361_v7 }
 0x61f   :  { %v5343_v60 = vpop.permute.xlu1 %2504 }
 0x620   :  { %2551 = vrot.lane.b32.xlu0 %v2519_v34, %s3766_s13  ;;  %v6145_v34 = vld [vmem:[#allocation30_spill] sm:$0xff] }
 0x621   :  { %2657 = vrot.lane.b32.xlu1 %v2632_v20, %s3767_s3  ;;  %v1073_v20 = vmul.f32 %v6145_v34, %v4884_v26  ;;  %v6147_v34 = vld [vmem:[#allocation43_spill] sm:$0xff] }
 0x624   :  { %v5353_v17 = vpop.permute.xlu1 %2624  ;;  %1113 = vrot.lane.b32.xlu0 %v1080_v15, %s3740_s1  ;;  %v5369_v15 = vpop.permute.xlu0 %1341 }
 0x625   :  { %2777 = vrot.lane.b32.xlu1 %v2752_v61, %s3768_s14  ;;  %v6146_v61 = vld [vmem:[#allocation33_spill] sm:$0xff] }
 0x626   :  { %v1313_v48 = vmul.f32 %v6146_v61, %v4884_v26 }
 0x628   :  { %1353 = vrot.lane.b32.xlu0 %v1320_v14, %s3769_s15  ;;  %v1441_v14 = vmul.f32 %v4929_v43, %v5361_v7  ;;  %v5380_v24 = vpop.permute.xlu0 %1223  ;;  %v1681_v43 = vmul.f32 %v4948_v49, %v5361_v7  ;;  %v1921_v49 = vmul.f32 %v1905_v62, %v5361_v7 }
 0x629   :  { %v5364_v32 = vpop.permute.xlu1 %2744  ;;  %1099 = vrot.lane.b32.xlu1 %v1073_v20, %s3740_s1  ;;  %v1194_v20 = vmul.f32 %v6147_v34, %v4985_v10  ;;  %v6150_v34 = vld [vmem:[#allocation23_spill] sm:$0xff] }
 0x62c   :  { %1235 = vrot.lane.b32.xlu0 %v1201_v8, %s3741_s25  ;;  %v6149_v8 = vld [vmem:[#allocation45_spill] sm:$0xff] }
 0x62d   :  { %1339 = vrot.lane.b32.xlu1 %v1313_v48, %s3769_s15  ;;  %v913_v63 = vpop.permute.xlu1 %912  ;;  %v1561_v48 = vmul.f32 %v4939_v38, %v5361_v7  ;;  %v1434_v61 = vmul.f32 %v6149_v8, %v4985_v10  ;;  %v1801_v38 = vmul.f32 %v1785_v23, %v5361_v7 }
 0x62e   :  { %938 = vst.msk [vmem:[#allocation4 + $0x58] sm:$0xff] %vm926_vm8, %v913_v63  ;;  %v5394_v63 = vpop.permute.xlu0 %1463 }
 0x630   :  { %1475 = vrot.lane.b32.xlu0 %v1441_v14, %s3757_s26 }
 0x631   :  { %1221 = vrot.lane.b32.xlu1 %v1194_v20, %s3741_s25  ;;  %v5384_v55 = vpop.permute.xlu1 %996  ;;  %v1554_v20 = vmul.f32 %v6150_v34, %v4985_v10  ;;  %v6153_v34 = vld [vmem:[#allocation25_spill] sm:$0xff] }
 0x632   :  { %6148 = vst [vmem:[#allocation14_spill] sm:$0xff] %v5384_v55  ;;  %v5407_v55 = vpop.permute.xlu0 %1583 }
 0x634   :  { %1595 = vrot.lane.b32.xlu0 %v1561_v48, %s3758_s27  ;;  %v6151_v48 = vld [vmem:[#allocation47_spill] sm:$0xff] }
 0x635   :  { %1461 = vrot.lane.b32.xlu1 %v1434_v61, %s3757_s26  ;;  %v1674_v8 = vmul.f32 %v6151_v48, %v4985_v10  ;;  %v2041_v48 = vmul.f32 %v2025_v33, %v5361_v7  ;;  %v2281_v33 = vmul.f32 %v4969_v35, %v5361_v7 }
 0x636   :  { %v5396_v14 = vpop.permute.xlu1 %1188  ;;  %v5418_v23 = vpop.permute.xlu0 %1703 }
 0x638   :  { %1715 = vrot.lane.b32.xlu0 %v1681_v43, %s3759_s11  ;;  %v1794_v43 = vmul.f32 %v6153_v34, %v4985_v10 }
 0x639   :  { %1581 = vrot.lane.b32.xlu1 %v1554_v20, %s3758_s27 }
 0x63b   :  { %v5405_v61 = vpop.permute.xlu1 %1428 }
 0x63c   :  { %6152 = vst [vmem:[#allocation18_spill] sm:$0xff] %v5405_v61  ;;  %1835 = vrot.lane.b32.xlu0 %v1801_v38, %s3760_s28  ;;  %v6155_v61 = vld [vmem:[#allocation27_spill] sm:$0xff] }
 0x63d   :  { %1701 = vrot.lane.b32.xlu1 %v1674_v8, %s3759_s11  ;;  %v1914_v38 = vmul.f32 %v6155_v61, %v4985_v10  ;;  %v2161_v8 = vmul.f32 %v4958_v52, %v5361_v7 }
 0x640   :  { %1955 = vrot.lane.b32.xlu0 %v1921_v49, %s3761_s29  ;;  %v5415_v20 = vpop.permute.xlu1 %1548  ;;  %v6157_v49 = vld [vmem:[#allocation48_spill] sm:$0xff] }
 0x641   :  { %6154 = vst [vmem:[#allocation19_spill] sm:$0xff] %v5415_v20  ;;  %1821 = vrot.lane.b32.xlu1 %v1794_v43, %s3760_s28  ;;  %v2034_v34 = vmul.f32 %v6157_v49, %v4985_v10  ;;  %v5431_v43 = vpop.permute.xlu0 %1823  ;;  %v6160_v49 = vld [vmem:[#allocation52_spill] sm:$0xff] }
 0x644   :  { %2075 = vrot.lane.b32.xlu0 %v2041_v48, %s3762_s30  ;;  %v6159_v48 = vld [vmem:[#allocation50_spill] sm:$0xff] }
 0x645   :  { %1941 = vrot.lane.b32.xlu1 %v1914_v38, %s3761_s29  ;;  %v5425_v62 = vpop.permute.xlu1 %1668  ;;  %v2154_v38 = vmul.f32 %v6159_v48, %v4985_v10  ;;  %v5445_v52 = vpop.permute.xlu0 %1943 }
 0x646   :  { %6156 = vst [vmem:[#allocation20_spill] sm:$0xff] %v5425_v62  ;;  %v5441_v62 = vld [vmem:[#allocation4 + $0x58] sm:$0xff] }
 0x647   :  { %v1322_v48 = vmul.f32 %v4998_v30, %v5441_v62 }
 0x648   :  { %2195 = vrot.lane.b32.xlu0 %v2161_v8, %s3763_s10  ;;  %v1082_v8 = vmul.f32 %v4989_v22, %v5441_v62 }
 0x649   :  { %2061 = vrot.lane.b32.xlu1 %v2034_v34, %s3762_s30  ;;  %v2274_v34 = vmul.f32 %v6160_v49, %v4985_v10  ;;  %v2401_v49 = vmul.f32 %v4977_v36, %v5361_v7  ;;  %v2521_v36 = vmul.f32 %v5343_v60, %v5361_v7 }
 0x64a   :  { %v5437_v61 = vpop.permute.xlu1 %1788 }
 0x64b   :  { %6158 = vst [vmem:[#allocation21_spill] sm:$0xff] %v5437_v61  ;;  %v5459_v61 = vpop.permute.xlu0 %2063 }
 0x64c   :  { %2315 = vrot.lane.b32.xlu0 %v2281_v33, %s3764_s12  ;;  %v6162_v33 = vld [vmem:[#allocation29_spill] sm:$0xff] }
 0x64d   :  { %2181 = vrot.lane.b32.xlu1 %v2154_v38, %s3763_s10  ;;  %v2394_v38 = vmul.f32 %v6162_v33, %v4985_v10  ;;  %v2639_v33 = vmul.f32 %v5187_v1, %v5245_v56  ;;  %v2759_v1 = vmul.f32 %v4810_v59, %v5245_v56 }
 0x64f   :  { %v5451_v35 = vpop.permute.xlu1 %2028 }
 0x650   :  { %6161 = vst [vmem:[#allocation22_spill] sm:$0xff] %v5451_v35  ;;  %1117 = vrot.lane.b32.xlu0 %v1082_v8, %s3740_s1  ;;  %v6164_v8 = vld [vmem:[#allocation31_spill] sm:$0xff] }
 0x651   :  { %2301 = vrot.lane.b32.xlu1 %v2274_v34, %s3764_s12  ;;  %v2514_v34 = vmul.f32 %v6164_v8, %v4985_v10  ;;  %v6168_v8 = vld [vmem:[#allocation54_spill] sm:$0xff] }
 0x654   :  { %1357 = vrot.lane.b32.xlu0 %v1322_v48, %s3769_s15  ;;  %v5462_v22 = vpop.permute.xlu1 %2148  ;;  %v5475_v48 = vpop.permute.xlu0 %2183 }
 0x655   :  { %6163 = vst [vmem:[#allocation15_spill] sm:$0xff] %v5462_v22  ;;  %2421 = vrot.lane.b32.xlu1 %v2394_v38, %s3765_s2  ;;  %v6166_v22 = vld [vmem:[#allocation32_spill] sm:$0xff] }
 0x656   :  { %v2634_v38 = vmul.f32 %v6166_v22, %v4985_v10  ;;  %v6169_v22 = vld [vmem:[#allocation56_spill] sm:$0xff] }
 0x658   :  { %2435 = vrot.lane.b32.xlu0 %v2401_v49, %s3765_s2 }
 0x659   :  { %2541 = vrot.lane.b32.xlu1 %v2514_v34, %s3766_s13  ;;  %v5471_v30 = vpop.permute.xlu1 %2268  ;;  %v2754_v34 = vmul.f32 %v6168_v8, %v4985_v10  ;;  %v2641_v8 = vmul.f32 %v5353_v17, %v5361_v7 }
 0x65a   :  { %6165 = vst [vmem:[#allocation24_spill] sm:$0xff] %v5471_v30  ;;  %v5487_v30 = vpop.permute.xlu0 %2303 }
 0x65c   :  { %2671 = vrot.lane.b32.xlu0 %v2639_v33, %s3767_s3  ;;  %v1075_v33 = vmul.f32 %v6169_v22, %v5002_v18  ;;  %v2761_v22 = vmul.f32 %v5364_v32, %v5361_v7 }
 0x65d   :  { %2661 = vrot.lane.b32.xlu1 %v2634_v38, %s3767_s3 }
 0x65e   :  { %v5483_v49 = vpop.permute.xlu1 %2388  ;;  %v5499_v60 = vpop.permute.xlu0 %2423 }
 0x65f   :  { %6167 = vst [vmem:[#allocation26_spill] sm:$0xff] %v5483_v49 }
 0x660   :  { %2555 = vrot.lane.b32.xlu0 %v2521_v36, %s3766_s13  ;;  %v6171_v36 = vld [vmem:[#allocation58_spill] sm:$0xff] }
 0x661   :  { %2781 = vrot.lane.b32.xlu1 %v2754_v34, %s3768_s14  ;;  %v1315_v34 = vmul.f32 %v6171_v36, %v5002_v18 }
 0x662   :  { %v5515_v35 = vpop.permute.xlu0 %2543 }
 0x663   :  { %v5495_v38 = vpop.permute.xlu1 %2508 }
 0x664   :  { %6170 = vst [vmem:[#allocation28_spill] sm:$0xff] %v5495_v38  ;;  %2791 = vrot.lane.b32.xlu0 %v2759_v1, %s3768_s14  ;;  %v6173_v1 = vld [vmem:[#allocation8_spill] sm:$0xff]  ;;  %v6174_v38 = vld [vmem:[#allocation70_spill] sm:$0xff] }
 0x665   :  { %1103 = vrot.lane.b32.xlu1 %v1075_v33, %s3740_s1  ;;  %v999_v33 = vmul.f32 %v6173_v1, %v4763_v29  ;;  %v1196_v49 = vmul.f32 %v6174_v38, %v5109_v57  ;;  %v6176_v29 = vld [vmem:[#allocation40_spill] sm:$0xff] }
 0x666   :  { %v1556_v1 = vmul.f32 %v6176_v29, %v5109_v57 }
 0x668   :  { %2675 = vrot.lane.b32.xlu0 %v2641_v8, %s3767_s3  ;;  %v5506_v59 = vpop.permute.xlu1 %2748  ;;  %v6175_v8 = vld [vmem:[#allocation71_spill] sm:$0xff] }
 0x669   :  { %6172 = vst [vmem:[#allocation30_spill] sm:$0xff] %v5506_v59  ;;  %1343 = vrot.lane.b32.xlu1 %v1315_v34, %s3769_s15  ;;  %v1436_v34 = vmul.f32 %v6175_v8, %v5109_v57  ;;  %v6178_v8 = vld [vmem:[#allocation42_spill] sm:$0xff] }
 0x66c   :  { %2795 = vrot.lane.b32.xlu0 %v2761_v22, %s3768_s14  ;;  %v1096_v17 = vpop.permute.xlu1 %1095  ;;  %v6177_v22 = vld [vmem:[#allocation72_spill] sm:$0xff] }
 0x66d   :  { %v1131_v36 = vadd.f32 %v1096_v17, %v999_v33  ;;  %1225 = vrot.lane.b32.xlu1 %v1196_v49, %s3741_s25  ;;  %v1676_v33 = vmul.f32 %v6177_v22, %v5109_v57 }
 0x66f   :  { %v1251_v32 = vadd.f32 %v5029_v28, %v1131_v36  ;;  %v1796_v28 = vmul.f32 %v6178_v8, %v5109_v57 }
 0x670   :  { %v1336_v59 = vpop.permute.xlu1 %1335 }
 0x671   :  { %1465 = vrot.lane.b32.xlu1 %v1436_v34, %s3757_s26  ;;  %v1371_v20 = vadd.f32 %v1336_v59, %v1251_v32  ;;  %v1916_v59 = vmul.f32 %v4815_v42, %v5109_v57  ;;  %v2156_v42 = vmul.f32 %v4824_v25, %v5109_v57  ;;  %v6181_v25 = vld [vmem:[#allocation74_spill] sm:$0xff] }
 0x673   :  { %v1491_v49 = vadd.f32 %v5037_v44, %v1371_v20  ;;  %v6179_v44 = vld [vmem:[#allocation13_spill] sm:$0xff] }
 0x674   :  { %v1218_v38 = vpop.permute.xlu1 %1217  ;;  %v1000_v20 = vmul.f32 %v6179_v44, %v4863_v58  ;;  %v2276_v58 = vmul.f32 %v4834_v9, %v5109_v57 }
 0x675   :  { %1585 = vrot.lane.b32.xlu1 %v1556_v1, %s3758_s27  ;;  %v1611_v34 = vadd.f32 %v5043_v53, %v1491_v49  ;;  %v6180_v1 = vld [vmem:[#allocation44_spill] sm:$0xff] }
 0x676   :  { %v2036_v22 = vmul.f32 %v6180_v1, %v5109_v57  ;;  %v1132_v8 = vadd.f32 %v5162_v37, %v1000_v20 }
 0x677   :  { %v1731_v29 = vadd.f32 %v5052_v12, %v1611_v34 }
 0x678   :  { %v1458_v17 = vpop.permute.xlu1 %1457  ;;  %v1252_v49 = vadd.f32 %v1218_v38, %v1132_v8  ;;  %v2396_v38 = vmul.f32 %v6181_v25, %v5109_v57 }
 0x679   :  { %1705 = vrot.lane.b32.xlu1 %v1676_v33, %s3759_s11  ;;  %v1851_v53 = vadd.f32 %v5061_v41, %v1731_v29 }
 0x67a   :  { %v1372_v34 = vadd.f32 %v5172_v6, %v1252_v49  ;;  %v6182_v6 = vld [vmem:[#allocation76_spill] sm:$0xff] }
 0x67b   :  { %v2516_v1 = vmul.f32 %v6182_v6, %v5109_v57 }
 0x67c   :  { %v1578_v36 = vpop.permute.xlu1 %1577  ;;  %v1492_v29 = vadd.f32 %v1458_v17, %v1372_v34  ;;  %v6183_v17 = vld [vmem:[#allocation46_spill] sm:$0xff] }
 0x67d   :  { %1825 = vrot.lane.b32.xlu1 %v1796_v28, %s3760_s28  ;;  %v1971_v28 = vadd.f32 %v5070_v0, %v1851_v53 }
 0x67e   :  { %v1612_v0 = vadd.f32 %v1578_v36, %v1492_v29  ;;  %v2636_v36 = vmul.f32 %v6183_v17, %v5109_v57  ;;  %v6186_v29 = vld [vmem:[#allocation80_spill] sm:$0xff] }
 0x67f   :  { %v2091_v41 = vadd.f32 %v5078_v51, %v1971_v28 }
 0x680   :  { %v1698_v32 = vpop.permute.xlu1 %1697 }
 0x681   :  { %1945 = vrot.lane.b32.xlu1 %v1916_v59, %s3761_s29  ;;  %v5552_v59 = vpop.permute.xlu0 %2663  ;;  %v2211_v20 = vadd.f32 %v5091_v4, %v2091_v41 }
 0x683   :  { %v2331_v53 = vadd.f32 %v5100_v3, %v2211_v20 }
 0x684   :  { %v1818_v33 = vpop.permute.xlu1 %1817 }
 0x685   :  { %2065 = vrot.lane.b32.xlu1 %v2036_v22, %s3762_s30  ;;  %v5560_v9 = vpop.permute.xlu0 %2783  ;;  %v1732_v22 = vadd.f32 %v1698_v32, %v1612_v0  ;;  %v6185_v32 = vld [vmem:[#allocation78_spill] sm:$0xff]  ;;  %v1077_v0 = vmul.f32 %v6186_v29, %v5124_v11 }
 0x686   :  { %v2756_v41 = vmul.f32 %v6185_v32, %v5109_v57 }
 0x687   :  { %v1852_v51 = vadd.f32 %v1818_v33, %v1732_v22 }
 0x688   :  { %v1938_v12 = vpop.permute.xlu1 %1937 }
 0x689   :  { %2185 = vrot.lane.b32.xlu1 %v2156_v42, %s3763_s10  ;;  %v1972_v42 = vadd.f32 %v1938_v12, %v1852_v51  ;;  %v5568_v49 = vpop.permute.xlu0 %1105 }
 0x68c   :  { %v2058_v37 = vpop.permute.xlu1 %2057 }
 0x68d   :  { %2305 = vrot.lane.b32.xlu1 %v2276_v58, %s3764_s12  ;;  %v2092_v4 = vadd.f32 %v2058_v37, %v1972_v42  ;;  %v6184_v58 = vld [vmem:[#allocation63_spill] sm:$0xff]  ;;  %v5576_v12 = vpop.permute.xlu0 %1345 }
 0x68e   :  { %v2451_v34 = vadd.f32 %v6184_v58, %v2331_v53 }
 0x690   :  { %v2178_v44 = vpop.permute.xlu1 %2177  ;;  %v2571_v3 = vadd.f32 %v5127_v47, %v2451_v34 }
 0x691   :  { %2425 = vrot.lane.b32.xlu1 %v2396_v38, %s3765_s2  ;;  %v2212_v33 = vadd.f32 %v2178_v44, %v2092_v4  ;;  %v6188_v44 = vld [vmem:[#allocation82_spill] sm:$0xff]  ;;  %v5584_v53 = vpop.permute.xlu0 %1227 }
 0x692   :  { %v1317_v51 = vmul.f32 %v6188_v44, %v5124_v11  ;;  %v6190_v4 = vld [vmem:[#allocation86_spill] sm:$0xff] }
 0x693   :  { %v1198_v58 = vmul.f32 %v6190_v4, %v5227_v45 }
 0x694   :  { %v2298_v8 = vpop.permute.xlu1 %2297 }
 0x695   :  { %2545 = vrot.lane.b32.xlu1 %v2516_v1, %s3766_s13  ;;  %v2332_v38 = vadd.f32 %v2298_v8, %v2212_v33  ;;  %v6187_v1 = vld [vmem:[#allocation38_spill] sm:$0xff]  ;;  %v5593_v11 = vpop.permute.xlu0 %1467  ;;  %v6191_v33 = vmov 0.0|0.0  }
 0x696   :  { %v2691_v22 = vadd.f32 %v6187_v1, %v2571_v3 }
 0x698   :  { %v2418_v28 = vpop.permute.xlu1 %2417  ;;  %v2811_v47 = vadd.f32 %v5150_v19, %v2691_v22  ;;  %v6192_v19 = vld [vmem:[#allocation87_spill] sm:$0xff] }
 0x699   :  { %2665 = vrot.lane.b32.xlu1 %v2636_v36, %s3767_s3  ;;  %v2452_v37 = vadd.f32 %v2418_v28, %v2332_v38  ;;  %v6189_v36 = vld [vmem:[#allocation16_spill] sm:$0xff] }
 0x69a   :  { %v1001_v28 = vmul.f32 %v6189_v36, %v4884_v26  ;;  %v6193_v26 = vld [vmem:[#allocation89_spill] sm:$0xff] }
 0x69b   :  { %v1558_v29 = vmul.f32 %v6193_v26, %v5227_v45 }
 0x69c   :  { %v2538_v25 = vpop.permute.xlu1 %2537 }
 0x69d   :  { %2785 = vrot.lane.b32.xlu1 %v2756_v41, %s3768_s14  ;;  %v2572_v6 = vadd.f32 %v2538_v25, %v2452_v37  ;;  %v1438_v25 = vmul.f32 %v6192_v19, %v5227_v45 }
 0x6a0   :  { %v2658_v20 = vpop.permute.xlu1 %2657 }
 0x6a1   :  { %1107 = vrot.lane.b32.xlu1 %v1077_v0, %s3740_s1  ;;  %v2692_v8 = vadd.f32 %v2658_v20, %v2572_v6  ;;  %v5602_v0 = vpop.permute.xlu0 %1587  ;;  %v6194_v6 = vld [vmem:[#allocation62_spill] sm:$0xff] }
 0x6a2   :  { %v1678_v1 = vmul.f32 %v6194_v6, %v5227_v45  ;;  %v6200_v6 = vld [vmem:[#allocation64_spill] sm:$0xff] }
 0x6a4   :  { %v2778_v42 = vpop.permute.xlu1 %2777 }
 0x6a5   :  { %v2812_v17 = vadd.f32 %v2778_v42, %v2692_v8  ;;  %1347 = vrot.lane.b32.xlu1 %v1317_v51, %s3769_s15  ;;  %v6195_v51 = vld [vmem:[#allocation91_spill] sm:$0xff] }
 0x6a6   :  { %v1798_v8 = vmul.f32 %v6195_v51, %v5227_v45  ;;  %v6201_v51 = vld [vmem:[#allocation35_spill] sm:$0xff] }
 0x6a7   :  { %v3349_v34 = vpack.c.bf16 %v2812_v17, %v2811_v47  ;;  %v6196_v17 = vld [vmem:[#allocation92_spill] sm:$0xff] }
 0x6a8   :  { %v1100_v32 = vpop.permute.xlu1 %1099  ;;  %v1918_v36 = vmul.f32 %v6196_v17, %v5227_v45 }
 0x6a9   :  { %v1133_v41 = vadd.f32 %v1100_v32, %v1001_v28  ;;  %1229 = vrot.lane.b32.xlu1 %v1198_v58, %s3741_s25  ;;  %3350 = vmatpush3.bf16.msra.mxu0 %v3349_v34  ;;  %v6197_v58 = vld [vmem:[#allocation41_spill] sm:$0xff] }
 0x6aa   :  { %3351 = vmatprep.subr.bf16.mxu0 %v6191_v33  ;;  %v1002_v34 = vmul.f32 %v6197_v58, %v4985_v10  ;;  %v6198_v32 = vld [vmem:[#allocation93_spill] sm:$0xff] }
 0x6ab   :  { %v1253_v3 = vadd.f32 %v5185_v21, %v1133_v41  ;;  %v5609_v21 = vpop.permute.xlu0 %1707  ;;  %v2038_v41 = vmul.f32 %v6198_v32, %v5227_v45 }
 0x6ac   :  { %v1340_v38 = vpop.permute.xlu1 %1339 }
 0x6ad   :  { %1469 = vrot.lane.b32.xlu1 %v1438_v25, %s3757_s26  ;;  %v1373_v20 = vadd.f32 %v1340_v38, %v1253_v3  ;;  %v6199_v3 = vld [vmem:[#allocation94_spill] sm:$0xff] }
 0x6af   :  { %v1493_v44 = vadd.f32 %v5195_v31, %v1373_v20  ;;  %v5617_v28 = vpop.permute.xlu0 %1827 }
 0x6b0   :  { %v1222_v37 = vpop.permute.xlu1 %1221 }
 0x6b1   :  { %1589 = vrot.lane.b32.xlu1 %v1558_v29, %s3758_s27  ;;  %v1613_v47 = vadd.f32 %v5207_v16, %v1493_v44  ;;  %v1134_v16 = vadd.f32 %v5351_v46, %v1002_v34  ;;  %v2278_v46 = vmul.f32 %v6200_v6, %v5227_v45 }
 0x6b3   :  { %v1733_v31 = vadd.f32 %v5216_v2, %v1613_v47  ;;  %v5628_v38 = vpop.permute.xlu0 %1947  ;;  %v2158_v2 = vmul.f32 %v6199_v3, %v5227_v45  ;;  %v1254_v26 = vadd.f32 %v1222_v37, %v1134_v16  ;;  %v2398_v37 = vmul.f32 %v6201_v51, %v5227_v45  ;;  %v6204_v3 = vld [vmem:[#allocation37_spill] sm:$0xff] }
 0x6b4   :  { %v1462_v22 = vpop.permute.xlu1 %1461 }
 0x6b5   :  { %1709 = vrot.lane.b32.xlu1 %v1678_v1, %s3759_s11  ;;  %v1853_v25 = vadd.f32 %v5233_v54, %v1733_v31  ;;  %v1374_v10 = vadd.f32 %v5369_v15, %v1254_v26  ;;  %v6202_v31 = vld [vmem:[#allocation66_spill] sm:$0xff] }
 0x6b6   :  { %v2518_v58 = vmul.f32 %v6202_v31, %v5227_v45 }
 0x6b7   :  { %v1973_v20 = vadd.f32 %v5249_v5, %v1853_v25  ;;  %v5637_v1 = vpop.permute.xlu0 %2067 }
 0x6b8   :  { %v1582_v42 = vpop.permute.xlu1 %1581 }
 0x6b9   :  { %1829 = vrot.lane.b32.xlu1 %v1798_v8, %s3760_s28  ;;  %v2093_v44 = vadd.f32 %v5263_v50, %v1973_v20  ;;  %v1494_v8 = vadd.f32 %v1462_v22, %v1374_v10  ;;  %v6203_v22 = vld [vmem:[#allocation36_spill] sm:$0xff] }
 0x6bb   :  { %v1614_v5 = vadd.f32 %v1582_v42, %v1494_v8  ;;  %v2213_v15 = vadd.f32 %v5275_v13, %v2093_v44  ;;  %v5645_v17 = vpop.permute.xlu0 %2187 }
 0x6bc   :  { %v1702_v4 = vpop.permute.xlu1 %1701 }
 0x6bd   :  { %1949 = vrot.lane.b32.xlu1 %v1918_v36, %s3761_s29  ;;  %v1734_v36 = vadd.f32 %v1702_v4, %v1614_v5  ;;  %v2333_v32 = vadd.f32 %v5289_v39, %v2213_v15 }
 0x6bf   :  { %v5653_v16 = vpop.permute.xlu0 %2307  ;;  %v2453_v4 = vadd.f32 %v5303_v40, %v2333_v32  ;;  %v6206_v40 = vld [vmem:[#allocation11_spill] sm:$0xff] }
 0x6c0   :  { %v1822_v19 = vpop.permute.xlu1 %1821  ;;  %v6211_v32 = vld [vmem:[#allocation51_spill] sm:$0xff] }
 0x6c1   :  { %2069 = vrot.lane.b32.xlu1 %v2038_v41, %s3762_s30  ;;  %v1854_v50 = vadd.f32 %v1822_v19, %v1734_v36  ;;  %v2638_v41 = vmul.f32 %v6203_v22, %v5227_v45  ;;  %v2573_v39 = vadd.f32 %v5315_v27, %v2453_v4  ;;  %v6208_v27 = vld [vmem:[#allocation12_spill] sm:$0xff] }
 0x6c3   :  { %v5661_v10 = vpop.permute.xlu0 %2427  ;;  %v2693_v51 = vadd.f32 %v6206_v40, %v2573_v39 }
 0x6c4   :  { %v1942_v29 = vpop.permute.xlu1 %1941 }
 0x6c5   :  { %2189 = vrot.lane.b32.xlu1 %v2158_v2, %s3763_s10  ;;  %v1974_v42 = vadd.f32 %v1942_v29, %v1854_v50  ;;  %v2758_v2 = vmul.f32 %v6204_v3, %v5227_v45  ;;  %v6205_v29 = vld [vmem:[#allocation65_spill] sm:$0xff]  ;;  %v2813_v36 = vadd.f32 %v6208_v27, %v2693_v51 }
 0x6c6   :  { %v1079_v6 = vmul.f32 %v6205_v29, %v5245_v56  ;;  %v6210_v50 = vld [vmem:[#allocation17_spill] sm:$0xff] }
 0x6c7   :  { %v5669_v5 = vpop.permute.xlu0 %2547  ;;  %v1200_v22 = vmul.f32 %v6211_v32, %v6210_v50  ;;  %v6214_v29 = vld [vmem:[#allocation73_spill] sm:$0xff] }
 0x6c8   :  { %v2062_v54 = vpop.permute.xlu1 %2061 }
 0x6c9   :  { %2309 = vrot.lane.b32.xlu1 %v2278_v46, %s3764_s12  ;;  %v2094_v13 = vadd.f32 %v2062_v54, %v1974_v42 }
 0x6cc   :  { %v2182_v47 = vpop.permute.xlu1 %2181 }
 0x6cd   :  { %2429 = vrot.lane.b32.xlu1 %v2398_v37, %s3765_s2  ;;  %v2214_v19 = vadd.f32 %v2182_v47, %v2094_v13  ;;  %v6207_v37 = vld [vmem:[#allocation67_spill] sm:$0xff]  ;;  %v6212_v13 = vld [vmem:[#allocation53_spill] sm:$0xff] }
 0x6ce   :  { %v1319_v8 = vmul.f32 %v6207_v37, %v5245_v56  ;;  %v5678_v56 = vpop.permute.xlu0 %2667  ;;  %v1440_v4 = vmul.f32 %v6212_v13, %v6210_v50 }
 0x6d0   :  { %v2302_v34 = vpop.permute.xlu1 %2301 }
 0x6d1   :  { %2549 = vrot.lane.b32.xlu1 %v2518_v58, %s3766_s13  ;;  %v2334_v20 = vadd.f32 %v2302_v34, %v2214_v19  ;;  %v6209_v58 = vld [vmem:[#allocation34_spill] sm:$0xff] }
 0x6d2   :  { %v1003_v34 = vmul.f32 %v6209_v58, %v5002_v18  ;;  %v6213_v18 = vld [vmem:[#allocation55_spill] sm:$0xff]  ;;  %v6218_v58 = vld [vmem:[#allocation57_spill] sm:$0xff] }
 0x6d3   :  { %v1560_v19 = vmul.f32 %v6213_v18, %v6210_v50 }
 0x6d4   :  { %v2422_v25 = vpop.permute.xlu1 %2421 }
 0x6d5   :  { %2669 = vrot.lane.b32.xlu1 %v2638_v41, %s3767_s3  ;;  %v2454_v46 = vadd.f32 %v2422_v25, %v2334_v20 }
 0x6d8   :  { %v2542_v26 = vpop.permute.xlu1 %2541 }
 0x6d9   :  { %2789 = vrot.lane.b32.xlu1 %v2758_v2, %s3768_s14  ;;  %v2574_v44 = vadd.f32 %v2542_v26, %v2454_v46  ;;  %v5687_v26 = vpop.permute.xlu0 %2787 }
 0x6dc   :  { %v2662_v54 = vpop.permute.xlu1 %2661 }
 0x6dd   :  { %1111 = vrot.lane.b32.xlu1 %v1079_v6, %s3740_s1  ;;  %v2694_v47 = vadd.f32 %v2662_v54, %v2574_v44  ;;  %v1680_v6 = vmul.f32 %v6214_v29, %v6210_v50  ;;  %v6215_v44 = vld [vmem:[#allocation75_spill] sm:$0xff] }
 0x6de   :  { %v1800_v40 = vmul.f32 %v6215_v44, %v6210_v50  ;;  %v6222_v44 = vld [vmem:[#allocation81_spill] sm:$0xff] }
 0x6e0   :  { %v2782_v15 = vpop.permute.xlu1 %2781 }
 0x6e1   :  { %v2814_v31 = vadd.f32 %v2782_v15, %v2694_v47  ;;  %1351 = vrot.lane.b32.xlu1 %v1319_v8, %s3769_s15  ;;  %v6216_v8 = vld [vmem:[#allocation77_spill] sm:$0xff] }
 0x6e2   :  { %v1920_v47 = vmul.f32 %v6216_v8, %v6210_v50  ;;  %v6223_v8 = vld [vmem:[#allocation10_spill] sm:$0xff] }
 0x6e3   :  { %v3352_v41 = vpack.c.bf16 %v2814_v31, %v2813_v36  ;;  %v6217_v36 = vld [vmem:[#allocation69_spill] sm:$0xff] }
 0x6e4   :  { %v1104_v42 = vpop.permute.xlu1 %1103  ;;  %v1004_v31 = vmul.f32 %v6217_v36, %v5109_v57  ;;  %v6220_v57 = vld [vmem:[#allocation9_spill] sm:$0xff] }
 0x6e5   :  { %v1135_v25 = vadd.f32 %v1104_v42, %v1003_v34  ;;  %1233 = vrot.lane.b32.xlu1 %v1200_v22, %s3741_s25  ;;  %3353 = vmatpush3.bf16.msra.mxu0 %v3352_v41  ;;  %v2040_v34 = vmul.f32 %v6218_v58, %v6210_v50  ;;  %v6219_v42 = vld [vmem:[#allocation59_spill] sm:$0xff] }
 0x6e6   :  { %3354 = vmatprep.subr.bf16.mxu0 %v6191_v33 }
 0x6e7   :  { %v1255_v2 = vadd.f32 %v5380_v24, %v1135_v25  ;;  %v5694_v24 = vpop.permute.xlu0 %1109 }
 0x6e8   :  { %v1344_v3 = vpop.permute.xlu1 %1343 }
 0x6e9   :  { %1473 = vrot.lane.b32.xlu1 %v1440_v4, %s3757_s26  ;;  %v1375_v39 = vadd.f32 %v1344_v3, %v1255_v2  ;;  %v2280_v3 = vmul.f32 %v6220_v57, %v6210_v50  ;;  %v6225_v57 = vld [vmem:[#allocation83_spill] sm:$0xff] }
 0x6eb   :  { %v1495_v54 = vadd.f32 %v5394_v63, %v1375_v39  ;;  %v5702_v15 = vpop.permute.xlu0 %1349 }
 0x6ec   :  { %v1226_v20 = vpop.permute.xlu1 %1225 }
 0x6ed   :  { %1593 = vrot.lane.b32.xlu1 %v1560_v19, %s3758_s27  ;;  %v1615_v37 = vadd.f32 %v5407_v55, %v1495_v54  ;;  %v1136_v55 = vadd.f32 %v5568_v49, %v1004_v31  ;;  %v6224_v31 = vld [vmem:[#allocation61_spill] sm:$0xff] }
 0x6ee   :  { %v1321_v58 = vmul.f32 %v6224_v31, %v5361_v7 }
 0x6ef   :  { %v1735_v63 = vadd.f32 %v5418_v23, %v1615_v37  ;;  %v5713_v41 = vpop.permute.xlu0 %1231  ;;  %v2160_v23 = vmul.f32 %v6219_v42, %v6210_v50  ;;  %v1256_v25 = vadd.f32 %v1226_v20, %v1136_v55  ;;  %v6221_v20 = vld [vmem:[#allocation79_spill] sm:$0xff]  ;;  %v1202_v42 = vmul.f32 %v5396_v14, %v5441_v62  ;;  %v3709_v14 = vld [vmem:[#allocation4 + $0x30] sm:$0xff] }
 0x6f0   :  { %v1466_v46 = vpop.permute.xlu1 %1465  ;;  %v2400_v39 = vmul.f32 %v6221_v20, %v6210_v50 }
 0x6f1   :  { %1713 = vrot.lane.b32.xlu1 %v1680_v6, %s3759_s11  ;;  %v1855_v22 = vadd.f32 %v5431_v43, %v1735_v63  ;;  %v1376_v49 = vadd.f32 %v5576_v12, %v1256_v25 }
 0x6f3   :  { %v1975_v4 = vadd.f32 %v5445_v52, %v1855_v22  ;;  %v5722_v2 = vpop.permute.xlu0 %1471  ;;  %v1496_v19 = vadd.f32 %v1466_v46, %v1376_v49 }
 0x6f4   :  { %v1586_v51 = vpop.permute.xlu1 %1585 }
 0x6f5   :  { %1833 = vrot.lane.b32.xlu1 %v1800_v40, %s3760_s28  ;;  %v2095_v18 = vadd.f32 %v5459_v61, %v1975_v4  ;;  %v1616_v52 = vadd.f32 %v1586_v51, %v1496_v19  ;;  %v2520_v40 = vmul.f32 %v6222_v44, %v6210_v50  ;;  %v6226_v19 = vld [vmem:[#allocation49_spill] sm:$0xff] }
 0x6f6   :  { %v1005_v20 = vmul.f32 %v3709_v14, %v6226_v19 }
 0x6f7   :  { %v2215_v6 = vadd.f32 %v5475_v48, %v2095_v18  ;;  %v5730_v54 = vpop.permute.xlu0 %1591 }
 0x6f8   :  { %v1706_v27 = vpop.permute.xlu1 %1705 }
 0x6f9   :  { %1953 = vrot.lane.b32.xlu1 %v1920_v47, %s3761_s29  ;;  %v1736_v12 = vadd.f32 %v1706_v27, %v1616_v52  ;;  %v2335_v46 = vadd.f32 %v5487_v30, %v2215_v6  ;;  %v1081_v47 = vmul.f32 %v6223_v8, %v5361_v7 }
 0x6fb   :  { %v5738_v63 = vpop.permute.xlu0 %1711  ;;  %v2455_v27 = vadd.f32 %v5499_v60, %v2335_v46  ;;  %v6229_v46 = vld [vmem:[#allocation19_spill] sm:$0xff] }
 0x6fc   :  { %v1826_v32 = vpop.permute.xlu1 %1825  ;;  %v1562_v8 = vmul.f32 %v6229_v46, %v5441_v62 }
 0x6fd   :  { %2073 = vrot.lane.b32.xlu1 %v2040_v34, %s3762_s30  ;;  %v1856_v61 = vadd.f32 %v1826_v32, %v1736_v12  ;;  %v2575_v30 = vadd.f32 %v5515_v35, %v2455_v27  ;;  %v6230_v27 = vld [vmem:[#allocation20_spill] sm:$0xff] }
 0x6fe   :  { %v1682_v31 = vmul.f32 %v6230_v27, %v5441_v62 }
 0x6ff   :  { %v5746_v22 = vpop.permute.xlu0 %1831  ;;  %v2695_v60 = vadd.f32 %v5552_v59, %v2575_v30 }
 0x700   :  { %v1946_v13 = vpop.permute.xlu1 %1945 }
 0x701   :  { %2193 = vrot.lane.b32.xlu1 %v2160_v23, %s3763_s10  ;;  %v1976_v51 = vadd.f32 %v1946_v13, %v1856_v61  ;;  %v2815_v35 = vadd.f32 %v5560_v9, %v2695_v60  ;;  %v6228_v9 = vld [vmem:[#allocation18_spill] sm:$0xff] }
 0x702   :  { %v1442_v44 = vmul.f32 %v6228_v9, %v5441_v62 }
 0x703   :  { %v5754_v49 = vpop.permute.xlu0 %1951 }
 0x704   :  { %v2066_v43 = vpop.permute.xlu1 %2065 }
 0x705   :  { %2313 = vrot.lane.b32.xlu1 %v2280_v3, %s3764_s12  ;;  %v2096_v48 = vadd.f32 %v2066_v43, %v1976_v51  ;;  %v2640_v3 = vmul.f32 %v6225_v57, %v6210_v50 }
 0x707   :  { %v5762_v12 = vpop.permute.xlu0 %2071 }
 0x708   :  { %v2186_v29 = vpop.permute.xlu1 %2185 }
 0x709   :  { %2433 = vrot.lane.b32.xlu1 %v2400_v39, %s3765_s2  ;;  %v2216_v34 = vadd.f32 %v2186_v29, %v2096_v48  ;;  %v6227_v39 = vld [vmem:[#allocation60_spill] sm:$0xff] }
 0x70a   :  { %v2760_v29 = vmul.f32 %v6227_v39, %v6210_v50 }
 0x70b   :  { %v5772_v51 = vpop.permute.xlu0 %2191 }
 0x70c   :  { %v2306_v37 = vpop.permute.xlu1 %2305 }
 0x70d   :  { %2553 = vrot.lane.b32.xlu1 %v2520_v40, %s3766_s13  ;;  %v2336_v55 = vadd.f32 %v2306_v37, %v2216_v34 }
 0x710   :  { %v2426_v36 = vpop.permute.xlu1 %2425 }
 0x711   :  { %1115 = vrot.lane.b32.xlu1 %v1081_v47, %s3740_s1  ;;  %v2456_v23 = vadd.f32 %v2426_v36, %v2336_v55 }
 0x714   :  { %v2546_v32 = vpop.permute.xlu1 %2545 }
 0x715   :  { %1355 = vrot.lane.b32.xlu1 %v1321_v58, %s3769_s15  ;;  %v2576_v13 = vadd.f32 %v2546_v32, %v2456_v23  ;;  %v5781_v32 = vpop.permute.xlu0 %2311 }
 0x718   :  { %v2666_v25 = vpop.permute.xlu1 %2665 }
 0x719   :  { %1237 = vrot.lane.b32.xlu1 %v1202_v42, %s3741_s25  ;;  %v2696_v4 = vadd.f32 %v2666_v25, %v2576_v13  ;;  %v5788_v23 = vpop.permute.xlu0 %2431  ;;  %v6234_v13 = vld [vmem:[#allocation22_spill] sm:$0xff] }
 0x71a   :  { %v2042_v60 = vmul.f32 %v6234_v13, %v5441_v62 }
 0x71c   :  { %v2786_v43 = vpop.permute.xlu1 %2785 }
 0x71d   :  { %v2816_v18 = vadd.f32 %v2786_v43, %v2696_v4  ;;  %2673 = vrot.lane.b32.xlu1 %v2640_v3, %s3767_s3  ;;  %v5797_v3 = vpop.permute.xlu0 %2551  ;;  %v6235_v43 = vld [vmem:[#allocation15_spill] sm:$0xff] }
 0x71f   :  { %v3355_v52 = vpack.c.bf16 %v2816_v18, %v2815_v35  ;;  %v2162_v35 = vmul.f32 %v6235_v43, %v5441_v62 }
 0x720   :  { %v1108_v59 = vpop.permute.xlu1 %1107 }
 0x721   :  { %v1137_v6 = vadd.f32 %v1108_v59, %v1005_v20  ;;  %2793 = vrot.lane.b32.xlu1 %v2760_v29, %s3768_s14  ;;  %3356 = vmatpush3.bf16.msra.mxu0 %v3355_v52  ;;  %v5806_v29 = vpop.permute.xlu0 %1113  ;;  %v6237_v59 = vld [vmem:[#allocation26_spill] sm:$0xff] }
 0x722   :  { %3357 = vmatprep.subr.bf16.mxu0 %v6191_v33 }
 0x723   :  { %v1257_v40 = vadd.f32 %v5584_v53, %v1137_v6  ;;  %v2402_v6 = vmul.f32 %v6237_v59, %v5441_v62 }
 0x724   :  { %v1348_v37 = vpop.permute.xlu1 %1347 }
 0x725   :  { %v1377_v61 = vadd.f32 %v1348_v37, %v1257_v40  ;;  %1477 = vrot.lane.b32.xlu1 %v1442_v44, %s3757_s26  ;;  %v5814_v37 = vpop.permute.xlu0 %1353 }
 0x727   :  { %v1497_v47 = vadd.f32 %v5593_v11, %v1377_v61  ;;  %v6231_v11 = vld [vmem:[#allocation21_spill] sm:$0xff] }
 0x728   :  { %v1230_v36 = vpop.permute.xlu1 %1229  ;;  %v1802_v55 = vmul.f32 %v6231_v11, %v5441_v62 }
 0x729   :  { %v1617_v48 = vadd.f32 %v5602_v0, %v1497_v47  ;;  %1597 = vrot.lane.b32.xlu1 %v1562_v8, %s3758_s27  ;;  %v6232_v0 = vld [vmem:[#allocation88_spill] sm:$0xff] }
 0x72a   :  { %v1922_v42 = vmul.f32 %v6232_v0, %v5441_v62 }
 0x72b   :  { %v1737_v53 = vadd.f32 %v5609_v21, %v1617_v48  ;;  %v6233_v21 = vld [vmem:[#allocation85_spill] sm:$0xff]  ;;  %v6239_v48 = vld [vmem:[#allocation90_spill] sm:$0xff] }
 0x72c   :  { %v1470_v58 = vpop.permute.xlu1 %1469  ;;  %v2642_v27 = vmul.f32 %v6239_v48, %v5441_v62 }
 0x72d   :  { %v1857_v34 = vadd.f32 %v5617_v28, %v1737_v53  ;;  %1717 = vrot.lane.b32.xlu1 %v1682_v31, %s3759_s11  ;;  %v1006_v28 = vmul.f32 %v6233_v21, %v5227_v45  ;;  %v6236_v45 = vld [vmem:[#allocation24_spill] sm:$0xff]  ;;  %v5822_v31 = vpop.permute.xlu0 %1235 }
 0x72e   :  { %v2282_v20 = vmul.f32 %v6236_v45, %v5441_v62 }
 0x72f   :  { %v1138_v57 = vadd.f32 %v5694_v24, %v1006_v28  ;;  %v1977_v19 = vadd.f32 %v5628_v38, %v1857_v34  ;;  %v6240_v34 = vld [vmem:[#allocation30_spill] sm:$0xff] }
 0x730   :  { %v1590_v30 = vpop.permute.xlu1 %1589  ;;  %v2762_v11 = vmul.f32 %v6240_v34, %v5441_v62 }
 0x731   :  { %1837 = vrot.lane.b32.xlu1 %v1802_v55, %s3760_s28  ;;  %v1258_v18 = vadd.f32 %v1230_v36, %v1138_v57  ;;  %v2097_v52 = vadd.f32 %v5637_v1, %v1977_v19 }
 0x733   :  { %v1378_v39 = vadd.f32 %v5702_v15, %v1258_v18  ;;  %v2217_v40 = vadd.f32 %v5645_v17, %v2097_v52  ;;  %v6238_v15 = vld [vmem:[#allocation28_spill] sm:$0xff] }
 0x734   :  { %v1710_v25 = vpop.permute.xlu1 %1709  ;;  %v2522_v61 = vmul.f32 %v6238_v15, %v5441_v62  ;;  %v3710_v18 = vld [vmem:[#allocation4 + $0x40] sm:$0xff] }
 0x735   :  { %1957 = vrot.lane.b32.xlu1 %v1922_v42, %s3761_s29  ;;  %v1498_v9 = vadd.f32 %v1470_v58, %v1378_v39  ;;  %v2337_v47 = vadd.f32 %v5653_v16, %v2217_v40  ;;  %v5830_v42 = vpop.permute.xlu0 %1475 }
 0x737   :  { %v1618_v38 = vadd.f32 %v1590_v30, %v1498_v9  ;;  %v2457_v58 = vadd.f32 %v5661_v10, %v2337_v47 }
 0x738   :  { %v1830_v4 = vpop.permute.xlu1 %1829 }
 0x739   :  { %2077 = vrot.lane.b32.xlu1 %v2042_v60, %s3762_s30  ;;  %v1738_v46 = vadd.f32 %v1710_v25, %v1618_v38  ;;  %v2577_v16 = vadd.f32 %v5669_v5, %v2457_v58  ;;  %v6241_v60 = vmov 0.0   ;;  %v6242_v5 = vld [vmem:[#allocation68_spill] sm:$0xff] }
 0x73a   :  { %3285 = vmatprep.mubr.msk.f32.mxu0 %vm3770_vm9, %v6241_v60 }
 0x73b   :  { %v1858_v1 = vadd.f32 %v1830_v4, %v1738_v46  ;;  %v2697_v13 = vadd.f32 %v5678_v56, %v2577_v16  ;;  %v5835_v4 = vpop.permute.xlu0 %1595 }
 0x73c   :  { %v1950_v14 = vpop.permute.xlu1 %1949 }
 0x73d   :  { %2197 = vrot.lane.b32.xlu1 %v2162_v35, %s3763_s10  ;;  %v1978_v36 = vadd.f32 %v1950_v14, %v1858_v1  ;;  %v2817_v43 = vadd.f32 %v5687_v26, %v2697_v13  ;;  %v1007_v14 = vmul.f32 %v3710_v18, %v6242_v5 }
 0x73f   :  { %v1716_v39 = vpop.permute.xlu0 %1715 }
 0x740   :  { %v2070_v24 = vpop.permute.xlu1 %2069 }
 0x741   :  { %2317 = vrot.lane.b32.xlu1 %v2282_v20, %s3764_s12  ;;  %v2098_v17 = vadd.f32 %v2070_v24, %v1978_v36 }
 0x744   :  { %v2190_v44 = vpop.permute.xlu1 %2189 }
 0x745   :  { %2437 = vrot.lane.b32.xlu1 %v2402_v6, %s3765_s2  ;;  %v2218_v55 = vadd.f32 %v2190_v44, %v2098_v17  ;;  %v1836_v6 = vpop.permute.xlu0 %1835 }
 0x748   :  { %v2310_v8 = vpop.permute.xlu1 %2309 }
 0x749   :  { %2557 = vrot.lane.b32.xlu1 %v2522_v61, %s3766_s13  ;;  %v2338_v0 = vadd.f32 %v2310_v8, %v2218_v55  ;;  %v1956_v15 = vpop.permute.xlu0 %1955 }
 0x74c   :  { %v2430_v53 = vpop.permute.xlu1 %2429 }
 0x74d   :  { %2677 = vrot.lane.b32.xlu1 %v2642_v27, %s3767_s3  ;;  %v2458_v25 = vadd.f32 %v2430_v53, %v2338_v0  ;;  %v2076_v1 = vpop.permute.xlu0 %2075 }
 0x750   :  { %v2550_v30 = vpop.permute.xlu1 %2549 }
 0x751   :  { %2797 = vrot.lane.b32.xlu1 %v2762_v11, %s3768_s14  ;;  %v2578_v28 = vadd.f32 %v2550_v30, %v2458_v25  ;;  %v2196_v48 = vpop.permute.xlu0 %2195  ;;  %v6244_v25 = vld [vmem:[#allocation84_spill] sm:$0xff] }
 0x754   :  { %v2670_v21 = vpop.permute.xlu1 %2669 }
 0x755   :  { %v2698_v10 = vadd.f32 %v2670_v21, %v2578_v28  ;;  %v1009_v21 = vmul.f32 %v6244_v25, %v5361_v7 }
 0x758   :  { %v2790_v57 = vpop.permute.xlu1 %2789 }
 0x759   :  { %v2818_v35 = vadd.f32 %v2790_v57, %v2698_v10 }
 0x75b   :  { %v3358_v19 = vpack.c.bf16 %v2818_v35, %v2817_v43 }
 0x75c   :  { %v1112_v45 = vpop.permute.xlu1 %1111 }
 0x75d   :  { %v1139_v20 = vadd.f32 %v1112_v45, %v1007_v14  ;;  %3359 = vmatpush3.bf16.msra.mxu0 %v3358_v19 }
 0x75e   :  { %3360 = vmatprep.subr.bf16.mxu0 %v6191_v33 }
 0x75f   :  { %v1259_v56 = vadd.f32 %v5713_v41, %v1139_v20 }
 0x760   :  { %v1352_v24 = vpop.permute.xlu1 %1351 }
 0x761   :  { %v1379_v52 = vadd.f32 %v1352_v24, %v1259_v56 }
 0x763   :  { %v1499_v59 = vadd.f32 %v5722_v2, %v1379_v52 }
 0x764   :  { %v1234_v9 = vpop.permute.xlu1 %1233 }
 0x765   :  { %v1619_v26 = vadd.f32 %v5730_v54, %v1499_v59 }
 0x767   :  { %v1739_v44 = vadd.f32 %v5738_v63, %v1619_v26 }
 0x768   :  { %v1474_v38 = vpop.permute.xlu1 %1473 }
 0x769   :  { %v1859_v40 = vadd.f32 %v5746_v22, %v1739_v44  ;;  %v2316_v22 = vpop.permute.xlu0 %2315 }
 0x76b   :  { %v1979_v61 = vadd.f32 %v5754_v49, %v1859_v40  ;;  %v6243_v49 = vld [vmem:[#allocation39_spill] sm:$0xff] }
 0x76c   :  { %v1594_v46 = vpop.permute.xlu1 %1593  ;;  %v1008_v17 = vmul.f32 %v6243_v49, %v6210_v50 }
 0x76d   :  { %v2099_v8 = vadd.f32 %v5762_v12, %v1979_v61 }
 0x76e   :  { %v1140_v12 = vadd.f32 %v5806_v29, %v1008_v17 }
 0x76f   :  { %v2219_v41 = vadd.f32 %v5772_v51, %v2099_v8  ;;  %v1118_v51 = vpop.permute.xlu0 %1117 }
 0x770   :  { %v1714_v47 = vpop.permute.xlu1 %1713  ;;  %v1260_v34 = vadd.f32 %v1234_v9, %v1140_v12 }
 0x771   :  { %v2339_v2 = vadd.f32 %v5781_v32, %v2219_v41 }
 0x772   :  { %v1380_v32 = vadd.f32 %v5814_v37, %v1260_v34 }
 0x773   :  { %v2459_v36 = vadd.f32 %v5788_v23, %v2339_v2  ;;  %v1358_v55 = vpop.permute.xlu0 %1357 }
 0x774   :  { %v1834_v54 = vpop.permute.xlu1 %1833  ;;  %v1500_v30 = vadd.f32 %v1474_v38, %v1380_v32 }
 0x775   :  { %v2579_v63 = vadd.f32 %v5797_v3, %v2459_v36 }
 0x776   :  { %v1620_v3 = vadd.f32 %v1594_v46, %v1500_v30 }
 0x777   :  { %v2436_v16 = vpop.permute.xlu0 %2435 }
 0x778   :  { %v1954_v27 = vpop.permute.xlu1 %1953  ;;  %v1740_v28 = vadd.f32 %v1714_v47, %v1620_v3 }
 0x77a   :  { %v1860_v50 = vadd.f32 %v1834_v54, %v1740_v28 }
 0x77b   :  { %v2672_v43 = vpop.permute.xlu0 %2671 }
 0x77c   :  { %v2074_v53 = vpop.permute.xlu1 %2073  ;;  %v1980_v57 = vadd.f32 %v1954_v27, %v1860_v50  ;;  %v2699_v26 = vadd.f32 %v2672_v43, %v2579_v63 }
 0x77e   :  { %v2100_v18 = vadd.f32 %v2074_v53, %v1980_v57 }
 0x77f   :  { %v2556_v56 = vpop.permute.xlu0 %2555 }
 0x780   :  { %v2194_v58 = vpop.permute.xlu1 %2193 }
 0x781   :  { %v2220_v5 = vadd.f32 %v2194_v58, %v2100_v18 }
 0x783   :  { %v2792_v38 = vpop.permute.xlu0 %2791 }
 0x784   :  { %v2314_v11 = vpop.permute.xlu1 %2313  ;;  %v2819_v46 = vadd.f32 %v2792_v38, %v2699_v26  ;;  %v3204_v38 = vld [vmem:[%s5949_s7 + $0x28] sm:$0xff] }
 0x785   :  { %v2340_v45 = vadd.f32 %v2314_v11, %v2220_v5 }
 0x788   :  { %v2434_v23 = vpop.permute.xlu1 %2433 }
 0x789   :  { %v2460_v7 = vadd.f32 %v2434_v23, %v2340_v45 }
 0x78c   :  { %v2554_v0 = vpop.permute.xlu1 %2553 }
 0x78d   :  { %v2580_v59 = vadd.f32 %v2554_v0, %v2460_v7  ;;  %v2912_v7 = vld [vmem:[%s5949_s7 + $0x8] sm:$0xff] }
 0x790   :  { %v1116_v13 = vpop.permute.xlu1 %1115 }
 0x791   :  { %v1141_v10 = vadd.f32 %v1116_v13, %v1009_v21 }
 0x793   :  { %v1261_v29 = vadd.f32 %v5822_v31, %v1141_v10 }
 0x794   :  { %v1356_v35 = vpop.permute.xlu1 %1355 }
 0x795   :  { %v1381_v37 = vadd.f32 %v1356_v35, %v1261_v29 }
 0x797   :  { %v1501_v14 = vadd.f32 %v5830_v42, %v1381_v37 }
 0x798   :  { %v1238_v19 = vpop.permute.xlu1 %1237 }
 0x799   :  { %v1621_v20 = vadd.f32 %v5835_v4, %v1501_v14 }
 0x79b   :  { %v1741_v24 = vadd.f32 %v1716_v39, %v1621_v20 }
 0x79c   :  { %v2674_v52 = vpop.permute.xlu1 %2673 }
 0x79d   :  { %v1861_v9 = vadd.f32 %v1836_v6, %v1741_v24  ;;  %v2700_v31 = vadd.f32 %v2674_v52, %v2580_v59  ;;  %v6245_v6 = vld [vmem:[#allocation14_spill] sm:$0xff]  ;;  %v2914_v59 = vld [vmem:[%s5949_s7 + $0x18] sm:$0x7f] }
 0x79e   :  { %v1010_v54 = vmul.f32 %v6245_v6, %v5441_v62  ;;  %v2676_v62 = vpop.permute.xlu0 %2675  ;;  %v2913_v52 = vld [vmem:[%s5949_s7 + $0x10] sm:$0xff]  ;;  %v3212_v6 = vld [vmem:[%s5949_s7 + $0x58] sm:$0x7f] }
 0x79f   :  { %v1981_v44 = vadd.f32 %v1956_v15, %v1861_v9  ;;  %v3370_v9 = vpack.c.bf16 %v2914_v59, %v2913_v52 }
 0x7a0   :  { %v2794_v40 = vpop.permute.xlu1 %2793  ;;  %v1142_v15 = vadd.f32 %v1118_v51, %v1010_v54 }
 0x7a1   :  { %v2101_v61 = vadd.f32 %v2076_v1, %v1981_v44  ;;  %v2820_v8 = vadd.f32 %v2794_v40, %v2700_v31  ;;  %v3203_v31 = vld [vmem:[%s5949_s7 + $0x20] sm:$0xff] }
 0x7a2   :  { %v1262_v27 = vadd.f32 %v1238_v19, %v1142_v15  ;;  %v2796_v50 = vpop.permute.xlu0 %2795 }
 0x7a3   :  { %v3361_v41 = vpack.c.bf16 %v2820_v8, %v2819_v46  ;;  %v2221_v42 = vadd.f32 %v2196_v48, %v2101_v61  ;;  %v3374_v61 = vpack.c.bf16 %v3204_v38, %v3203_v31  ;;  %v3205_v8 = vld [vmem:[%s5949_s7 + $0x30] sm:$0xff] }
 0x7a4   :  { %v1478_v47 = vpop.permute.xlu1 %1477  ;;  %v1382_v1 = vadd.f32 %v1358_v55, %v1262_v27 }
 0x7a5   :  { %3362 = vmatpush3.bf16.msra.mxu0 %v3361_v41  ;;  %v2341_v2 = vadd.f32 %v2316_v22, %v2221_v42  ;;  %v3206_v41 = vld [vmem:[%s5949_s7 + $0x38] sm:$0x7f] }
 0x7a6   :  { %3363 = vmatprep.subr.bf16.mxu0 %v6191_v33  ;;  %v1502_v49 = vadd.f32 %v1478_v47, %v1382_v1  ;;  %v3377_v42 = vpack.c.bf16 %v3206_v41, %v3205_v8  ;;  %v3209_v47 = vld [vmem:[%s5949_s7 + $0x40] sm:$0xff] }
 0x7a7   :  { %v2461_v23 = vadd.f32 %v2436_v16, %v2341_v2  ;;  %v2823_v16 = vld [vmem:[%s5948_s6] sm:$0x3f]  ;;  %v3210_v2 = vld [vmem:[%s5949_s7 + $0x48] sm:$0xff] }
 0x7a8   :  { %v1598_v4 = vpop.permute.xlu1 %1597 }
 0x7a9   :  { %v1622_v58 = vadd.f32 %v1598_v4, %v1502_v49  ;;  %v2581_v25 = vadd.f32 %v2556_v56, %v2461_v23  ;;  %v2911_v56 = vld [vmem:[%s5949_s7] sm:$0xff]  ;;  %v3381_v4 = vpack.c.bf16 %v3210_v2, %v3209_v47 }
 0x7aa   :  { %v3367_v24 = vpack.c.bf16 %v2912_v7, %v2911_v56 }
 0x7ab   :  { %v2701_v13 = vadd.f32 %v2676_v62, %v2581_v25 }
 0x7ac   :  { %v1718_v39 = vpop.permute.xlu1 %1717 }
 0x7ad   :  { %v1742_v48 = vadd.f32 %v1718_v39, %v1622_v58  ;;  %v2821_v57 = vadd.f32 %v2796_v50, %v2701_v13 }
 0x7b0   :  { %v1838_v36 = vpop.permute.xlu1 %1837 }
 0x7b1   :  { %v1862_v34 = vadd.f32 %v1838_v36, %v1742_v48  ;;  %v3211_v36 = vld [vmem:[%s5949_s7 + $0x50] sm:$0xff]  ;;  %s3772_s7 = smov [#allocation5]  }
 0x7b2   :  { %v3384_v54 = vpack.c.bf16 %v3212_v6, %v3211_v36  ;;  %s3172_s1 = sshll.u32 %s3772_s7, 4  ;;  %s3173_s1 = int_to_ptr.vmem [resolvable:$true] %s3172_s1 }
 0x7b3   :  { %s3711_s25 = scalar_lea.vmem %s3173_s1, 32  ;;  %p3716_p1 = scmp.lt.s32.totalorder %s3173_s1, %s3173_s1 }
 0x7b4   :  { %v1958_v63 = vpop.permute.xlu1 %1957  ;;  %p3712_p0 = scmp.ne.s32.totalorder %s3173_s1, %s3711_s25  ;;  %p3717_p2 = scmp.lt.s32.totalorder %s3711_s25, %s3711_s25 }
 0x7b5   :  { %v1982_v22 = vadd.f32 %v1958_v63, %v1862_v34  ;;  %v3202_v63 = vld [vmem:[%s5950_s8] ss:$0 sm:$0xff] }
 0x7b6   :  { %p3718_p3 = por %p3717_p2, %p3716_p1 }
 0x7b8   :  { %v2078_v53 = vpop.permute.xlu1 %2077  ;;  %p3719_p4 = pnand %p3718_p3, %p3712_p0 }
 0x7b9   :  { %v2102_v32 = vadd.f32 %v2078_v53, %v1982_v22 }
 0x7bc   :  { %v2198_v17 = vpop.permute.xlu1 %2197 }
 0x7bd   :  { %v2222_v30 = vadd.f32 %v2198_v17, %v2102_v32 }
 0x7c0   :  { %v2318_v12 = vpop.permute.xlu1 %2317 }
 0x7c1   :  { %v2342_v3 = vadd.f32 %v2318_v12, %v2222_v30 }
 0x7c4   :  { %v2438_v11 = vpop.permute.xlu1 %2437 }
 0x7c5   :  { %v2462_v51 = vadd.f32 %v2438_v11, %v2342_v3 }
 0x7c8   :  { %v2558_v0 = vpop.permute.xlu1 %2557 }
 0x7c9   :  { %v2582_v28 = vadd.f32 %v2558_v0, %v2462_v51 }
 0x7cc   :  { %v2678_v21 = vpop.permute.xlu1 %2677 }
 0x7cd   :  { %v2702_v55 = vadd.f32 %v2678_v21, %v2582_v28 }
 0x7d0   :  { %v2798_v10 = vpop.permute.xlu1 %2797 }
 0x7d1   :  { %v2822_v29 = vadd.f32 %v2798_v10, %v2702_v55 }
 0x7d3   :  { %v3364_v43 = vpack.c.bf16 %v2822_v29, %v2821_v57 }
 0x7d5   :  { %3365 = vmatpush3.bf16.msra.mxu0 %v3364_v43 }
 0x7d6   :  { %3366 = vmatprep.subr.bf16.mxu0 %v6191_v33 }
 0x7d8   :  { %3286 = vmatmul.mubr.msk.f32.vlgmr.msra.gmra.mrb[6].mxu0 %vm2824_vm10, %v2823_v16 }
 0x7d9   :  { %3296 = vmatprep.mubr.msk.f32.mxu0 %vm3770_vm9, %v6241_v60  ;;  %3368 = vmatpush3.bf16.msra.mxu0 %v3367_v24 }
 0x7da   :  { %3369 = vmatprep.subr.bf16.mxu0 %v6191_v33 }
 0x7dd   :  { %3372 = vmatpush3.bf16.msk.msra.mxu0 %vm5882_vm14, %v3370_v9 }
 0x7de   :  { %3373 = vmatprep.subr.bf16.mxu0 %v6191_v33 }
 0x8ab   :  { %v2894_v35 = vpop.f32.mrb[6].mxu0 }
 0x8ac   :  { %v3287_v18 = vpop.f32.mrb[7].mxu0  ;;  %v2899_v37 = vsel %vm2898_vm11, %v2894_v35, -inf }
 0x8ad   :  { %2900 = vmax.xlane.f32.xlu0 %v2899_v37 }
 0x93a   :  { %v2901_v5 = vpop.xlane.xlu0 %2900 }
 0x93b   :  { %v2902_v14 = vsub.f32 %v2894_v35, %v2901_v5 }
 0x93d   :  { %v2903_v19 = vmul.f32 1.442695, %v2902_v14 }
 0x93f   :  { %3705 = vpow2.f32 %v2903_v19 }
 0x949   :  { %v3706_v45 = vpop.eup %3705 }
 0x94a   :  { %v2905_v20 = vsel %vm2898_vm11, %v3706_v45, 0.0 }
 0x94b   :  { %2906 = vadd.xlane.f32.xlu1 %v2905_v20 }
 0x9d8   :  { %v2907_v44 = vpop.xlane.xlu1 %2906 }
 0x9d9   :  { %3707 = vrcp.f32 %v2907_v44 }
 0x9e3   :  { %v3708_v40 = vpop.eup %3707 }
 0x9e4   :  { %v2909_v46 = vmul.f32 %v3708_v40, %v3706_v45 }
 0x9e6   :  { %3297 = vmatmul.mubr.msk.f32.vlgmr.msra.gmra.mrb[8].mxu0 %vm2915_vm15, %v2909_v46  ;;  %v3005_v39 = vrot.slane %v2909_v46, 2  ;;  %v3087_v15 = vrot.slane %v2909_v46, 4 }
 0x9e7   :  { %3375 = vmatpush3.bf16.msra.mxu0 %v3374_v61  ;;  %3307 = vmatprep.mubr.msk.f32.mxu0 %vm3770_vm9, %v6241_v60 }
 0x9e8   :  { %3376 = vmatprep.subr.bf16.mxu0 %v6191_v33 }
 0x9eb   :  { %3379 = vmatpush3.bf16.msk.msra.mxu0 %vm5882_vm14, %v3377_v42 }
 0x9ec   :  { %3380 = vmatprep.subr.bf16.mxu0 %v6191_v33 }
 0x9ee   :  { %3308 = vmatmul.mubr.msk.f32.vlgmr.msra.gmra.mrb[8].mxu0 %vm2915_vm15, %v3005_v39 }
 0x9ef   :  { %3382 = vmatpush3.bf16.msra.mxu0 %v3381_v4  ;;  %3318 = vmatprep.mubr.msk.f32.mxu0 %vm3770_vm9, %v6241_v60 }
 0x9f0   :  { %3383 = vmatprep.subr.bf16.mxu0 %v6191_v33 }
 0x9f3   :  { %3386 = vmatpush3.bf16.msk.msra.mxu0 %vm5882_vm14, %v3384_v54 }
 0x9f6   :  { %3319 = vmatmul.mubr.msk.f32.vlgmr.msra.gmra.mrb[8].mxu0 %vm2915_vm15, %v3087_v15 }
 0xac9   :  { %v3159_v27 = vpop.f32.mrb[8].mxu0 }
 0xaca   :  { %v3387_v53 = vadd.f32 %v3202_v63, %v3159_v27  ;;  %v3320_v1 = vpop.f32.mrb[9].mxu0 }
 0xacc   :  { %3165 = vst.msk [vmem:[#allocation5] sm:$0x3] %vm3164_vm0, %v3387_v53 }
 0xacd   :  { %3722 = shalt.err (!%p3719_p4)
}
 0xace   :  { %s3723_s16 = scalar_lea.hbm %s5951_s9, 32 }
 0xacf   :  { %p3724_p5 = scmp.ne.s32.totalorder %s5951_s9, %s3723_s16  ;;  %p3727_p6 = scmp.lt.u32.totalorder %s3723_s16, %s5951_s9 }
 0xad1   :  { %p3729_p7 = pnand %p3727_p6, %p3724_p5 }
 0xad3   :  { %3732 = shalt.err (!%p3729_p7)
}
 0xad4   :  { %3175 = dma.vmem_to_hbm [thread:$0]  %s3173_s1, 32, %s5951_s9, [#allocation6]  }
 0xad5   :  { %3733 = dma.done.wait [#allocation6], 32  }
 0xad6   :  { %3734 = vsyncadd [#allocation6], 4294967264 }
 0xad7   :  { %3179 = vsyncpa [#allocation6], 1 }

</bundles_post_ra>
